<compile_context>
chip_gen: v7x
topology: tpu7x:2x2x1
jax: 0.10.0
libtpu: 0.0.40
codegen_flags: <defaults>
</compile_context>

<pallas_src>
import math
import jax
import jax.numpy as jnp
from jax.experimental import pallas as pl
from jax.experimental.pallas import tpu as pltpu

# ---------------- configuration (the "args" of the PyTorch module) ------------
HIDDEN = 32            # args['hidden_size']
N_HEAD = 4             # args['n_head']
HEAD_DIM = HIDDEN // N_HEAD
N_SEED = 4             # args['n_seed_vector']
RECURRENT_N = 1        # args['recurrent_N'] (single-layer GRU)
NUM_OBJECTS = 8
INPUT_DIM = 16
OBS_SPACE = NUM_OBJECTS * INPUT_DIM
NUM_AGENTS = 2
N_THREADS = 2
BATCH = N_THREADS * NUM_AGENTS
ACTION_DIM = 5         # Discrete(5) action space
LN_EPS = 1e-5          # torch.nn.LayerNorm default eps
_ATT_SCALE = 1.0 / math.sqrt(HIDDEN)   # Set-Transformer uses sqrt(dim_V)
_NEG_INF = -1e30
# TODO(synk): use_attention_scaling / attention_scaling_rate variant not modelled
#             (flag is False here); standard 1/sqrt(dim_V) scaling is used.


# ---------------- in-kernel helpers -------------------------------------------
def _layernorm(x, g, b):
    mu = jnp.mean(x, axis=-1, keepdims=True)
    var = jnp.mean((x - mu) ** 2, axis=-1, keepdims=True)
    return (x - mu) * jax.lax.rsqrt(var + LN_EPS) * g + b


def _dot(a, b):
    return jnp.dot(a, b, preferred_element_type=jnp.float32)


def _load(*refs):
    return tuple(r[...] for r in refs)


def _block_bias(rq, rk, qg, kg):
    """Additive bias (0 inside own batch block, -1e30 outside). Static shapes."""
    ri = jax.lax.broadcasted_iota(jnp.int32, (rq, rk), 0)
    ci = jax.lax.broadcasted_iota(jnp.int32, (rq, rk), 1)
    same = jnp.zeros((rq, rk), jnp.bool_)
    for b in range(rq // qg):                      # static unroll (<= BATCH)
        same = jnp.logical_or(
            same,
            jnp.logical_and(
                jnp.logical_and(ri >= b * qg, ri < (b + 1) * qg),
                jnp.logical_and(ci >= b * kg, ci < (b + 1) * kg)))
    return jnp.where(same, 0.0, _NEG_INF)


def _head_mask(d, h):
    lane = jax.lax.broadcasted_iota(jnp.int32, (1, d), 1)
    return jnp.logical_and(lane >= h * HEAD_DIM,
                           lane < (h + 1) * HEAD_DIM).astype(jnp.float32)


def _seed_rep_matrix():
    """(B*N_SEED, N_SEED) matrix replicating the seed block once per batch."""
    ri = jax.lax.broadcasted_iota(jnp.int32, (BATCH * N_SEED, N_SEED), 0)
    ci = jax.lax.broadcasted_iota(jnp.int32, (BATCH * N_SEED, N_SEED), 1)
    eq = jnp.zeros((BATCH * N_SEED, N_SEED), jnp.bool_)
    for b in range(BATCH):                         # static unroll
        eq = jnp.logical_or(eq, ri == b * N_SEED + ci)
    return eq.astype(jnp.float32)


def _seed_pool_matrix():
    """(B, B*N_SEED) matrix averaging each batch's N_SEED rows."""
    ri = jax.lax.broadcasted_iota(jnp.int32, (BATCH, BATCH * N_SEED), 0)
    ci = jax.lax.broadcasted_iota(jnp.int32, (BATCH, BATCH * N_SEED), 1)
    sel = jnp.zeros((BATCH, BATCH * N_SEED), jnp.bool_)
    for b in range(BATCH):                         # static unroll
        sel = jnp.logical_or(
            sel,
            jnp.logical_and(ri == b,
                            jnp.logical_and(ci >= b * N_SEED,
                                            ci < (b + 1) * N_SEED)))
    return jnp.where(sel, 1.0 / N_SEED, 0.0)


def _mab_block(xq, xkv, qg, kg, params):
    """Set-Transformer MAB over row-stacked batch groups.

    xq : (Rq, D) queries, consecutive blocks of `qg` rows per batch element.
    xkv: (Rk, D) keys/values, blocks of `kg` rows per batch element.
    Heads use lane-masked full-width matmuls (no lane slicing / concat);
    cross-batch attention is removed with an additive block-diagonal bias.
    """
    wq, bq, wk, bk, wv, bv, wo, bo, g0, b0, g1, b1 = params
    rq, d = xq.shape
    rk = xkv.shape[0]

    Q = _dot(xq, wq) + bq
    K = _dot(xkv, wk) + bk
    V = _dot(xkv, wv) + bv
    Kt = K.T                                        # hoisted out of head loop

    bias = _block_bias(rq, rk, qg, kg)

    attn = jnp.zeros((rq, d), jnp.float32)
    for h in range(N_HEAD):                         # static unroll (4 heads)
        hm = _head_mask(d, h)                       # (1, D) head lane mask
        s = _dot(Q * hm, Kt) * _ATT_SCALE + bias    # == Qh @ Kh.T / sqrt(dim_V)
        m = jnp.max(s, axis=-1, keepdims=True)
        e = jnp.exp(s - m)
        a = e / jnp.sum(e, axis=-1, keepdims=True)
        attn = attn + _dot(a, V) * hm               # == a @ Vh on head-h lanes
    O = Q + attn                                    # residual with projected Q
    O = _layernorm(O, g0, b0)
    ff = jnp.maximum(_dot(O, wo) + bo, 0.0)
    return _layernorm(O + ff, g1, b1)


# ---------------- the fused Actor.forward kernel --------------------------------
def actor_fused_kernel(
    # activations
    obs_ref, h0_ref, mask_ref,
    # MLPBase
    fn_g, fn_b, bw1, bb1, bg1, bbe1, bw2, bb2, bg2, bbe2,
    # SAB over objects
    s1_wq, s1_bq, s1_wk, s1_bk, s1_wv, s1_bv, s1_wo, s1_bo, s1_g0, s1_b0, s1_g1, s1_b1,
    # PMA (seed vectors + MAB)
    p_S, p_wq, p_bq, p_wk, p_bk, p_wv, p_bv, p_wo, p_bo, p_g0, p_b0, p_g1, p_b1,
    # SAB over agents
    s2_wq, s2_bq, s2_wk, s2_bk, s2_wv, s2_bv, s2_wo, s2_bo, s2_g0, s2_b0, s2_g1, s2_b1,
    # GRU (per-gate weights) + LayerNorm
    w_ir, w_iz, w_in, w_hr, w_hz, w_hn, b_ir, b_iz, b_in, b_hr, b_hz, b_hn,
    rln_g, rln_b,
    # ACT layer
    act_w, act_b,
    # outputs
    act_ref, logp_ref, hout_ref,
):
    # ---- MLPBase on the whole (B*N_obj, D_in) slab ----------------------------
    x = obs_ref[...]
    x = _layernorm(x, fn_g[...], fn_b[...])                            # feature LN
    x = _layernorm(jnp.maximum(_dot(x, bw1[...]) + bb1[...], 0.0),
                   bg1[...], bbe1[...])                                # fc1
    x = _layernorm(jnp.maximum(_dot(x, bw2[...]) + bb2[...], 0.0),
                   bg2[...], bbe2[...])                                # fc2

    # ---- SetAttentionBlock over objects (block-diagonal per batch) -------------
    x = _mab_block(x, x, NUM_OBJECTS, NUM_OBJECTS,
                   _load(s1_wq, s1_bq, s1_wk, s1_bk, s1_wv, s1_bv,
                         s1_wo, s1_bo, s1_g0, s1_b0, s1_g1, s1_b1))

    # ---- PoolingMultiheadAttention: seeds attend to the object set -------------
    S_rep = _dot(_seed_rep_matrix(), p_S[...])        # (B*N_SEED, H), in-VMEM tile
    x = _mab_block(S_rep, x, N_SEED, NUM_OBJECTS,
                   _load(p_wq, p_bq, p_wk, p_bk, p_wv, p_bv,
                         p_wo, p_bo, p_g0, p_b0, p_g1, p_b1))
    x = _dot(_seed_pool_matrix(), x)                  # mean over seeds -> (B, H)

    # ---- recurrent policy: single GRU step on masked hidden state + LN ---------
    h = h0_ref[...] * mask_ref[...]
    r = jax.nn.sigmoid(_dot(x, w_ir[...]) + b_ir[...] + _dot(h, w_hr[...]) + b_hr[...])
    z = jax.nn.sigmoid(_dot(x, w_iz[...]) + b_iz[...] + _dot(h, w_hz[...]) + b_hz[...])
    n = jnp.tanh(_dot(x, w_in[...]) + b_in[...] + r * (_dot(h, w_hn[...]) + b_hn[...]))
    h_new = (1.0 - z) * n + z * h
    hout_ref[...] = h_new
    x = _layernorm(h_new, rln_g[...], rln_b[...])

    # ---- agent permutation-equivariant SAB (block-diagonal per thread) ---------
    x = _mab_block(x, x, NUM_AGENTS, NUM_AGENTS,
                   _load(s2_wq, s2_bq, s2_wk, s2_bk, s2_wv, s2_bv,
                         s2_wo, s2_bo, s2_g0, s2_b0, s2_g1, s2_b1))

    # ---- ACTLayer: deterministic Categorical (argmax + its log-prob) -----------
    logits = _dot(x, act_w[...]) + act_b[...]
    m = jnp.max(logits, axis=-1, keepdims=True)
    lse = m + jnp.log(jnp.sum(jnp.exp(logits - m), axis=-1, keepdims=True))
    idx = jax.lax.broadcasted_iota(jnp.int32, logits.shape, 1)
    cand = jnp.where(logits == m, idx, jnp.int32(ACTION_DIM))
    act_ref[...] = jnp.min(cand, axis=-1, keepdims=True).astype(jnp.int32)
    logp_ref[...] = m - lse
# TODO(synk): stochastic (sample) branch and available_actions masking of
#             ACTLayer not implemented; this is the deterministic argmax path.


# ---------------- parameters ----------------------------------------------------
def _mab_params(ks, d):
    k = iter(ks)
    n = lambda s: 0.1 * jax.random.normal(next(k), s, dtype=jnp.float32)
    return dict(wq=n((d, d)), bq=jnp.zeros((1, d), jnp.float32),
                wk=n((d, d)), bk=jnp.zeros((1, d), jnp.float32),
                wv=n((d, d)), bv=jnp.zeros((1, d), jnp.float32),
                wo=n((d, d)), bo=jnp.zeros((1, d), jnp.float32),
                g0=jnp.ones((1, d), jnp.float32), b0=jnp.zeros((1, d), jnp.float32),
                g1=jnp.ones((1, d), jnp.float32), b1=jnp.zeros((1, d), jnp.float32))


def init_params(key):
    ks = list(jax.random.split(key, 32))
    n = lambda s: 0.1 * jax.random.normal(ks.pop(), s, dtype=jnp.float32)
    params = {}
    params['base'] = dict(
        fn_g=jnp.ones((1, INPUT_DIM), jnp.float32),
        fn_b=jnp.zeros((1, INPUT_DIM), jnp.float32),
        w1=n((INPUT_DIM, HIDDEN)), b1=jnp.zeros((1, HIDDEN), jnp.float32),
        g1=jnp.ones((1, HIDDEN), jnp.float32), be1=jnp.zeros((1, HIDDEN), jnp.float32),
        w2=n((HIDDEN, HIDDEN)), b2=jnp.zeros((1, HIDDEN), jnp.float32),
        g2=jnp.ones((1, HIDDEN), jnp.float32), be2=jnp.zeros((1, HIDDEN), jnp.float32))
    params['sab1'] = _mab_params([ks.pop() for _ in range(4)], HIDDEN)
    pma = _mab_params([ks.pop() for _ in range(4)], HIDDEN)
    pma['S'] = n((N_SEED, HIDDEN))
    params['pma'] = pma
    params['sab2'] = _mab_params([ks.pop() for _ in range(4)], HIDDEN)
    params['rnn'] = dict(
        w_ih=n((HIDDEN, 3 * HIDDEN)), w_hh=n((HIDDEN, 3 * HIDDEN)),
        b_ih=jnp.zeros((1, 3 * HIDDEN), jnp.float32),
        b_hh=jnp.zeros((1, 3 * HIDDEN), jnp.float32),
        ln_g=jnp.ones((1, HIDDEN), jnp.float32),
        ln_b=jnp.zeros((1, HIDDEN), jnp.float32))
    params['act'] = dict(w=n((HIDDEN, ACTION_DIM)),
                         b=jnp.zeros((1, ACTION_DIM), jnp.float32))
    return params


# ---------------- full Actor.forward (one pallas_call) ---------------------------
def actor_forward(obs, rnn_states, masks, params):
    B = obs.shape[0]
    H = HIDDEN
    obs2d = obs.reshape(B * NUM_OBJECTS, INPUT_DIM)     # contiguous, free reshape
    h_in = rnn_states.reshape(B, H)

    base, s1, pm, s2 = params['base'], params['sab1'], params['pma'], params['sab2']
    rnn, act = params['rnn'], params['act']

    # split fused GRU gate weights/biases outside the kernel (lane-aligned slabs)
    w_ih, w_hh, b_ih, b_hh = rnn['w_ih'], rnn['w_hh'], rnn['b_ih'], rnn['b_hh']
    w_ir, w_iz, w_in = w_ih[:, :H], w_ih[:, H:2 * H], w_ih[:, 2 * H:]
    w_hr, w_hz, w_hn = w_hh[:, :H], w_hh[:, H:2 * H], w_hh[:, 2 * H:]
    b_ir, b_iz, b_in = b_ih[:, :H], b_ih[:, H:2 * H], b_ih[:, 2 * H:]
    b_hr, b_hz, b_hn = b_hh[:, :H], b_hh[:, H:2 * H], b_hh[:, 2 * H:]

    def mab_args(p):
        return (p['wq'], p['bq'], p['wk'], p['bk'], p['wv'], p['bv'],
                p['wo'], p['bo'], p['g0'], p['b0'], p['g1'], p['b1'])

    inputs = (
        obs2d, h_in, masks,
        base['fn_g'], base['fn_b'], base['w1'], base['b1'], base['g1'], base['be1'],
        base['w2'], base['b2'], base['g2'], base['be2'],
        *mab_args(s1),
        pm['S'], *mab_args(pm),
        *mab_args(s2),
        w_ir, w_iz, w_in, w_hr, w_hz, w_hn, b_ir, b_iz, b_in, b_hr, b_hz, b_hn,
        rnn['ln_g'], rnn['ln_b'],
        act['w'], act['b'],
    )

    vm = pl.BlockSpec(memory_space=pltpu.MemorySpace.VMEM)
    actions, logp, h_new = pl.pallas_call(
        actor_fused_kernel,
        in_specs=[vm] * len(inputs),
        out_specs=(vm, vm, vm),
        out_shape=(jax.ShapeDtypeStruct((B, 1), jnp.int32),
                   jax.ShapeDtypeStruct((B, 1), jnp.float32),
                   jax.ShapeDtypeStruct((B, H), jnp.float32)),
    )(*inputs)
    return actions, logp, h_new.reshape(B, RECURRENT_N, H)


if __name__ == "__main__":
    key = jax.random.PRNGKey(0)
    k_obs, k_h, k_p = jax.random.split(key, 3)
    obs = jax.random.normal(k_obs, (BATCH, OBS_SPACE), dtype=jnp.float32)
    rnn_states = jax.random.normal(k_h, (BATCH, RECURRENT_N, HIDDEN), dtype=jnp.float32)
    masks = jnp.ones((BATCH, 1), dtype=jnp.float32)
    params = init_params(k_p)

    actions, logp, new_states = jax.jit(actor_forward)(obs, rnn_states, masks, params)
    jax.block_until_ready((actions, logp, new_states))
    assert actions.shape == (BATCH, 1) and actions.dtype == jnp.int32
    assert logp.shape == (BATCH, 1) and logp.dtype == jnp.float32
    assert new_states.shape == (BATCH, RECURRENT_N, HIDDEN)
    print("KERNEL_OK")
</pallas_src>

<mosaic_0001>
module attributes {stable_mosaic.version = 11 : i64} {
  func.func @actor_fused_kernel(%arg0: memref<32x16xf32, #tpu.memory_space<vmem>>, %arg1: memref<4x32xf32, #tpu.memory_space<vmem>>, %arg2: memref<4x1xf32, #tpu.memory_space<vmem>>, %arg3: memref<1x16xf32, #tpu.memory_space<vmem>>, %arg4: memref<1x16xf32, #tpu.memory_space<vmem>>, %arg5: memref<16x32xf32, #tpu.memory_space<vmem>>, %arg6: memref<1x32xf32, #tpu.memory_space<vmem>>, %arg7: memref<1x32xf32, #tpu.memory_space<vmem>>, %arg8: memref<1x32xf32, #tpu.memory_space<vmem>>, %arg9: memref<32x32xf32, #tpu.memory_space<vmem>>, %arg10: memref<1x32xf32, #tpu.memory_space<vmem>>, %arg11: memref<1x32xf32, #tpu.memory_space<vmem>>, %arg12: memref<1x32xf32, #tpu.memory_space<vmem>>, %arg13: memref<32x32xf32, #tpu.memory_space<vmem>>, %arg14: memref<1x32xf32, #tpu.memory_space<vmem>>, %arg15: memref<32x32xf32, #tpu.memory_space<vmem>>, %arg16: memref<1x32xf32, #tpu.memory_space<vmem>>, %arg17: memref<32x32xf32, #tpu.memory_space<vmem>>, %arg18: memref<1x32xf32, #tpu.memory_space<vmem>>, %arg19: memref<32x32xf32, #tpu.memory_space<vmem>>, %arg20: memref<1x32xf32, #tpu.memory_space<vmem>>, %arg21: memref<1x32xf32, #tpu.memory_space<vmem>>, %arg22: memref<1x32xf32, #tpu.memory_space<vmem>>, %arg23: memref<1x32xf32, #tpu.memory_space<vmem>>, %arg24: memref<1x32xf32, #tpu.memory_space<vmem>>, %arg25: memref<4x32xf32, #tpu.memory_space<vmem>>, %arg26: memref<32x32xf32, #tpu.memory_space<vmem>>, %arg27: memref<1x32xf32, #tpu.memory_space<vmem>>, %arg28: memref<32x32xf32, #tpu.memory_space<vmem>>, %arg29: memref<1x32xf32, #tpu.memory_space<vmem>>, %arg30: memref<32x32xf32, #tpu.memory_space<vmem>>, %arg31: memref<1x32xf32, #tpu.memory_space<vmem>>, %arg32: memref<32x32xf32, #tpu.memory_space<vmem>>, %arg33: memref<1x32xf32, #tpu.memory_space<vmem>>, %arg34: memref<1x32xf32, #tpu.memory_space<vmem>>, %arg35: memref<1x32xf32, #tpu.memory_space<vmem>>, %arg36: memref<1x32xf32, #tpu.memory_space<vmem>>, %arg37: memref<1x32xf32, #tpu.memory_space<vmem>>, %arg38: memref<32x32xf32, #tpu.memory_space<vmem>>, %arg39: memref<1x32xf32, #tpu.memory_space<vmem>>, %arg40: memref<32x32xf32, #tpu.memory_space<vmem>>, %arg41: memref<1x32xf32, #tpu.memory_space<vmem>>, %arg42: memref<32x32xf32, #tpu.memory_space<vmem>>, %arg43: memref<1x32xf32, #tpu.memory_space<vmem>>, %arg44: memref<32x32xf32, #tpu.memory_space<vmem>>, %arg45: memref<1x32xf32, #tpu.memory_space<vmem>>, %arg46: memref<1x32xf32, #tpu.memory_space<vmem>>, %arg47: memref<1x32xf32, #tpu.memory_space<vmem>>, %arg48: memref<1x32xf32, #tpu.memory_space<vmem>>, %arg49: memref<1x32xf32, #tpu.memory_space<vmem>>, %arg50: memref<32x32xf32, #tpu.memory_space<vmem>>, %arg51: memref<32x32xf32, #tpu.memory_space<vmem>>, %arg52: memref<32x32xf32, #tpu.memory_space<vmem>>, %arg53: memref<32x32xf32, #tpu.memory_space<vmem>>, %arg54: memref<32x32xf32, #tpu.memory_space<vmem>>, %arg55: memref<32x32xf32, #tpu.memory_space<vmem>>, %arg56: memref<1x32xf32, #tpu.memory_space<vmem>>, %arg57: memref<1x32xf32, #tpu.memory_space<vmem>>, %arg58: memref<1x32xf32, #tpu.memory_space<vmem>>, %arg59: memref<1x32xf32, #tpu.memory_space<vmem>>, %arg60: memref<1x32xf32, #tpu.memory_space<vmem>>, %arg61: memref<1x32xf32, #tpu.memory_space<vmem>>, %arg62: memref<1x32xf32, #tpu.memory_space<vmem>>, %arg63: memref<1x32xf32, #tpu.memory_space<vmem>>, %arg64: memref<32x5xf32, #tpu.memory_space<vmem>>, %arg65: memref<1x5xf32, #tpu.memory_space<vmem>>, %arg66: memref<4x1xi32, #tpu.memory_space<vmem>>, %arg67: memref<4x1xf32, #tpu.memory_space<vmem>>, %arg68: memref<4x32xf32, #tpu.memory_space<vmem>>) attributes {dimension_semantics = [], scalar_prefetch = 0 : i64, scratch_operands = 0 : i64, tpu.core_type = #tpu.core_type<tc>} {
    %c0 = arith.constant 0 : index
    %c0_0 = arith.constant 0 : index
    %0 = vector.load %arg0[%c0, %c0_0] : memref<32x16xf32, #tpu.memory_space<vmem>>, vector<32x16xf32>
    %c0_1 = arith.constant 0 : index
    %c0_2 = arith.constant 0 : index
    %1 = vector.load %arg3[%c0_1, %c0_2] : memref<1x16xf32, #tpu.memory_space<vmem>>, vector<1x16xf32>
    %c0_3 = arith.constant 0 : index
    %c0_4 = arith.constant 0 : index
    %2 = vector.load %arg4[%c0_3, %c0_4] : memref<1x16xf32, #tpu.memory_space<vmem>>, vector<1x16xf32>
    %cst = arith.constant dense<0.000000e+00> : vector<32xf32>
    %3 = vector.multi_reduction <add>, %0, %cst [1] : vector<32x16xf32> to vector<32xf32>
    %4 = vector.shape_cast %3 : vector<32xf32> to vector<32x1xf32>
    %cst_5 = arith.constant 1.600000e+01 : f32
    %5 = vector.broadcast %cst_5 : f32 to vector<32x1xf32>
    %6 = arith.divf %4, %5 : vector<32x1xf32>
    %7 = vector.broadcast %6 : vector<32x1xf32> to vector<32x16xf32>
    %8 = arith.subf %0, %7 : vector<32x16xf32>
    %9 = arith.mulf %8, %8 : vector<32x16xf32>
    %cst_6 = arith.constant dense<0.000000e+00> : vector<32xf32>
    %10 = vector.multi_reduction <add>, %9, %cst_6 [1] : vector<32x16xf32> to vector<32xf32>
    %11 = vector.shape_cast %10 : vector<32xf32> to vector<32x1xf32>
    %cst_7 = arith.constant 1.600000e+01 : f32
    %12 = vector.broadcast %cst_7 : f32 to vector<32x1xf32>
    %13 = arith.divf %11, %12 : vector<32x1xf32>
    %14 = vector.broadcast %6 : vector<32x1xf32> to vector<32x16xf32>
    %15 = arith.subf %0, %14 : vector<32x16xf32>
    %cst_8 = arith.constant 9.99999974E-6 : f32
    %16 = vector.broadcast %cst_8 : f32 to vector<32x1xf32>
    %17 = arith.addf %13, %16 : vector<32x1xf32>
    %18 = math.rsqrt %17 : vector<32x1xf32>
    %19 = vector.broadcast %18 : vector<32x1xf32> to vector<32x16xf32>
    %20 = arith.mulf %15, %19 : vector<32x16xf32>
    %21 = vector.broadcast %1 : vector<1x16xf32> to vector<32x16xf32>
    %22 = arith.mulf %20, %21 : vector<32x16xf32>
    %23 = vector.broadcast %2 : vector<1x16xf32> to vector<32x16xf32>
    %24 = arith.addf %22, %23 : vector<32x16xf32>
    %c0_9 = arith.constant 0 : index
    %c0_10 = arith.constant 0 : index
    %25 = vector.load %arg5[%c0_9, %c0_10] : memref<16x32xf32, #tpu.memory_space<vmem>>, vector<16x32xf32>
    %cst_11 = arith.constant dense<0.000000e+00> : vector<32x32xf32>
    %26 = tpu.matmul %24, %25, %cst_11 {dimension_numbers = #tpu.dot_dimension_numbers<[1], [0], [0], [1], [0, 0, 1, 1], [], []>} : vector<32x16xf32>, vector<16x32xf32>, vector<32x32xf32> -> vector<32x32xf32>
    %c0_12 = arith.constant 0 : index
    %c0_13 = arith.constant 0 : index
    %27 = vector.load %arg6[%c0_12, %c0_13] : memref<1x32xf32, #tpu.memory_space<vmem>>, vector<1x32xf32>
    %28 = vector.broadcast %27 : vector<1x32xf32> to vector<32x32xf32>
    %29 = arith.addf %26, %28 : vector<32x32xf32>
    %cst_14 = arith.constant 0.000000e+00 : f32
    %30 = vector.broadcast %cst_14 : f32 to vector<32x32xf32>
    %31 = arith.maximumf %29, %30 : vector<32x32xf32>
    %c0_15 = arith.constant 0 : index
    %c0_16 = arith.constant 0 : index
    %32 = vector.load %arg7[%c0_15, %c0_16] : memref<1x32xf32, #tpu.memory_space<vmem>>, vector<1x32xf32>
    %c0_17 = arith.constant 0 : index
    %c0_18 = arith.constant 0 : index
    %33 = vector.load %arg8[%c0_17, %c0_18] : memref<1x32xf32, #tpu.memory_space<vmem>>, vector<1x32xf32>
    %cst_19 = arith.constant dense<0.000000e+00> : vector<32xf32>
    %34 = vector.multi_reduction <add>, %31, %cst_19 [1] : vector<32x32xf32> to vector<32xf32>
    %35 = vector.shape_cast %34 : vector<32xf32> to vector<32x1xf32>
    %cst_20 = arith.constant 3.200000e+01 : f32
    %36 = vector.broadcast %cst_20 : f32 to vector<32x1xf32>
    %37 = arith.divf %35, %36 : vector<32x1xf32>
    %38 = vector.broadcast %37 : vector<32x1xf32> to vector<32x32xf32>
    %39 = arith.subf %31, %38 : vector<32x32xf32>
    %40 = arith.mulf %39, %39 : vector<32x32xf32>
    %cst_21 = arith.constant dense<0.000000e+00> : vector<32xf32>
    %41 = vector.multi_reduction <add>, %40, %cst_21 [1] : vector<32x32xf32> to vector<32xf32>
    %42 = vector.shape_cast %41 : vector<32xf32> to vector<32x1xf32>
    %cst_22 = arith.constant 3.200000e+01 : f32
    %43 = vector.broadcast %cst_22 : f32 to vector<32x1xf32>
    %44 = arith.divf %42, %43 : vector<32x1xf32>
    %45 = vector.broadcast %37 : vector<32x1xf32> to vector<32x32xf32>
    %46 = arith.subf %31, %45 : vector<32x32xf32>
    %cst_23 = arith.constant 9.99999974E-6 : f32
    %47 = vector.broadcast %cst_23 : f32 to vector<32x1xf32>
    %48 = arith.addf %44, %47 : vector<32x1xf32>
    %49 = math.rsqrt %48 : vector<32x1xf32>
    %50 = vector.broadcast %49 : vector<32x1xf32> to vector<32x32xf32>
    %51 = arith.mulf %46, %50 : vector<32x32xf32>
    %52 = vector.broadcast %32 : vector<1x32xf32> to vector<32x32xf32>
    %53 = arith.mulf %51, %52 : vector<32x32xf32>
    %54 = vector.broadcast %33 : vector<1x32xf32> to vector<32x32xf32>
    %55 = arith.addf %53, %54 : vector<32x32xf32>
    %c0_24 = arith.constant 0 : index
    %c0_25 = arith.constant 0 : index
    %56 = vector.load %arg9[%c0_24, %c0_25] : memref<32x32xf32, #tpu.memory_space<vmem>>, vector<32x32xf32>
    %cst_26 = arith.constant dense<0.000000e+00> : vector<32x32xf32>
    %57 = tpu.matmul %55, %56, %cst_26 {dimension_numbers = #tpu.dot_dimension_numbers<[1], [0], [0], [1], [0, 0, 1, 1], [], []>} : vector<32x32xf32>, vector<32x32xf32>, vector<32x32xf32> -> vector<32x32xf32>
    %c0_27 = arith.constant 0 : index
    %c0_28 = arith.constant 0 : index
    %58 = vector.load %arg10[%c0_27, %c0_28] : memref<1x32xf32, #tpu.memory_space<vmem>>, vector<1x32xf32>
    %59 = vector.broadcast %58 : vector<1x32xf32> to vector<32x32xf32>
    %60 = arith.addf %57, %59 : vector<32x32xf32>
    %cst_29 = arith.constant 0.000000e+00 : f32
    %61 = vector.broadcast %cst_29 : f32 to vector<32x32xf32>
    %62 = arith.maximumf %60, %61 : vector<32x32xf32>
    %c0_30 = arith.constant 0 : index
    %c0_31 = arith.constant 0 : index
    %63 = vector.load %arg11[%c0_30, %c0_31] : memref<1x32xf32, #tpu.memory_space<vmem>>, vector<1x32xf32>
    %c0_32 = arith.constant 0 : index
    %c0_33 = arith.constant 0 : index
    %64 = vector.load %arg12[%c0_32, %c0_33] : memref<1x32xf32, #tpu.memory_space<vmem>>, vector<1x32xf32>
    %cst_34 = arith.constant dense<0.000000e+00> : vector<32xf32>
    %65 = vector.multi_reduction <add>, %62, %cst_34 [1] : vector<32x32xf32> to vector<32xf32>
    %66 = vector.shape_cast %65 : vector<32xf32> to vector<32x1xf32>
    %cst_35 = arith.constant 3.200000e+01 : f32
    %67 = vector.broadcast %cst_35 : f32 to vector<32x1xf32>
    %68 = arith.divf %66, %67 : vector<32x1xf32>
    %69 = vector.broadcast %68 : vector<32x1xf32> to vector<32x32xf32>
    %70 = arith.subf %62, %69 : vector<32x32xf32>
    %71 = arith.mulf %70, %70 : vector<32x32xf32>
    %cst_36 = arith.constant dense<0.000000e+00> : vector<32xf32>
    %72 = vector.multi_reduction <add>, %71, %cst_36 [1] : vector<32x32xf32> to vector<32xf32>
    %73 = vector.shape_cast %72 : vector<32xf32> to vector<32x1xf32>
    %cst_37 = arith.constant 3.200000e+01 : f32
    %74 = vector.broadcast %cst_37 : f32 to vector<32x1xf32>
    %75 = arith.divf %73, %74 : vector<32x1xf32>
    %76 = vector.broadcast %68 : vector<32x1xf32> to vector<32x32xf32>
    %77 = arith.subf %62, %76 : vector<32x32xf32>
    %cst_38 = arith.constant 9.99999974E-6 : f32
    %78 = vector.broadcast %cst_38 : f32 to vector<32x1xf32>
    %79 = arith.addf %75, %78 : vector<32x1xf32>
    %80 = math.rsqrt %79 : vector<32x1xf32>
    %81 = vector.broadcast %80 : vector<32x1xf32> to vector<32x32xf32>
    %82 = arith.mulf %77, %81 : vector<32x32xf32>
    %83 = vector.broadcast %63 : vector<1x32xf32> to vector<32x32xf32>
    %84 = arith.mulf %82, %83 : vector<32x32xf32>
    %85 = vector.broadcast %64 : vector<1x32xf32> to vector<32x32xf32>
    %86 = arith.addf %84, %85 : vector<32x32xf32>
    %c0_39 = arith.constant 0 : index
    %c0_40 = arith.constant 0 : index
    %87 = vector.load %arg13[%c0_39, %c0_40] : memref<32x32xf32, #tpu.memory_space<vmem>>, vector<32x32xf32>
    %c0_41 = arith.constant 0 : index
    %c0_42 = arith.constant 0 : index
    %88 = vector.load %arg14[%c0_41, %c0_42] : memref<1x32xf32, #tpu.memory_space<vmem>>, vector<1x32xf32>
    %c0_43 = arith.constant 0 : index
    %c0_44 = arith.constant 0 : index
    %89 = vector.load %arg15[%c0_43, %c0_44] : memref<32x32xf32, #tpu.memory_space<vmem>>, vector<32x32xf32>
    %c0_45 = arith.constant 0 : index
    %c0_46 = arith.constant 0 : index
    %90 = vector.load %arg16[%c0_45, %c0_46] : memref<1x32xf32, #tpu.memory_space<vmem>>, vector<1x32xf32>
    %c0_47 = arith.constant 0 : index
    %c0_48 = arith.constant 0 : index
    %91 = vector.load %arg17[%c0_47, %c0_48] : memref<32x32xf32, #tpu.memory_space<vmem>>, vector<32x32xf32>
    %c0_49 = arith.constant 0 : index
    %c0_50 = arith.constant 0 : index
    %92 = vector.load %arg18[%c0_49, %c0_50] : memref<1x32xf32, #tpu.memory_space<vmem>>, vector<1x32xf32>
    %c0_51 = arith.constant 0 : index
    %c0_52 = arith.constant 0 : index
    %93 = vector.load %arg19[%c0_51, %c0_52] : memref<32x32xf32, #tpu.memory_space<vmem>>, vector<32x32xf32>
    %c0_53 = arith.constant 0 : index
    %c0_54 = arith.constant 0 : index
    %94 = vector.load %arg20[%c0_53, %c0_54] : memref<1x32xf32, #tpu.memory_space<vmem>>, vector<1x32xf32>
    %c0_55 = arith.constant 0 : index
    %c0_56 = arith.constant 0 : index
    %95 = vector.load %arg21[%c0_55, %c0_56] : memref<1x32xf32, #tpu.memory_space<vmem>>, vector<1x32xf32>
    %c0_57 = arith.constant 0 : index
    %c0_58 = arith.constant 0 : index
    %96 = vector.load %arg22[%c0_57, %c0_58] : memref<1x32xf32, #tpu.memory_space<vmem>>, vector<1x32xf32>
    %c0_59 = arith.constant 0 : index
    %c0_60 = arith.constant 0 : index
    %97 = vector.load %arg23[%c0_59, %c0_60] : memref<1x32xf32, #tpu.memory_space<vmem>>, vector<1x32xf32>
    %c0_61 = arith.constant 0 : index
    %c0_62 = arith.constant 0 : index
    %98 = vector.load %arg24[%c0_61, %c0_62] : memref<1x32xf32, #tpu.memory_space<vmem>>, vector<1x32xf32>
    %cst_63 = arith.constant dense<0.000000e+00> : vector<32x32xf32>
    %99 = tpu.matmul %86, %87, %cst_63 {dimension_numbers = #tpu.dot_dimension_numbers<[1], [0], [0], [1], [0, 0, 1, 1], [], []>} : vector<32x32xf32>, vector<32x32xf32>, vector<32x32xf32> -> vector<32x32xf32>
    %100 = vector.broadcast %88 : vector<1x32xf32> to vector<32x32xf32>
    %101 = arith.addf %99, %100 : vector<32x32xf32>
    %cst_64 = arith.constant dense<0.000000e+00> : vector<32x32xf32>
    %102 = tpu.matmul %86, %89, %cst_64 {dimension_numbers = #tpu.dot_dimension_numbers<[1], [0], [0], [1], [0, 0, 1, 1], [], []>} : vector<32x32xf32>, vector<32x32xf32>, vector<32x32xf32> -> vector<32x32xf32>
    %103 = vector.broadcast %90 : vector<1x32xf32> to vector<32x32xf32>
    %104 = arith.addf %102, %103 : vector<32x32xf32>
    %cst_65 = arith.constant dense<0.000000e+00> : vector<32x32xf32>
    %105 = tpu.matmul %86, %91, %cst_65 {dimension_numbers = #tpu.dot_dimension_numbers<[1], [0], [0], [1], [0, 0, 1, 1], [], []>} : vector<32x32xf32>, vector<32x32xf32>, vector<32x32xf32> -> vector<32x32xf32>
    %106 = vector.broadcast %92 : vector<1x32xf32> to vector<32x32xf32>
    %107 = arith.addf %105, %106 : vector<32x32xf32>
    %108 = tpu.transpose %104, [1, 0] : vector<32x32xf32> -> vector<32x32xf32>
    %109 = tpu.iota {dimensions = array<i32: 0>} : vector<32x32xi32>
    %110 = tpu.iota {dimensions = array<i32: 1>} : vector<32x32xi32>
    %false = arith.constant false
    %111 = vector.broadcast %false : i1 to vector<32x32xi1>
    %c0_i32 = arith.constant 0 : i32
    %112 = vector.broadcast %c0_i32 : i32 to vector<32x32xi32>
    %113 = arith.cmpi sge, %109, %112 : vector<32x32xi32>
    %c8_i32 = arith.constant 8 : i32
    %114 = vector.broadcast %c8_i32 : i32 to vector<32x32xi32>
    %115 = arith.cmpi slt, %109, %114 : vector<32x32xi32>
    %116 = arith.andi %113, %115 : vector<32x32xi1>
    %c0_i32_66 = arith.constant 0 : i32
    %117 = vector.broadcast %c0_i32_66 : i32 to vector<32x32xi32>
    %118 = arith.cmpi sge, %110, %117 : vector<32x32xi32>
    %c8_i32_67 = arith.constant 8 : i32
    %119 = vector.broadcast %c8_i32_67 : i32 to vector<32x32xi32>
    %120 = arith.cmpi slt, %110, %119 : vector<32x32xi32>
    %121 = arith.andi %118, %120 : vector<32x32xi1>
    %122 = arith.andi %116, %121 : vector<32x32xi1>
    %123 = arith.ori %111, %122 : vector<32x32xi1>
    %c8_i32_68 = arith.constant 8 : i32
    %124 = vector.broadcast %c8_i32_68 : i32 to vector<32x32xi32>
    %125 = arith.cmpi sge, %109, %124 : vector<32x32xi32>
    %c16_i32 = arith.constant 16 : i32
    %126 = vector.broadcast %c16_i32 : i32 to vector<32x32xi32>
    %127 = arith.cmpi slt, %109, %126 : vector<32x32xi32>
    %128 = arith.andi %125, %127 : vector<32x32xi1>
    %c8_i32_69 = arith.constant 8 : i32
    %129 = vector.broadcast %c8_i32_69 : i32 to vector<32x32xi32>
    %130 = arith.cmpi sge, %110, %129 : vector<32x32xi32>
    %c16_i32_70 = arith.constant 16 : i32
    %131 = vector.broadcast %c16_i32_70 : i32 to vector<32x32xi32>
    %132 = arith.cmpi slt, %110, %131 : vector<32x32xi32>
    %133 = arith.andi %130, %132 : vector<32x32xi1>
    %134 = arith.andi %128, %133 : vector<32x32xi1>
    %135 = arith.ori %123, %134 : vector<32x32xi1>
    %c16_i32_71 = arith.constant 16 : i32
    %136 = vector.broadcast %c16_i32_71 : i32 to vector<32x32xi32>
    %137 = arith.cmpi sge, %109, %136 : vector<32x32xi32>
    %c24_i32 = arith.constant 24 : i32
    %138 = vector.broadcast %c24_i32 : i32 to vector<32x32xi32>
    %139 = arith.cmpi slt, %109, %138 : vector<32x32xi32>
    %140 = arith.andi %137, %139 : vector<32x32xi1>
    %c16_i32_72 = arith.constant 16 : i32
    %141 = vector.broadcast %c16_i32_72 : i32 to vector<32x32xi32>
    %142 = arith.cmpi sge, %110, %141 : vector<32x32xi32>
    %c24_i32_73 = arith.constant 24 : i32
    %143 = vector.broadcast %c24_i32_73 : i32 to vector<32x32xi32>
    %144 = arith.cmpi slt, %110, %143 : vector<32x32xi32>
    %145 = arith.andi %142, %144 : vector<32x32xi1>
    %146 = arith.andi %140, %145 : vector<32x32xi1>
    %147 = arith.ori %135, %146 : vector<32x32xi1>
    %c24_i32_74 = arith.constant 24 : i32
    %148 = vector.broadcast %c24_i32_74 : i32 to vector<32x32xi32>
    %149 = arith.cmpi sge, %109, %148 : vector<32x32xi32>
    %c32_i32 = arith.constant 32 : i32
    %150 = vector.broadcast %c32_i32 : i32 to vector<32x32xi32>
    %151 = arith.cmpi slt, %109, %150 : vector<32x32xi32>
    %152 = arith.andi %149, %151 : vector<32x32xi1>
    %c24_i32_75 = arith.constant 24 : i32
    %153 = vector.broadcast %c24_i32_75 : i32 to vector<32x32xi32>
    %154 = arith.cmpi sge, %110, %153 : vector<32x32xi32>
    %c32_i32_76 = arith.constant 32 : i32
    %155 = vector.broadcast %c32_i32_76 : i32 to vector<32x32xi32>
    %156 = arith.cmpi slt, %110, %155 : vector<32x32xi32>
    %157 = arith.andi %154, %156 : vector<32x32xi1>
    %158 = arith.andi %152, %157 : vector<32x32xi1>
    %159 = arith.ori %147, %158 : vector<32x32xi1>
    %cst_77 = arith.constant 0.000000e+00 : f32
    %cst_78 = arith.constant -1.000000e+30 : f32
    %160 = vector.broadcast %cst_77 : f32 to vector<32x32xf32>
    %161 = vector.broadcast %cst_78 : f32 to vector<32x32xf32>
    %162 = arith.select %159, %160, %161 : vector<32x32xi1>, vector<32x32xf32>
    %cst_79 = arith.constant 0.000000e+00 : f32
    %163 = vector.broadcast %cst_79 : f32 to vector<32x32xf32>
    %164 = tpu.iota {dimensions = array<i32: 1>} : vector<1x32xi32>
    %c0_i32_80 = arith.constant 0 : i32
    %165 = vector.broadcast %c0_i32_80 : i32 to vector<1x32xi32>
    %166 = arith.cmpi sge, %164, %165 : vector<1x32xi32>
    %c8_i32_81 = arith.constant 8 : i32
    %167 = vector.broadcast %c8_i32_81 : i32 to vector<1x32xi32>
    %168 = arith.cmpi slt, %164, %167 : vector<1x32xi32>
    %169 = arith.andi %166, %168 : vector<1x32xi1>
    %170 = arith.extui %169 : vector<1x32xi1> to vector<1x32xi32>
    %171 = arith.sitofp %170 : vector<1x32xi32> to vector<1x32xf32>
    %172 = vector.broadcast %171 : vector<1x32xf32> to vector<32x32xf32>
    %173 = arith.mulf %101, %172 : vector<32x32xf32>
    %cst_82 = arith.constant dense<0.000000e+00> : vector<32x32xf32>
    %174 = tpu.matmul %173, %108, %cst_82 {dimension_numbers = #tpu.dot_dimension_numbers<[1], [0], [0], [1], [0, 0, 1, 1], [], []>} : vector<32x32xf32>, vector<32x32xf32>, vector<32x32xf32> -> vector<32x32xf32>
    %cst_83 = arith.constant 0.176776692 : f32
    %175 = vector.broadcast %cst_83 : f32 to vector<32x32xf32>
    %176 = arith.mulf %174, %175 : vector<32x32xf32>
    %177 = arith.addf %176, %162 : vector<32x32xf32>
    %cst_84 = arith.constant dense<0xFF800000> : vector<32xf32>
    %178 = vector.multi_reduction <maximumf>, %177, %cst_84 [1] : vector<32x32xf32> to vector<32xf32>
    %179 = vector.shape_cast %178 : vector<32xf32> to vector<32x1xf32>
    %180 = vector.broadcast %179 : vector<32x1xf32> to vector<32x32xf32>
    %181 = arith.subf %177, %180 : vector<32x32xf32>
    %182 = math.exp %181 : vector<32x32xf32>
    %cst_85 = arith.constant dense<0.000000e+00> : vector<32xf32>
    %183 = vector.multi_reduction <add>, %182, %cst_85 [1] : vector<32x32xf32> to vector<32xf32>
    %184 = vector.shape_cast %183 : vector<32xf32> to vector<32x1xf32>
    %185 = vector.broadcast %184 : vector<32x1xf32> to vector<32x32xf32>
    %186 = arith.divf %182, %185 : vector<32x32xf32>
    %cst_86 = arith.constant dense<0.000000e+00> : vector<32x32xf32>
    %187 = tpu.matmul %186, %107, %cst_86 {dimension_numbers = #tpu.dot_dimension_numbers<[1], [0], [0], [1], [0, 0, 1, 1], [], []>} : vector<32x32xf32>, vector<32x32xf32>, vector<32x32xf32> -> vector<32x32xf32>
    %188 = vector.broadcast %171 : vector<1x32xf32> to vector<32x32xf32>
    %189 = arith.mulf %187, %188 : vector<32x32xf32>
    %190 = arith.addf %163, %189 : vector<32x32xf32>
    %191 = tpu.iota {dimensions = array<i32: 1>} : vector<1x32xi32>
    %c8_i32_87 = arith.constant 8 : i32
    %192 = vector.broadcast %c8_i32_87 : i32 to vector<1x32xi32>
    %193 = arith.cmpi sge, %191, %192 : vector<1x32xi32>
    %c16_i32_88 = arith.constant 16 : i32
    %194 = vector.broadcast %c16_i32_88 : i32 to vector<1x32xi32>
    %195 = arith.cmpi slt, %191, %194 : vector<1x32xi32>
    %196 = arith.andi %193, %195 : vector<1x32xi1>
    %197 = arith.extui %196 : vector<1x32xi1> to vector<1x32xi32>
    %198 = arith.sitofp %197 : vector<1x32xi32> to vector<1x32xf32>
    %199 = vector.broadcast %198 : vector<1x32xf32> to vector<32x32xf32>
    %200 = arith.mulf %101, %199 : vector<32x32xf32>
    %cst_89 = arith.constant dense<0.000000e+00> : vector<32x32xf32>
    %201 = tpu.matmul %200, %108, %cst_89 {dimension_numbers = #tpu.dot_dimension_numbers<[1], [0], [0], [1], [0, 0, 1, 1], [], []>} : vector<32x32xf32>, vector<32x32xf32>, vector<32x32xf32> -> vector<32x32xf32>
    %cst_90 = arith.constant 0.176776692 : f32
    %202 = vector.broadcast %cst_90 : f32 to vector<32x32xf32>
    %203 = arith.mulf %201, %202 : vector<32x32xf32>
    %204 = arith.addf %203, %162 : vector<32x32xf32>
    %cst_91 = arith.constant dense<0xFF800000> : vector<32xf32>
    %205 = vector.multi_reduction <maximumf>, %204, %cst_91 [1] : vector<32x32xf32> to vector<32xf32>
    %206 = vector.shape_cast %205 : vector<32xf32> to vector<32x1xf32>
    %207 = vector.broadcast %206 : vector<32x1xf32> to vector<32x32xf32>
    %208 = arith.subf %204, %207 : vector<32x32xf32>
    %209 = math.exp %208 : vector<32x32xf32>
    %cst_92 = arith.constant dense<0.000000e+00> : vector<32xf32>
    %210 = vector.multi_reduction <add>, %209, %cst_92 [1] : vector<32x32xf32> to vector<32xf32>
    %211 = vector.shape_cast %210 : vector<32xf32> to vector<32x1xf32>
    %212 = vector.broadcast %211 : vector<32x1xf32> to vector<32x32xf32>
    %213 = arith.divf %209, %212 : vector<32x32xf32>
    %cst_93 = arith.constant dense<0.000000e+00> : vector<32x32xf32>
    %214 = tpu.matmul %213, %107, %cst_93 {dimension_numbers = #tpu.dot_dimension_numbers<[1], [0], [0], [1], [0, 0, 1, 1], [], []>} : vector<32x32xf32>, vector<32x32xf32>, vector<32x32xf32> -> vector<32x32xf32>
    %215 = vector.broadcast %198 : vector<1x32xf32> to vector<32x32xf32>
    %216 = arith.mulf %214, %215 : vector<32x32xf32>
    %217 = arith.addf %190, %216 : vector<32x32xf32>
    %218 = tpu.iota {dimensions = array<i32: 1>} : vector<1x32xi32>
    %c16_i32_94 = arith.constant 16 : i32
    %219 = vector.broadcast %c16_i32_94 : i32 to vector<1x32xi32>
    %220 = arith.cmpi sge, %218, %219 : vector<1x32xi32>
    %c24_i32_95 = arith.constant 24 : i32
    %221 = vector.broadcast %c24_i32_95 : i32 to vector<1x32xi32>
    %222 = arith.cmpi slt, %218, %221 : vector<1x32xi32>
    %223 = arith.andi %220, %222 : vector<1x32xi1>
    %224 = arith.extui %223 : vector<1x32xi1> to vector<1x32xi32>
    %225 = arith.sitofp %224 : vector<1x32xi32> to vector<1x32xf32>
    %226 = vector.broadcast %225 : vector<1x32xf32> to vector<32x32xf32>
    %227 = arith.mulf %101, %226 : vector<32x32xf32>
    %cst_96 = arith.constant dense<0.000000e+00> : vector<32x32xf32>
    %228 = tpu.matmul %227, %108, %cst_96 {dimension_numbers = #tpu.dot_dimension_numbers<[1], [0], [0], [1], [0, 0, 1, 1], [], []>} : vector<32x32xf32>, vector<32x32xf32>, vector<32x32xf32> -> vector<32x32xf32>
    %cst_97 = arith.constant 0.176776692 : f32
    %229 = vector.broadcast %cst_97 : f32 to vector<32x32xf32>
    %230 = arith.mulf %228, %229 : vector<32x32xf32>
    %231 = arith.addf %230, %162 : vector<32x32xf32>
    %cst_98 = arith.constant dense<0xFF800000> : vector<32xf32>
    %232 = vector.multi_reduction <maximumf>, %231, %cst_98 [1] : vector<32x32xf32> to vector<32xf32>
    %233 = vector.shape_cast %232 : vector<32xf32> to vector<32x1xf32>
    %234 = vector.broadcast %233 : vector<32x1xf32> to vector<32x32xf32>
    %235 = arith.subf %231, %234 : vector<32x32xf32>
    %236 = math.exp %235 : vector<32x32xf32>
    %cst_99 = arith.constant dense<0.000000e+00> : vector<32xf32>
    %237 = vector.multi_reduction <add>, %236, %cst_99 [1] : vector<32x32xf32> to vector<32xf32>
    %238 = vector.shape_cast %237 : vector<32xf32> to vector<32x1xf32>
    %239 = vector.broadcast %238 : vector<32x1xf32> to vector<32x32xf32>
    %240 = arith.divf %236, %239 : vector<32x32xf32>
    %cst_100 = arith.constant dense<0.000000e+00> : vector<32x32xf32>
    %241 = tpu.matmul %240, %107, %cst_100 {dimension_numbers = #tpu.dot_dimension_numbers<[1], [0], [0], [1], [0, 0, 1, 1], [], []>} : vector<32x32xf32>, vector<32x32xf32>, vector<32x32xf32> -> vector<32x32xf32>
    %242 = vector.broadcast %225 : vector<1x32xf32> to vector<32x32xf32>
    %243 = arith.mulf %241, %242 : vector<32x32xf32>
    %244 = arith.addf %217, %243 : vector<32x32xf32>
    %245 = tpu.iota {dimensions = array<i32: 1>} : vector<1x32xi32>
    %c24_i32_101 = arith.constant 24 : i32
    %246 = vector.broadcast %c24_i32_101 : i32 to vector<1x32xi32>
    %247 = arith.cmpi sge, %245, %246 : vector<1x32xi32>
    %c32_i32_102 = arith.constant 32 : i32
    %248 = vector.broadcast %c32_i32_102 : i32 to vector<1x32xi32>
    %249 = arith.cmpi slt, %245, %248 : vector<1x32xi32>
    %250 = arith.andi %247, %249 : vector<1x32xi1>
    %251 = arith.extui %250 : vector<1x32xi1> to vector<1x32xi32>
    %252 = arith.sitofp %251 : vector<1x32xi32> to vector<1x32xf32>
    %253 = vector.broadcast %252 : vector<1x32xf32> to vector<32x32xf32>
    %254 = arith.mulf %101, %253 : vector<32x32xf32>
    %cst_103 = arith.constant dense<0.000000e+00> : vector<32x32xf32>
    %255 = tpu.matmul %254, %108, %cst_103 {dimension_numbers = #tpu.dot_dimension_numbers<[1], [0], [0], [1], [0, 0, 1, 1], [], []>} : vector<32x32xf32>, vector<32x32xf32>, vector<32x32xf32> -> vector<32x32xf32>
    %cst_104 = arith.constant 0.176776692 : f32
    %256 = vector.broadcast %cst_104 : f32 to vector<32x32xf32>
    %257 = arith.mulf %255, %256 : vector<32x32xf32>
    %258 = arith.addf %257, %162 : vector<32x32xf32>
    %cst_105 = arith.constant dense<0xFF800000> : vector<32xf32>
    %259 = vector.multi_reduction <maximumf>, %258, %cst_105 [1] : vector<32x32xf32> to vector<32xf32>
    %260 = vector.shape_cast %259 : vector<32xf32> to vector<32x1xf32>
    %261 = vector.broadcast %260 : vector<32x1xf32> to vector<32x32xf32>
    %262 = arith.subf %258, %261 : vector<32x32xf32>
    %263 = math.exp %262 : vector<32x32xf32>
    %cst_106 = arith.constant dense<0.000000e+00> : vector<32xf32>
    %264 = vector.multi_reduction <add>, %263, %cst_106 [1] : vector<32x32xf32> to vector<32xf32>
    %265 = vector.shape_cast %264 : vector<32xf32> to vector<32x1xf32>
    %266 = vector.broadcast %265 : vector<32x1xf32> to vector<32x32xf32>
    %267 = arith.divf %263, %266 : vector<32x32xf32>
    %cst_107 = arith.constant dense<0.000000e+00> : vector<32x32xf32>
    %268 = tpu.matmul %267, %107, %cst_107 {dimension_numbers = #tpu.dot_dimension_numbers<[1], [0], [0], [1], [0, 0, 1, 1], [], []>} : vector<32x32xf32>, vector<32x32xf32>, vector<32x32xf32> -> vector<32x32xf32>
    %269 = vector.broadcast %252 : vector<1x32xf32> to vector<32x32xf32>
    %270 = arith.mulf %268, %269 : vector<32x32xf32>
    %271 = arith.addf %244, %270 : vector<32x32xf32>
    %272 = arith.addf %101, %271 : vector<32x32xf32>
    %cst_108 = arith.constant dense<0.000000e+00> : vector<32xf32>
    %273 = vector.multi_reduction <add>, %272, %cst_108 [1] : vector<32x32xf32> to vector<32xf32>
    %274 = vector.shape_cast %273 : vector<32xf32> to vector<32x1xf32>
    %cst_109 = arith.constant 3.200000e+01 : f32
    %275 = vector.broadcast %cst_109 : f32 to vector<32x1xf32>
    %276 = arith.divf %274, %275 : vector<32x1xf32>
    %277 = vector.broadcast %276 : vector<32x1xf32> to vector<32x32xf32>
    %278 = arith.subf %272, %277 : vector<32x32xf32>
    %279 = arith.mulf %278, %278 : vector<32x32xf32>
    %cst_110 = arith.constant dense<0.000000e+00> : vector<32xf32>
    %280 = vector.multi_reduction <add>, %279, %cst_110 [1] : vector<32x32xf32> to vector<32xf32>
    %281 = vector.shape_cast %280 : vector<32xf32> to vector<32x1xf32>
    %cst_111 = arith.constant 3.200000e+01 : f32
    %282 = vector.broadcast %cst_111 : f32 to vector<32x1xf32>
    %283 = arith.divf %281, %282 : vector<32x1xf32>
    %284 = vector.broadcast %276 : vector<32x1xf32> to vector<32x32xf32>
    %285 = arith.subf %272, %284 : vector<32x32xf32>
    %cst_112 = arith.constant 9.99999974E-6 : f32
    %286 = vector.broadcast %cst_112 : f32 to vector<32x1xf32>
    %287 = arith.addf %283, %286 : vector<32x1xf32>
    %288 = math.rsqrt %287 : vector<32x1xf32>
    %289 = vector.broadcast %288 : vector<32x1xf32> to vector<32x32xf32>
    %290 = arith.mulf %285, %289 : vector<32x32xf32>
    %291 = vector.broadcast %95 : vector<1x32xf32> to vector<32x32xf32>
    %292 = arith.mulf %290, %291 : vector<32x32xf32>
    %293 = vector.broadcast %96 : vector<1x32xf32> to vector<32x32xf32>
    %294 = arith.addf %292, %293 : vector<32x32xf32>
    %cst_113 = arith.constant dense<0.000000e+00> : vector<32x32xf32>
    %295 = tpu.matmul %294, %93, %cst_113 {dimension_numbers = #tpu.dot_dimension_numbers<[1], [0], [0], [1], [0, 0, 1, 1], [], []>} : vector<32x32xf32>, vector<32x32xf32>, vector<32x32xf32> -> vector<32x32xf32>
    %296 = vector.broadcast %94 : vector<1x32xf32> to vector<32x32xf32>
    %297 = arith.addf %295, %296 : vector<32x32xf32>
    %cst_114 = arith.constant 0.000000e+00 : f32
    %298 = vector.broadcast %cst_114 : f32 to vector<32x32xf32>
    %299 = arith.maximumf %297, %298 : vector<32x32xf32>
    %300 = arith.addf %294, %299 : vector<32x32xf32>
    %cst_115 = arith.constant dense<0.000000e+00> : vector<32xf32>
    %301 = vector.multi_reduction <add>, %300, %cst_115 [1] : vector<32x32xf32> to vector<32xf32>
    %302 = vector.shape_cast %301 : vector<32xf32> to vector<32x1xf32>
    %cst_116 = arith.constant 3.200000e+01 : f32
    %303 = vector.broadcast %cst_116 : f32 to vector<32x1xf32>
    %304 = arith.divf %302, %303 : vector<32x1xf32>
    %305 = vector.broadcast %304 : vector<32x1xf32> to vector<32x32xf32>
    %306 = arith.subf %300, %305 : vector<32x32xf32>
    %307 = arith.mulf %306, %306 : vector<32x32xf32>
    %cst_117 = arith.constant dense<0.000000e+00> : vector<32xf32>
    %308 = vector.multi_reduction <add>, %307, %cst_117 [1] : vector<32x32xf32> to vector<32xf32>
    %309 = vector.shape_cast %308 : vector<32xf32> to vector<32x1xf32>
    %cst_118 = arith.constant 3.200000e+01 : f32
    %310 = vector.broadcast %cst_118 : f32 to vector<32x1xf32>
    %311 = arith.divf %309, %310 : vector<32x1xf32>
    %312 = vector.broadcast %304 : vector<32x1xf32> to vector<32x32xf32>
    %313 = arith.subf %300, %312 : vector<32x32xf32>
    %cst_119 = arith.constant 9.99999974E-6 : f32
    %314 = vector.broadcast %cst_119 : f32 to vector<32x1xf32>
    %315 = arith.addf %311, %314 : vector<32x1xf32>
    %316 = math.rsqrt %315 : vector<32x1xf32>
    %317 = vector.broadcast %316 : vector<32x1xf32> to vector<32x32xf32>
    %318 = arith.mulf %313, %317 : vector<32x32xf32>
    %319 = vector.broadcast %97 : vector<1x32xf32> to vector<32x32xf32>
    %320 = arith.mulf %318, %319 : vector<32x32xf32>
    %321 = vector.broadcast %98 : vector<1x32xf32> to vector<32x32xf32>
    %322 = arith.addf %320, %321 : vector<32x32xf32>
    %323 = tpu.iota {dimensions = array<i32: 0>} : vector<16x4xi32>
    %324 = tpu.iota {dimensions = array<i32: 1>} : vector<16x4xi32>
    %false_120 = arith.constant false
    %325 = vector.broadcast %false_120 : i1 to vector<16x4xi1>
    %c0_i32_121 = arith.constant 0 : i32
    %326 = vector.broadcast %c0_i32_121 : i32 to vector<16x4xi32>
    %327 = arith.addi %326, %324 : vector<16x4xi32>
    %328 = arith.cmpi eq, %323, %327 : vector<16x4xi32>
    %329 = arith.ori %325, %328 : vector<16x4xi1>
    %c4_i32 = arith.constant 4 : i32
    %330 = vector.broadcast %c4_i32 : i32 to vector<16x4xi32>
    %331 = arith.addi %330, %324 : vector<16x4xi32>
    %332 = arith.cmpi eq, %323, %331 : vector<16x4xi32>
    %333 = arith.ori %329, %332 : vector<16x4xi1>
    %c8_i32_122 = arith.constant 8 : i32
    %334 = vector.broadcast %c8_i32_122 : i32 to vector<16x4xi32>
    %335 = arith.addi %334, %324 : vector<16x4xi32>
    %336 = arith.cmpi eq, %323, %335 : vector<16x4xi32>
    %337 = arith.ori %333, %336 : vector<16x4xi1>
    %c12_i32 = arith.constant 12 : i32
    %338 = vector.broadcast %c12_i32 : i32 to vector<16x4xi32>
    %339 = arith.addi %338, %324 : vector<16x4xi32>
    %340 = arith.cmpi eq, %323, %339 : vector<16x4xi32>
    %341 = arith.ori %337, %340 : vector<16x4xi1>
    %342 = arith.extui %341 : vector<16x4xi1> to vector<16x4xi32>
    %343 = arith.sitofp %342 : vector<16x4xi32> to vector<16x4xf32>
    %c0_123 = arith.constant 0 : index
    %c0_124 = arith.constant 0 : index
    %344 = vector.load %arg25[%c0_123, %c0_124] : memref<4x32xf32, #tpu.memory_space<vmem>>, vector<4x32xf32>
    %cst_125 = arith.constant dense<0.000000e+00> : vector<16x32xf32>
    %345 = tpu.matmul %343, %344, %cst_125 {dimension_numbers = #tpu.dot_dimension_numbers<[1], [0], [0], [1], [0, 0, 1, 1], [], []>} : vector<16x4xf32>, vector<4x32xf32>, vector<16x32xf32> -> vector<16x32xf32>
    %c0_126 = arith.constant 0 : index
    %c0_127 = arith.constant 0 : index
    %346 = vector.load %arg26[%c0_126, %c0_127] : memref<32x32xf32, #tpu.memory_space<vmem>>, vector<32x32xf32>
    %c0_128 = arith.constant 0 : index
    %c0_129 = arith.constant 0 : index
    %347 = vector.load %arg27[%c0_128, %c0_129] : memref<1x32xf32, #tpu.memory_space<vmem>>, vector<1x32xf32>
    %c0_130 = arith.constant 0 : index
    %c0_131 = arith.constant 0 : index
    %348 = vector.load %arg28[%c0_130, %c0_131] : memref<32x32xf32, #tpu.memory_space<vmem>>, vector<32x32xf32>
    %c0_132 = arith.constant 0 : index
    %c0_133 = arith.constant 0 : index
    %349 = vector.load %arg29[%c0_132, %c0_133] : memref<1x32xf32, #tpu.memory_space<vmem>>, vector<1x32xf32>
    %c0_134 = arith.constant 0 : index
    %c0_135 = arith.constant 0 : index
    %350 = vector.load %arg30[%c0_134, %c0_135] : memref<32x32xf32, #tpu.memory_space<vmem>>, vector<32x32xf32>
    %c0_136 = arith.constant 0 : index
    %c0_137 = arith.constant 0 : index
    %351 = vector.load %arg31[%c0_136, %c0_137] : memref<1x32xf32, #tpu.memory_space<vmem>>, vector<1x32xf32>
    %c0_138 = arith.constant 0 : index
    %c0_139 = arith.constant 0 : index
    %352 = vector.load %arg32[%c0_138, %c0_139] : memref<32x32xf32, #tpu.memory_space<vmem>>, vector<32x32xf32>
    %c0_140 = arith.constant 0 : index
    %c0_141 = arith.constant 0 : index
    %353 = vector.load %arg33[%c0_140, %c0_141] : memref<1x32xf32, #tpu.memory_space<vmem>>, vector<1x32xf32>
    %c0_142 = arith.constant 0 : index
    %c0_143 = arith.constant 0 : index
    %354 = vector.load %arg34[%c0_142, %c0_143] : memref<1x32xf32, #tpu.memory_space<vmem>>, vector<1x32xf32>
    %c0_144 = arith.constant 0 : index
    %c0_145 = arith.constant 0 : index
    %355 = vector.load %arg35[%c0_144, %c0_145] : memref<1x32xf32, #tpu.memory_space<vmem>>, vector<1x32xf32>
    %c0_146 = arith.constant 0 : index
    %c0_147 = arith.constant 0 : index
    %356 = vector.load %arg36[%c0_146, %c0_147] : memref<1x32xf32, #tpu.memory_space<vmem>>, vector<1x32xf32>
    %c0_148 = arith.constant 0 : index
    %c0_149 = arith.constant 0 : index
    %357 = vector.load %arg37[%c0_148, %c0_149] : memref<1x32xf32, #tpu.memory_space<vmem>>, vector<1x32xf32>
    %cst_150 = arith.constant dense<0.000000e+00> : vector<16x32xf32>
    %358 = tpu.matmul %345, %346, %cst_150 {dimension_numbers = #tpu.dot_dimension_numbers<[1], [0], [0], [1], [0, 0, 1, 1], [], []>} : vector<16x32xf32>, vector<32x32xf32>, vector<16x32xf32> -> vector<16x32xf32>
    %359 = vector.broadcast %347 : vector<1x32xf32> to vector<16x32xf32>
    %360 = arith.addf %358, %359 : vector<16x32xf32>
    %cst_151 = arith.constant dense<0.000000e+00> : vector<32x32xf32>
    %361 = tpu.matmul %322, %348, %cst_151 {dimension_numbers = #tpu.dot_dimension_numbers<[1], [0], [0], [1], [0, 0, 1, 1], [], []>} : vector<32x32xf32>, vector<32x32xf32>, vector<32x32xf32> -> vector<32x32xf32>
    %362 = vector.broadcast %349 : vector<1x32xf32> to vector<32x32xf32>
    %363 = arith.addf %361, %362 : vector<32x32xf32>
    %cst_152 = arith.constant dense<0.000000e+00> : vector<32x32xf32>
    %364 = tpu.matmul %322, %350, %cst_152 {dimension_numbers = #tpu.dot_dimension_numbers<[1], [0], [0], [1], [0, 0, 1, 1], [], []>} : vector<32x32xf32>, vector<32x32xf32>, vector<32x32xf32> -> vector<32x32xf32>
    %365 = vector.broadcast %351 : vector<1x32xf32> to vector<32x32xf32>
    %366 = arith.addf %364, %365 : vector<32x32xf32>
    %367 = tpu.transpose %363, [1, 0] : vector<32x32xf32> -> vector<32x32xf32>
    %368 = tpu.iota {dimensions = array<i32: 0>} : vector<16x32xi32>
    %369 = tpu.iota {dimensions = array<i32: 1>} : vector<16x32xi32>
    %false_153 = arith.constant false
    %370 = vector.broadcast %false_153 : i1 to vector<16x32xi1>
    %c0_i32_154 = arith.constant 0 : i32
    %371 = vector.broadcast %c0_i32_154 : i32 to vector<16x32xi32>
    %372 = arith.cmpi sge, %368, %371 : vector<16x32xi32>
    %c4_i32_155 = arith.constant 4 : i32
    %373 = vector.broadcast %c4_i32_155 : i32 to vector<16x32xi32>
    %374 = arith.cmpi slt, %368, %373 : vector<16x32xi32>
    %375 = arith.andi %372, %374 : vector<16x32xi1>
    %c0_i32_156 = arith.constant 0 : i32
    %376 = vector.broadcast %c0_i32_156 : i32 to vector<16x32xi32>
    %377 = arith.cmpi sge, %369, %376 : vector<16x32xi32>
    %c8_i32_157 = arith.constant 8 : i32
    %378 = vector.broadcast %c8_i32_157 : i32 to vector<16x32xi32>
    %379 = arith.cmpi slt, %369, %378 : vector<16x32xi32>
    %380 = arith.andi %377, %379 : vector<16x32xi1>
    %381 = arith.andi %375, %380 : vector<16x32xi1>
    %382 = arith.ori %370, %381 : vector<16x32xi1>
    %c4_i32_158 = arith.constant 4 : i32
    %383 = vector.broadcast %c4_i32_158 : i32 to vector<16x32xi32>
    %384 = arith.cmpi sge, %368, %383 : vector<16x32xi32>
    %c8_i32_159 = arith.constant 8 : i32
    %385 = vector.broadcast %c8_i32_159 : i32 to vector<16x32xi32>
    %386 = arith.cmpi slt, %368, %385 : vector<16x32xi32>
    %387 = arith.andi %384, %386 : vector<16x32xi1>
    %c8_i32_160 = arith.constant 8 : i32
    %388 = vector.broadcast %c8_i32_160 : i32 to vector<16x32xi32>
    %389 = arith.cmpi sge, %369, %388 : vector<16x32xi32>
    %c16_i32_161 = arith.constant 16 : i32
    %390 = vector.broadcast %c16_i32_161 : i32 to vector<16x32xi32>
    %391 = arith.cmpi slt, %369, %390 : vector<16x32xi32>
    %392 = arith.andi %389, %391 : vector<16x32xi1>
    %393 = arith.andi %387, %392 : vector<16x32xi1>
    %394 = arith.ori %382, %393 : vector<16x32xi1>
    %c8_i32_162 = arith.constant 8 : i32
    %395 = vector.broadcast %c8_i32_162 : i32 to vector<16x32xi32>
    %396 = arith.cmpi sge, %368, %395 : vector<16x32xi32>
    %c12_i32_163 = arith.constant 12 : i32
    %397 = vector.broadcast %c12_i32_163 : i32 to vector<16x32xi32>
    %398 = arith.cmpi slt, %368, %397 : vector<16x32xi32>
    %399 = arith.andi %396, %398 : vector<16x32xi1>
    %c16_i32_164 = arith.constant 16 : i32
    %400 = vector.broadcast %c16_i32_164 : i32 to vector<16x32xi32>
    %401 = arith.cmpi sge, %369, %400 : vector<16x32xi32>
    %c24_i32_165 = arith.constant 24 : i32
    %402 = vector.broadcast %c24_i32_165 : i32 to vector<16x32xi32>
    %403 = arith.cmpi slt, %369, %402 : vector<16x32xi32>
    %404 = arith.andi %401, %403 : vector<16x32xi1>
    %405 = arith.andi %399, %404 : vector<16x32xi1>
    %406 = arith.ori %394, %405 : vector<16x32xi1>
    %c12_i32_166 = arith.constant 12 : i32
    %407 = vector.broadcast %c12_i32_166 : i32 to vector<16x32xi32>
    %408 = arith.cmpi sge, %368, %407 : vector<16x32xi32>
    %c16_i32_167 = arith.constant 16 : i32
    %409 = vector.broadcast %c16_i32_167 : i32 to vector<16x32xi32>
    %410 = arith.cmpi slt, %368, %409 : vector<16x32xi32>
    %411 = arith.andi %408, %410 : vector<16x32xi1>
    %c24_i32_168 = arith.constant 24 : i32
    %412 = vector.broadcast %c24_i32_168 : i32 to vector<16x32xi32>
    %413 = arith.cmpi sge, %369, %412 : vector<16x32xi32>
    %c32_i32_169 = arith.constant 32 : i32
    %414 = vector.broadcast %c32_i32_169 : i32 to vector<16x32xi32>
    %415 = arith.cmpi slt, %369, %414 : vector<16x32xi32>
    %416 = arith.andi %413, %415 : vector<16x32xi1>
    %417 = arith.andi %411, %416 : vector<16x32xi1>
    %418 = arith.ori %406, %417 : vector<16x32xi1>
    %cst_170 = arith.constant 0.000000e+00 : f32
    %cst_171 = arith.constant -1.000000e+30 : f32
    %419 = vector.broadcast %cst_170 : f32 to vector<16x32xf32>
    %420 = vector.broadcast %cst_171 : f32 to vector<16x32xf32>
    %421 = arith.select %418, %419, %420 : vector<16x32xi1>, vector<16x32xf32>
    %cst_172 = arith.constant 0.000000e+00 : f32
    %422 = vector.broadcast %cst_172 : f32 to vector<16x32xf32>
    %423 = tpu.iota {dimensions = array<i32: 1>} : vector<1x32xi32>
    %c0_i32_173 = arith.constant 0 : i32
    %424 = vector.broadcast %c0_i32_173 : i32 to vector<1x32xi32>
    %425 = arith.cmpi sge, %423, %424 : vector<1x32xi32>
    %c8_i32_174 = arith.constant 8 : i32
    %426 = vector.broadcast %c8_i32_174 : i32 to vector<1x32xi32>
    %427 = arith.cmpi slt, %423, %426 : vector<1x32xi32>
    %428 = arith.andi %425, %427 : vector<1x32xi1>
    %429 = arith.extui %428 : vector<1x32xi1> to vector<1x32xi32>
    %430 = arith.sitofp %429 : vector<1x32xi32> to vector<1x32xf32>
    %431 = vector.broadcast %430 : vector<1x32xf32> to vector<16x32xf32>
    %432 = arith.mulf %360, %431 : vector<16x32xf32>
    %cst_175 = arith.constant dense<0.000000e+00> : vector<16x32xf32>
    %433 = tpu.matmul %432, %367, %cst_175 {dimension_numbers = #tpu.dot_dimension_numbers<[1], [0], [0], [1], [0, 0, 1, 1], [], []>} : vector<16x32xf32>, vector<32x32xf32>, vector<16x32xf32> -> vector<16x32xf32>
    %cst_176 = arith.constant 0.176776692 : f32
    %434 = vector.broadcast %cst_176 : f32 to vector<16x32xf32>
    %435 = arith.mulf %433, %434 : vector<16x32xf32>
    %436 = arith.addf %435, %421 : vector<16x32xf32>
    %cst_177 = arith.constant dense<0xFF800000> : vector<16xf32>
    %437 = vector.multi_reduction <maximumf>, %436, %cst_177 [1] : vector<16x32xf32> to vector<16xf32>
    %438 = vector.shape_cast %437 : vector<16xf32> to vector<16x1xf32>
    %439 = vector.broadcast %438 : vector<16x1xf32> to vector<16x32xf32>
    %440 = arith.subf %436, %439 : vector<16x32xf32>
    %441 = math.exp %440 : vector<16x32xf32>
    %cst_178 = arith.constant dense<0.000000e+00> : vector<16xf32>
    %442 = vector.multi_reduction <add>, %441, %cst_178 [1] : vector<16x32xf32> to vector<16xf32>
    %443 = vector.shape_cast %442 : vector<16xf32> to vector<16x1xf32>
    %444 = vector.broadcast %443 : vector<16x1xf32> to vector<16x32xf32>
    %445 = arith.divf %441, %444 : vector<16x32xf32>
    %cst_179 = arith.constant dense<0.000000e+00> : vector<16x32xf32>
    %446 = tpu.matmul %445, %366, %cst_179 {dimension_numbers = #tpu.dot_dimension_numbers<[1], [0], [0], [1], [0, 0, 1, 1], [], []>} : vector<16x32xf32>, vector<32x32xf32>, vector<16x32xf32> -> vector<16x32xf32>
    %447 = vector.broadcast %430 : vector<1x32xf32> to vector<16x32xf32>
    %448 = arith.mulf %446, %447 : vector<16x32xf32>
    %449 = arith.addf %422, %448 : vector<16x32xf32>
    %450 = tpu.iota {dimensions = array<i32: 1>} : vector<1x32xi32>
    %c8_i32_180 = arith.constant 8 : i32
    %451 = vector.broadcast %c8_i32_180 : i32 to vector<1x32xi32>
    %452 = arith.cmpi sge, %450, %451 : vector<1x32xi32>
    %c16_i32_181 = arith.constant 16 : i32
    %453 = vector.broadcast %c16_i32_181 : i32 to vector<1x32xi32>
    %454 = arith.cmpi slt, %450, %453 : vector<1x32xi32>
    %455 = arith.andi %452, %454 : vector<1x32xi1>
    %456 = arith.extui %455 : vector<1x32xi1> to vector<1x32xi32>
    %457 = arith.sitofp %456 : vector<1x32xi32> to vector<1x32xf32>
    %458 = vector.broadcast %457 : vector<1x32xf32> to vector<16x32xf32>
    %459 = arith.mulf %360, %458 : vector<16x32xf32>
    %cst_182 = arith.constant dense<0.000000e+00> : vector<16x32xf32>
    %460 = tpu.matmul %459, %367, %cst_182 {dimension_numbers = #tpu.dot_dimension_numbers<[1], [0], [0], [1], [0, 0, 1, 1], [], []>} : vector<16x32xf32>, vector<32x32xf32>, vector<16x32xf32> -> vector<16x32xf32>
    %cst_183 = arith.constant 0.176776692 : f32
    %461 = vector.broadcast %cst_183 : f32 to vector<16x32xf32>
    %462 = arith.mulf %460, %461 : vector<16x32xf32>
    %463 = arith.addf %462, %421 : vector<16x32xf32>
    %cst_184 = arith.constant dense<0xFF800000> : vector<16xf32>
    %464 = vector.multi_reduction <maximumf>, %463, %cst_184 [1] : vector<16x32xf32> to vector<16xf32>
    %465 = vector.shape_cast %464 : vector<16xf32> to vector<16x1xf32>
    %466 = vector.broadcast %465 : vector<16x1xf32> to vector<16x32xf32>
    %467 = arith.subf %463, %466 : vector<16x32xf32>
    %468 = math.exp %467 : vector<16x32xf32>
    %cst_185 = arith.constant dense<0.000000e+00> : vector<16xf32>
    %469 = vector.multi_reduction <add>, %468, %cst_185 [1] : vector<16x32xf32> to vector<16xf32>
    %470 = vector.shape_cast %469 : vector<16xf32> to vector<16x1xf32>
    %471 = vector.broadcast %470 : vector<16x1xf32> to vector<16x32xf32>
    %472 = arith.divf %468, %471 : vector<16x32xf32>
    %cst_186 = arith.constant dense<0.000000e+00> : vector<16x32xf32>
    %473 = tpu.matmul %472, %366, %cst_186 {dimension_numbers = #tpu.dot_dimension_numbers<[1], [0], [0], [1], [0, 0, 1, 1], [], []>} : vector<16x32xf32>, vector<32x32xf32>, vector<16x32xf32> -> vector<16x32xf32>
    %474 = vector.broadcast %457 : vector<1x32xf32> to vector<16x32xf32>
    %475 = arith.mulf %473, %474 : vector<16x32xf32>
    %476 = arith.addf %449, %475 : vector<16x32xf32>
    %477 = tpu.iota {dimensions = array<i32: 1>} : vector<1x32xi32>
    %c16_i32_187 = arith.constant 16 : i32
    %478 = vector.broadcast %c16_i32_187 : i32 to vector<1x32xi32>
    %479 = arith.cmpi sge, %477, %478 : vector<1x32xi32>
    %c24_i32_188 = arith.constant 24 : i32
    %480 = vector.broadcast %c24_i32_188 : i32 to vector<1x32xi32>
    %481 = arith.cmpi slt, %477, %480 : vector<1x32xi32>
    %482 = arith.andi %479, %481 : vector<1x32xi1>
    %483 = arith.extui %482 : vector<1x32xi1> to vector<1x32xi32>
    %484 = arith.sitofp %483 : vector<1x32xi32> to vector<1x32xf32>
    %485 = vector.broadcast %484 : vector<1x32xf32> to vector<16x32xf32>
    %486 = arith.mulf %360, %485 : vector<16x32xf32>
    %cst_189 = arith.constant dense<0.000000e+00> : vector<16x32xf32>
    %487 = tpu.matmul %486, %367, %cst_189 {dimension_numbers = #tpu.dot_dimension_numbers<[1], [0], [0], [1], [0, 0, 1, 1], [], []>} : vector<16x32xf32>, vector<32x32xf32>, vector<16x32xf32> -> vector<16x32xf32>
    %cst_190 = arith.constant 0.176776692 : f32
    %488 = vector.broadcast %cst_190 : f32 to vector<16x32xf32>
    %489 = arith.mulf %487, %488 : vector<16x32xf32>
    %490 = arith.addf %489, %421 : vector<16x32xf32>
    %cst_191 = arith.constant dense<0xFF800000> : vector<16xf32>
    %491 = vector.multi_reduction <maximumf>, %490, %cst_191 [1] : vector<16x32xf32> to vector<16xf32>
    %492 = vector.shape_cast %491 : vector<16xf32> to vector<16x1xf32>
    %493 = vector.broadcast %492 : vector<16x1xf32> to vector<16x32xf32>
    %494 = arith.subf %490, %493 : vector<16x32xf32>
    %495 = math.exp %494 : vector<16x32xf32>
    %cst_192 = arith.constant dense<0.000000e+00> : vector<16xf32>
    %496 = vector.multi_reduction <add>, %495, %cst_192 [1] : vector<16x32xf32> to vector<16xf32>
    %497 = vector.shape_cast %496 : vector<16xf32> to vector<16x1xf32>
    %498 = vector.broadcast %497 : vector<16x1xf32> to vector<16x32xf32>
    %499 = arith.divf %495, %498 : vector<16x32xf32>
    %cst_193 = arith.constant dense<0.000000e+00> : vector<16x32xf32>
    %500 = tpu.matmul %499, %366, %cst_193 {dimension_numbers = #tpu.dot_dimension_numbers<[1], [0], [0], [1], [0, 0, 1, 1], [], []>} : vector<16x32xf32>, vector<32x32xf32>, vector<16x32xf32> -> vector<16x32xf32>
    %501 = vector.broadcast %484 : vector<1x32xf32> to vector<16x32xf32>
    %502 = arith.mulf %500, %501 : vector<16x32xf32>
    %503 = arith.addf %476, %502 : vector<16x32xf32>
    %504 = tpu.iota {dimensions = array<i32: 1>} : vector<1x32xi32>
    %c24_i32_194 = arith.constant 24 : i32
    %505 = vector.broadcast %c24_i32_194 : i32 to vector<1x32xi32>
    %506 = arith.cmpi sge, %504, %505 : vector<1x32xi32>
    %c32_i32_195 = arith.constant 32 : i32
    %507 = vector.broadcast %c32_i32_195 : i32 to vector<1x32xi32>
    %508 = arith.cmpi slt, %504, %507 : vector<1x32xi32>
    %509 = arith.andi %506, %508 : vector<1x32xi1>
    %510 = arith.extui %509 : vector<1x32xi1> to vector<1x32xi32>
    %511 = arith.sitofp %510 : vector<1x32xi32> to vector<1x32xf32>
    %512 = vector.broadcast %511 : vector<1x32xf32> to vector<16x32xf32>
    %513 = arith.mulf %360, %512 : vector<16x32xf32>
    %cst_196 = arith.constant dense<0.000000e+00> : vector<16x32xf32>
    %514 = tpu.matmul %513, %367, %cst_196 {dimension_numbers = #tpu.dot_dimension_numbers<[1], [0], [0], [1], [0, 0, 1, 1], [], []>} : vector<16x32xf32>, vector<32x32xf32>, vector<16x32xf32> -> vector<16x32xf32>
    %cst_197 = arith.constant 0.176776692 : f32
    %515 = vector.broadcast %cst_197 : f32 to vector<16x32xf32>
    %516 = arith.mulf %514, %515 : vector<16x32xf32>
    %517 = arith.addf %516, %421 : vector<16x32xf32>
    %cst_198 = arith.constant dense<0xFF800000> : vector<16xf32>
    %518 = vector.multi_reduction <maximumf>, %517, %cst_198 [1] : vector<16x32xf32> to vector<16xf32>
    %519 = vector.shape_cast %518 : vector<16xf32> to vector<16x1xf32>
    %520 = vector.broadcast %519 : vector<16x1xf32> to vector<16x32xf32>
    %521 = arith.subf %517, %520 : vector<16x32xf32>
    %522 = math.exp %521 : vector<16x32xf32>
    %cst_199 = arith.constant dense<0.000000e+00> : vector<16xf32>
    %523 = vector.multi_reduction <add>, %522, %cst_199 [1] : vector<16x32xf32> to vector<16xf32>
    %524 = vector.shape_cast %523 : vector<16xf32> to vector<16x1xf32>
    %525 = vector.broadcast %524 : vector<16x1xf32> to vector<16x32xf32>
    %526 = arith.divf %522, %525 : vector<16x32xf32>
    %cst_200 = arith.constant dense<0.000000e+00> : vector<16x32xf32>
    %527 = tpu.matmul %526, %366, %cst_200 {dimension_numbers = #tpu.dot_dimension_numbers<[1], [0], [0], [1], [0, 0, 1, 1], [], []>} : vector<16x32xf32>, vector<32x32xf32>, vector<16x32xf32> -> vector<16x32xf32>
    %528 = vector.broadcast %511 : vector<1x32xf32> to vector<16x32xf32>
    %529 = arith.mulf %527, %528 : vector<16x32xf32>
    %530 = arith.addf %503, %529 : vector<16x32xf32>
    %531 = arith.addf %360, %530 : vector<16x32xf32>
    %cst_201 = arith.constant dense<0.000000e+00> : vector<16xf32>
    %532 = vector.multi_reduction <add>, %531, %cst_201 [1] : vector<16x32xf32> to vector<16xf32>
    %533 = vector.shape_cast %532 : vector<16xf32> to vector<16x1xf32>
    %cst_202 = arith.constant 3.200000e+01 : f32
    %534 = vector.broadcast %cst_202 : f32 to vector<16x1xf32>
    %535 = arith.divf %533, %534 : vector<16x1xf32>
    %536 = vector.broadcast %535 : vector<16x1xf32> to vector<16x32xf32>
    %537 = arith.subf %531, %536 : vector<16x32xf32>
    %538 = arith.mulf %537, %537 : vector<16x32xf32>
    %cst_203 = arith.constant dense<0.000000e+00> : vector<16xf32>
    %539 = vector.multi_reduction <add>, %538, %cst_203 [1] : vector<16x32xf32> to vector<16xf32>
    %540 = vector.shape_cast %539 : vector<16xf32> to vector<16x1xf32>
    %cst_204 = arith.constant 3.200000e+01 : f32
    %541 = vector.broadcast %cst_204 : f32 to vector<16x1xf32>
    %542 = arith.divf %540, %541 : vector<16x1xf32>
    %543 = vector.broadcast %535 : vector<16x1xf32> to vector<16x32xf32>
    %544 = arith.subf %531, %543 : vector<16x32xf32>
    %cst_205 = arith.constant 9.99999974E-6 : f32
    %545 = vector.broadcast %cst_205 : f32 to vector<16x1xf32>
    %546 = arith.addf %542, %545 : vector<16x1xf32>
    %547 = math.rsqrt %546 : vector<16x1xf32>
    %548 = vector.broadcast %547 : vector<16x1xf32> to vector<16x32xf32>
    %549 = arith.mulf %544, %548 : vector<16x32xf32>
    %550 = vector.broadcast %354 : vector<1x32xf32> to vector<16x32xf32>
    %551 = arith.mulf %549, %550 : vector<16x32xf32>
    %552 = vector.broadcast %355 : vector<1x32xf32> to vector<16x32xf32>
    %553 = arith.addf %551, %552 : vector<16x32xf32>
    %cst_206 = arith.constant dense<0.000000e+00> : vector<16x32xf32>
    %554 = tpu.matmul %553, %352, %cst_206 {dimension_numbers = #tpu.dot_dimension_numbers<[1], [0], [0], [1], [0, 0, 1, 1], [], []>} : vector<16x32xf32>, vector<32x32xf32>, vector<16x32xf32> -> vector<16x32xf32>
    %555 = vector.broadcast %353 : vector<1x32xf32> to vector<16x32xf32>
    %556 = arith.addf %554, %555 : vector<16x32xf32>
    %cst_207 = arith.constant 0.000000e+00 : f32
    %557 = vector.broadcast %cst_207 : f32 to vector<16x32xf32>
    %558 = arith.maximumf %556, %557 : vector<16x32xf32>
    %559 = arith.addf %553, %558 : vector<16x32xf32>
    %cst_208 = arith.constant dense<0.000000e+00> : vector<16xf32>
    %560 = vector.multi_reduction <add>, %559, %cst_208 [1] : vector<16x32xf32> to vector<16xf32>
    %561 = vector.shape_cast %560 : vector<16xf32> to vector<16x1xf32>
    %cst_209 = arith.constant 3.200000e+01 : f32
    %562 = vector.broadcast %cst_209 : f32 to vector<16x1xf32>
    %563 = arith.divf %561, %562 : vector<16x1xf32>
    %564 = vector.broadcast %563 : vector<16x1xf32> to vector<16x32xf32>
    %565 = arith.subf %559, %564 : vector<16x32xf32>
    %566 = arith.mulf %565, %565 : vector<16x32xf32>
    %cst_210 = arith.constant dense<0.000000e+00> : vector<16xf32>
    %567 = vector.multi_reduction <add>, %566, %cst_210 [1] : vector<16x32xf32> to vector<16xf32>
    %568 = vector.shape_cast %567 : vector<16xf32> to vector<16x1xf32>
    %cst_211 = arith.constant 3.200000e+01 : f32
    %569 = vector.broadcast %cst_211 : f32 to vector<16x1xf32>
    %570 = arith.divf %568, %569 : vector<16x1xf32>
    %571 = vector.broadcast %563 : vector<16x1xf32> to vector<16x32xf32>
    %572 = arith.subf %559, %571 : vector<16x32xf32>
    %cst_212 = arith.constant 9.99999974E-6 : f32
    %573 = vector.broadcast %cst_212 : f32 to vector<16x1xf32>
    %574 = arith.addf %570, %573 : vector<16x1xf32>
    %575 = math.rsqrt %574 : vector<16x1xf32>
    %576 = vector.broadcast %575 : vector<16x1xf32> to vector<16x32xf32>
    %577 = arith.mulf %572, %576 : vector<16x32xf32>
    %578 = vector.broadcast %356 : vector<1x32xf32> to vector<16x32xf32>
    %579 = arith.mulf %577, %578 : vector<16x32xf32>
    %580 = vector.broadcast %357 : vector<1x32xf32> to vector<16x32xf32>
    %581 = arith.addf %579, %580 : vector<16x32xf32>
    %582 = tpu.iota {dimensions = array<i32: 0>} : vector<4x16xi32>
    %583 = tpu.iota {dimensions = array<i32: 1>} : vector<4x16xi32>
    %false_213 = arith.constant false
    %584 = vector.broadcast %false_213 : i1 to vector<4x16xi1>
    %c0_i32_214 = arith.constant 0 : i32
    %585 = vector.broadcast %c0_i32_214 : i32 to vector<4x16xi32>
    %586 = arith.cmpi eq, %582, %585 : vector<4x16xi32>
    %c0_i32_215 = arith.constant 0 : i32
    %587 = vector.broadcast %c0_i32_215 : i32 to vector<4x16xi32>
    %588 = arith.cmpi sge, %583, %587 : vector<4x16xi32>
    %c4_i32_216 = arith.constant 4 : i32
    %589 = vector.broadcast %c4_i32_216 : i32 to vector<4x16xi32>
    %590 = arith.cmpi slt, %583, %589 : vector<4x16xi32>
    %591 = arith.andi %588, %590 : vector<4x16xi1>
    %592 = arith.andi %586, %591 : vector<4x16xi1>
    %593 = arith.ori %584, %592 : vector<4x16xi1>
    %c1_i32 = arith.constant 1 : i32
    %594 = vector.broadcast %c1_i32 : i32 to vector<4x16xi32>
    %595 = arith.cmpi eq, %582, %594 : vector<4x16xi32>
    %c4_i32_217 = arith.constant 4 : i32
    %596 = vector.broadcast %c4_i32_217 : i32 to vector<4x16xi32>
    %597 = arith.cmpi sge, %583, %596 : vector<4x16xi32>
    %c8_i32_218 = arith.constant 8 : i32
    %598 = vector.broadcast %c8_i32_218 : i32 to vector<4x16xi32>
    %599 = arith.cmpi slt, %583, %598 : vector<4x16xi32>
    %600 = arith.andi %597, %599 : vector<4x16xi1>
    %601 = arith.andi %595, %600 : vector<4x16xi1>
    %602 = arith.ori %593, %601 : vector<4x16xi1>
    %c2_i32 = arith.constant 2 : i32
    %603 = vector.broadcast %c2_i32 : i32 to vector<4x16xi32>
    %604 = arith.cmpi eq, %582, %603 : vector<4x16xi32>
    %c8_i32_219 = arith.constant 8 : i32
    %605 = vector.broadcast %c8_i32_219 : i32 to vector<4x16xi32>
    %606 = arith.cmpi sge, %583, %605 : vector<4x16xi32>
    %c12_i32_220 = arith.constant 12 : i32
    %607 = vector.broadcast %c12_i32_220 : i32 to vector<4x16xi32>
    %608 = arith.cmpi slt, %583, %607 : vector<4x16xi32>
    %609 = arith.andi %606, %608 : vector<4x16xi1>
    %610 = arith.andi %604, %609 : vector<4x16xi1>
    %611 = arith.ori %602, %610 : vector<4x16xi1>
    %c3_i32 = arith.constant 3 : i32
    %612 = vector.broadcast %c3_i32 : i32 to vector<4x16xi32>
    %613 = arith.cmpi eq, %582, %612 : vector<4x16xi32>
    %c12_i32_221 = arith.constant 12 : i32
    %614 = vector.broadcast %c12_i32_221 : i32 to vector<4x16xi32>
    %615 = arith.cmpi sge, %583, %614 : vector<4x16xi32>
    %c16_i32_222 = arith.constant 16 : i32
    %616 = vector.broadcast %c16_i32_222 : i32 to vector<4x16xi32>
    %617 = arith.cmpi slt, %583, %616 : vector<4x16xi32>
    %618 = arith.andi %615, %617 : vector<4x16xi1>
    %619 = arith.andi %613, %618 : vector<4x16xi1>
    %620 = arith.ori %611, %619 : vector<4x16xi1>
    %cst_223 = arith.constant 2.500000e-01 : f32
    %cst_224 = arith.constant 0.000000e+00 : f32
    %621 = vector.broadcast %cst_223 : f32 to vector<4x16xf32>
    %622 = vector.broadcast %cst_224 : f32 to vector<4x16xf32>
    %623 = arith.select %620, %621, %622 : vector<4x16xi1>, vector<4x16xf32>
    %cst_225 = arith.constant dense<0.000000e+00> : vector<4x32xf32>
    %624 = tpu.matmul %623, %581, %cst_225 {dimension_numbers = #tpu.dot_dimension_numbers<[1], [0], [0], [1], [0, 0, 1, 1], [], []>} : vector<4x16xf32>, vector<16x32xf32>, vector<4x32xf32> -> vector<4x32xf32>
    %c0_226 = arith.constant 0 : index
    %c0_227 = arith.constant 0 : index
    %625 = vector.load %arg1[%c0_226, %c0_227] : memref<4x32xf32, #tpu.memory_space<vmem>>, vector<4x32xf32>
    %c0_228 = arith.constant 0 : index
    %c0_229 = arith.constant 0 : index
    %626 = vector.load %arg2[%c0_228, %c0_229] : memref<4x1xf32, #tpu.memory_space<vmem>>, vector<4x1xf32>
    %627 = vector.broadcast %626 : vector<4x1xf32> to vector<4x32xf32>
    %628 = arith.mulf %625, %627 : vector<4x32xf32>
    %c0_230 = arith.constant 0 : index
    %c0_231 = arith.constant 0 : index
    %629 = vector.load %arg50[%c0_230, %c0_231] : memref<32x32xf32, #tpu.memory_space<vmem>>, vector<32x32xf32>
    %cst_232 = arith.constant dense<0.000000e+00> : vector<4x32xf32>
    %630 = tpu.matmul %624, %629, %cst_232 {dimension_numbers = #tpu.dot_dimension_numbers<[1], [0], [0], [1], [0, 0, 1, 1], [], []>} : vector<4x32xf32>, vector<32x32xf32>, vector<4x32xf32> -> vector<4x32xf32>
    %c0_233 = arith.constant 0 : index
    %c0_234 = arith.constant 0 : index
    %631 = vector.load %arg56[%c0_233, %c0_234] : memref<1x32xf32, #tpu.memory_space<vmem>>, vector<1x32xf32>
    %632 = vector.broadcast %631 : vector<1x32xf32> to vector<4x32xf32>
    %633 = arith.addf %630, %632 : vector<4x32xf32>
    %c0_235 = arith.constant 0 : index
    %c0_236 = arith.constant 0 : index
    %634 = vector.load %arg53[%c0_235, %c0_236] : memref<32x32xf32, #tpu.memory_space<vmem>>, vector<32x32xf32>
    %cst_237 = arith.constant dense<0.000000e+00> : vector<4x32xf32>
    %635 = tpu.matmul %628, %634, %cst_237 {dimension_numbers = #tpu.dot_dimension_numbers<[1], [0], [0], [1], [0, 0, 1, 1], [], []>} : vector<4x32xf32>, vector<32x32xf32>, vector<4x32xf32> -> vector<4x32xf32>
    %636 = arith.addf %633, %635 : vector<4x32xf32>
    %c0_238 = arith.constant 0 : index
    %c0_239 = arith.constant 0 : index
    %637 = vector.load %arg59[%c0_238, %c0_239] : memref<1x32xf32, #tpu.memory_space<vmem>>, vector<1x32xf32>
    %638 = vector.broadcast %637 : vector<1x32xf32> to vector<4x32xf32>
    %639 = arith.addf %636, %638 : vector<4x32xf32>
    %640 = arith.negf %639 : vector<4x32xf32>
    %641 = math.exp %640 : vector<4x32xf32>
    %cst_240 = arith.constant 1.000000e+00 : f32
    %642 = vector.broadcast %cst_240 : f32 to vector<4x32xf32>
    %643 = arith.addf %642, %641 : vector<4x32xf32>
    %644 = arith.divf %642, %643 : vector<4x32xf32>
    %c0_241 = arith.constant 0 : index
    %c0_242 = arith.constant 0 : index
    %645 = vector.load %arg51[%c0_241, %c0_242] : memref<32x32xf32, #tpu.memory_space<vmem>>, vector<32x32xf32>
    %cst_243 = arith.constant dense<0.000000e+00> : vector<4x32xf32>
    %646 = tpu.matmul %624, %645, %cst_243 {dimension_numbers = #tpu.dot_dimension_numbers<[1], [0], [0], [1], [0, 0, 1, 1], [], []>} : vector<4x32xf32>, vector<32x32xf32>, vector<4x32xf32> -> vector<4x32xf32>
    %c0_244 = arith.constant 0 : index
    %c0_245 = arith.constant 0 : index
    %647 = vector.load %arg57[%c0_244, %c0_245] : memref<1x32xf32, #tpu.memory_space<vmem>>, vector<1x32xf32>
    %648 = vector.broadcast %647 : vector<1x32xf32> to vector<4x32xf32>
    %649 = arith.addf %646, %648 : vector<4x32xf32>
    %c0_246 = arith.constant 0 : index
    %c0_247 = arith.constant 0 : index
    %650 = vector.load %arg54[%c0_246, %c0_247] : memref<32x32xf32, #tpu.memory_space<vmem>>, vector<32x32xf32>
    %cst_248 = arith.constant dense<0.000000e+00> : vector<4x32xf32>
    %651 = tpu.matmul %628, %650, %cst_248 {dimension_numbers = #tpu.dot_dimension_numbers<[1], [0], [0], [1], [0, 0, 1, 1], [], []>} : vector<4x32xf32>, vector<32x32xf32>, vector<4x32xf32> -> vector<4x32xf32>
    %652 = arith.addf %649, %651 : vector<4x32xf32>
    %c0_249 = arith.constant 0 : index
    %c0_250 = arith.constant 0 : index
    %653 = vector.load %arg60[%c0_249, %c0_250] : memref<1x32xf32, #tpu.memory_space<vmem>>, vector<1x32xf32>
    %654 = vector.broadcast %653 : vector<1x32xf32> to vector<4x32xf32>
    %655 = arith.addf %652, %654 : vector<4x32xf32>
    %656 = arith.negf %655 : vector<4x32xf32>
    %657 = math.exp %656 : vector<4x32xf32>
    %cst_251 = arith.constant 1.000000e+00 : f32
    %658 = vector.broadcast %cst_251 : f32 to vector<4x32xf32>
    %659 = arith.addf %658, %657 : vector<4x32xf32>
    %660 = arith.divf %658, %659 : vector<4x32xf32>
    %c0_252 = arith.constant 0 : index
    %c0_253 = arith.constant 0 : index
    %661 = vector.load %arg52[%c0_252, %c0_253] : memref<32x32xf32, #tpu.memory_space<vmem>>, vector<32x32xf32>
    %cst_254 = arith.constant dense<0.000000e+00> : vector<4x32xf32>
    %662 = tpu.matmul %624, %661, %cst_254 {dimension_numbers = #tpu.dot_dimension_numbers<[1], [0], [0], [1], [0, 0, 1, 1], [], []>} : vector<4x32xf32>, vector<32x32xf32>, vector<4x32xf32> -> vector<4x32xf32>
    %c0_255 = arith.constant 0 : index
    %c0_256 = arith.constant 0 : index
    %663 = vector.load %arg58[%c0_255, %c0_256] : memref<1x32xf32, #tpu.memory_space<vmem>>, vector<1x32xf32>
    %664 = vector.broadcast %663 : vector<1x32xf32> to vector<4x32xf32>
    %665 = arith.addf %662, %664 : vector<4x32xf32>
    %c0_257 = arith.constant 0 : index
    %c0_258 = arith.constant 0 : index
    %666 = vector.load %arg55[%c0_257, %c0_258] : memref<32x32xf32, #tpu.memory_space<vmem>>, vector<32x32xf32>
    %cst_259 = arith.constant dense<0.000000e+00> : vector<4x32xf32>
    %667 = tpu.matmul %628, %666, %cst_259 {dimension_numbers = #tpu.dot_dimension_numbers<[1], [0], [0], [1], [0, 0, 1, 1], [], []>} : vector<4x32xf32>, vector<32x32xf32>, vector<4x32xf32> -> vector<4x32xf32>
    %c0_260 = arith.constant 0 : index
    %c0_261 = arith.constant 0 : index
    %668 = vector.load %arg61[%c0_260, %c0_261] : memref<1x32xf32, #tpu.memory_space<vmem>>, vector<1x32xf32>
    %669 = vector.broadcast %668 : vector<1x32xf32> to vector<4x32xf32>
    %670 = arith.addf %667, %669 : vector<4x32xf32>
    %671 = arith.mulf %644, %670 : vector<4x32xf32>
    %672 = arith.addf %665, %671 : vector<4x32xf32>
    %673 = math.tanh %672 : vector<4x32xf32>
    %cst_262 = arith.constant 1.000000e+00 : f32
    %674 = vector.broadcast %cst_262 : f32 to vector<4x32xf32>
    %675 = arith.subf %674, %660 : vector<4x32xf32>
    %676 = arith.mulf %675, %673 : vector<4x32xf32>
    %677 = arith.mulf %660, %628 : vector<4x32xf32>
    %678 = arith.addf %676, %677 : vector<4x32xf32>
    %c0_263 = arith.constant 0 : index
    %c0_264 = arith.constant 0 : index
    %679 = vector.load %arg68[%c0_263, %c0_264] : memref<4x32xf32, #tpu.memory_space<vmem>>, vector<4x32xf32>
    tpu.vector_store %arg68[%c0_263, %c0_264], %678 {strides = array<i32>} : memref<4x32xf32, #tpu.memory_space<vmem>>, vector<4x32xf32>,
    %c0_265 = arith.constant 0 : index
    %c0_266 = arith.constant 0 : index
    %680 = vector.load %arg62[%c0_265, %c0_266] : memref<1x32xf32, #tpu.memory_space<vmem>>, vector<1x32xf32>
    %c0_267 = arith.constant 0 : index
    %c0_268 = arith.constant 0 : index
    %681 = vector.load %arg63[%c0_267, %c0_268] : memref<1x32xf32, #tpu.memory_space<vmem>>, vector<1x32xf32>
    %cst_269 = arith.constant dense<0.000000e+00> : vector<4xf32>
    %682 = vector.multi_reduction <add>, %678, %cst_269 [1] : vector<4x32xf32> to vector<4xf32>
    %683 = vector.shape_cast %682 : vector<4xf32> to vector<4x1xf32>
    %cst_270 = arith.constant 3.200000e+01 : f32
    %684 = vector.broadcast %cst_270 : f32 to vector<4x1xf32>
    %685 = arith.divf %683, %684 : vector<4x1xf32>
    %686 = vector.broadcast %685 : vector<4x1xf32> to vector<4x32xf32>
    %687 = arith.subf %678, %686 : vector<4x32xf32>
    %688 = arith.mulf %687, %687 : vector<4x32xf32>
    %cst_271 = arith.constant dense<0.000000e+00> : vector<4xf32>
    %689 = vector.multi_reduction <add>, %688, %cst_271 [1] : vector<4x32xf32> to vector<4xf32>
    %690 = vector.shape_cast %689 : vector<4xf32> to vector<4x1xf32>
    %cst_272 = arith.constant 3.200000e+01 : f32
    %691 = vector.broadcast %cst_272 : f32 to vector<4x1xf32>
    %692 = arith.divf %690, %691 : vector<4x1xf32>
    %693 = vector.broadcast %685 : vector<4x1xf32> to vector<4x32xf32>
    %694 = arith.subf %678, %693 : vector<4x32xf32>
    %cst_273 = arith.constant 9.99999974E-6 : f32
    %695 = vector.broadcast %cst_273 : f32 to vector<4x1xf32>
    %696 = arith.addf %692, %695 : vector<4x1xf32>
    %697 = math.rsqrt %696 : vector<4x1xf32>
    %698 = vector.broadcast %697 : vector<4x1xf32> to vector<4x32xf32>
    %699 = arith.mulf %694, %698 : vector<4x32xf32>
    %700 = vector.broadcast %680 : vector<1x32xf32> to vector<4x32xf32>
    %701 = arith.mulf %699, %700 : vector<4x32xf32>
    %702 = vector.broadcast %681 : vector<1x32xf32> to vector<4x32xf32>
    %703 = arith.addf %701, %702 : vector<4x32xf32>
    %c0_274 = arith.constant 0 : index
    %c0_275 = arith.constant 0 : index
    %704 = vector.load %arg38[%c0_274, %c0_275] : memref<32x32xf32, #tpu.memory_space<vmem>>, vector<32x32xf32>
    %c0_276 = arith.constant 0 : index
    %c0_277 = arith.constant 0 : index
    %705 = vector.load %arg39[%c0_276, %c0_277] : memref<1x32xf32, #tpu.memory_space<vmem>>, vector<1x32xf32>
    %c0_278 = arith.constant 0 : index
    %c0_279 = arith.constant 0 : index
    %706 = vector.load %arg40[%c0_278, %c0_279] : memref<32x32xf32, #tpu.memory_space<vmem>>, vector<32x32xf32>
    %c0_280 = arith.constant 0 : index
    %c0_281 = arith.constant 0 : index
    %707 = vector.load %arg41[%c0_280, %c0_281] : memref<1x32xf32, #tpu.memory_space<vmem>>, vector<1x32xf32>
    %c0_282 = arith.constant 0 : index
    %c0_283 = arith.constant 0 : index
    %708 = vector.load %arg42[%c0_282, %c0_283] : memref<32x32xf32, #tpu.memory_space<vmem>>, vector<32x32xf32>
    %c0_284 = arith.constant 0 : index
    %c0_285 = arith.constant 0 : index
    %709 = vector.load %arg43[%c0_284, %c0_285] : memref<1x32xf32, #tpu.memory_space<vmem>>, vector<1x32xf32>
    %c0_286 = arith.constant 0 : index
    %c0_287 = arith.constant 0 : index
    %710 = vector.load %arg44[%c0_286, %c0_287] : memref<32x32xf32, #tpu.memory_space<vmem>>, vector<32x32xf32>
    %c0_288 = arith.constant 0 : index
    %c0_289 = arith.constant 0 : index
    %711 = vector.load %arg45[%c0_288, %c0_289] : memref<1x32xf32, #tpu.memory_space<vmem>>, vector<1x32xf32>
    %c0_290 = arith.constant 0 : index
    %c0_291 = arith.constant 0 : index
    %712 = vector.load %arg46[%c0_290, %c0_291] : memref<1x32xf32, #tpu.memory_space<vmem>>, vector<1x32xf32>
    %c0_292 = arith.constant 0 : index
    %c0_293 = arith.constant 0 : index
    %713 = vector.load %arg47[%c0_292, %c0_293] : memref<1x32xf32, #tpu.memory_space<vmem>>, vector<1x32xf32>
    %c0_294 = arith.constant 0 : index
    %c0_295 = arith.constant 0 : index
    %714 = vector.load %arg48[%c0_294, %c0_295] : memref<1x32xf32, #tpu.memory_space<vmem>>, vector<1x32xf32>
    %c0_296 = arith.constant 0 : index
    %c0_297 = arith.constant 0 : index
    %715 = vector.load %arg49[%c0_296, %c0_297] : memref<1x32xf32, #tpu.memory_space<vmem>>, vector<1x32xf32>
    %cst_298 = arith.constant dense<0.000000e+00> : vector<4x32xf32>
    %716 = tpu.matmul %703, %704, %cst_298 {dimension_numbers = #tpu.dot_dimension_numbers<[1], [0], [0], [1], [0, 0, 1, 1], [], []>} : vector<4x32xf32>, vector<32x32xf32>, vector<4x32xf32> -> vector<4x32xf32>
    %717 = vector.broadcast %705 : vector<1x32xf32> to vector<4x32xf32>
    %718 = arith.addf %716, %717 : vector<4x32xf32>
    %cst_299 = arith.constant dense<0.000000e+00> : vector<4x32xf32>
    %719 = tpu.matmul %703, %706, %cst_299 {dimension_numbers = #tpu.dot_dimension_numbers<[1], [0], [0], [1], [0, 0, 1, 1], [], []>} : vector<4x32xf32>, vector<32x32xf32>, vector<4x32xf32> -> vector<4x32xf32>
    %720 = vector.broadcast %707 : vector<1x32xf32> to vector<4x32xf32>
    %721 = arith.addf %719, %720 : vector<4x32xf32>
    %cst_300 = arith.constant dense<0.000000e+00> : vector<4x32xf32>
    %722 = tpu.matmul %703, %708, %cst_300 {dimension_numbers = #tpu.dot_dimension_numbers<[1], [0], [0], [1], [0, 0, 1, 1], [], []>} : vector<4x32xf32>, vector<32x32xf32>, vector<4x32xf32> -> vector<4x32xf32>
    %723 = vector.broadcast %709 : vector<1x32xf32> to vector<4x32xf32>
    %724 = arith.addf %722, %723 : vector<4x32xf32>
    %725 = tpu.transpose %721, [1, 0] : vector<4x32xf32> -> vector<32x4xf32>
    %726 = tpu.iota {dimensions = array<i32: 0>} : vector<4x4xi32>
    %727 = tpu.iota {dimensions = array<i32: 1>} : vector<4x4xi32>
    %false_301 = arith.constant false
    %728 = vector.broadcast %false_301 : i1 to vector<4x4xi1>
    %c0_i32_302 = arith.constant 0 : i32
    %729 = vector.broadcast %c0_i32_302 : i32 to vector<4x4xi32>
    %730 = arith.cmpi sge, %726, %729 : vector<4x4xi32>
    %c2_i32_303 = arith.constant 2 : i32
    %731 = vector.broadcast %c2_i32_303 : i32 to vector<4x4xi32>
    %732 = arith.cmpi slt, %726, %731 : vector<4x4xi32>
    %733 = arith.andi %730, %732 : vector<4x4xi1>
    %c0_i32_304 = arith.constant 0 : i32
    %734 = vector.broadcast %c0_i32_304 : i32 to vector<4x4xi32>
    %735 = arith.cmpi sge, %727, %734 : vector<4x4xi32>
    %c2_i32_305 = arith.constant 2 : i32
    %736 = vector.broadcast %c2_i32_305 : i32 to vector<4x4xi32>
    %737 = arith.cmpi slt, %727, %736 : vector<4x4xi32>
    %738 = arith.andi %735, %737 : vector<4x4xi1>
    %739 = arith.andi %733, %738 : vector<4x4xi1>
    %740 = arith.ori %728, %739 : vector<4x4xi1>
    %c2_i32_306 = arith.constant 2 : i32
    %741 = vector.broadcast %c2_i32_306 : i32 to vector<4x4xi32>
    %742 = arith.cmpi sge, %726, %741 : vector<4x4xi32>
    %c4_i32_307 = arith.constant 4 : i32
    %743 = vector.broadcast %c4_i32_307 : i32 to vector<4x4xi32>
    %744 = arith.cmpi slt, %726, %743 : vector<4x4xi32>
    %745 = arith.andi %742, %744 : vector<4x4xi1>
    %c2_i32_308 = arith.constant 2 : i32
    %746 = vector.broadcast %c2_i32_308 : i32 to vector<4x4xi32>
    %747 = arith.cmpi sge, %727, %746 : vector<4x4xi32>
    %c4_i32_309 = arith.constant 4 : i32
    %748 = vector.broadcast %c4_i32_309 : i32 to vector<4x4xi32>
    %749 = arith.cmpi slt, %727, %748 : vector<4x4xi32>
    %750 = arith.andi %747, %749 : vector<4x4xi1>
    %751 = arith.andi %745, %750 : vector<4x4xi1>
    %752 = arith.ori %740, %751 : vector<4x4xi1>
    %cst_310 = arith.constant 0.000000e+00 : f32
    %cst_311 = arith.constant -1.000000e+30 : f32
    %753 = vector.broadcast %cst_310 : f32 to vector<4x4xf32>
    %754 = vector.broadcast %cst_311 : f32 to vector<4x4xf32>
    %755 = arith.select %752, %753, %754 : vector<4x4xi1>, vector<4x4xf32>
    %cst_312 = arith.constant 0.000000e+00 : f32
    %756 = vector.broadcast %cst_312 : f32 to vector<4x32xf32>
    %757 = tpu.iota {dimensions = array<i32: 1>} : vector<1x32xi32>
    %c0_i32_313 = arith.constant 0 : i32
    %758 = vector.broadcast %c0_i32_313 : i32 to vector<1x32xi32>
    %759 = arith.cmpi sge, %757, %758 : vector<1x32xi32>
    %c8_i32_314 = arith.constant 8 : i32
    %760 = vector.broadcast %c8_i32_314 : i32 to vector<1x32xi32>
    %761 = arith.cmpi slt, %757, %760 : vector<1x32xi32>
    %762 = arith.andi %759, %761 : vector<1x32xi1>
    %763 = arith.extui %762 : vector<1x32xi1> to vector<1x32xi32>
    %764 = arith.sitofp %763 : vector<1x32xi32> to vector<1x32xf32>
    %765 = vector.broadcast %764 : vector<1x32xf32> to vector<4x32xf32>
    %766 = arith.mulf %718, %765 : vector<4x32xf32>
    %cst_315 = arith.constant dense<0.000000e+00> : vector<4x4xf32>
    %767 = tpu.matmul %766, %725, %cst_315 {dimension_numbers = #tpu.dot_dimension_numbers<[1], [0], [0], [1], [0, 0, 1, 1], [], []>} : vector<4x32xf32>, vector<32x4xf32>, vector<4x4xf32> -> vector<4x4xf32>
    %cst_316 = arith.constant 0.176776692 : f32
    %768 = vector.broadcast %cst_316 : f32 to vector<4x4xf32>
    %769 = arith.mulf %767, %768 : vector<4x4xf32>
    %770 = arith.addf %769, %755 : vector<4x4xf32>
    %cst_317 = arith.constant dense<0xFF800000> : vector<4xf32>
    %771 = vector.multi_reduction <maximumf>, %770, %cst_317 [1] : vector<4x4xf32> to vector<4xf32>
    %772 = vector.shape_cast %771 : vector<4xf32> to vector<4x1xf32>
    %773 = vector.broadcast %772 : vector<4x1xf32> to vector<4x4xf32>
    %774 = arith.subf %770, %773 : vector<4x4xf32>
    %775 = math.exp %774 : vector<4x4xf32>
    %cst_318 = arith.constant dense<0.000000e+00> : vector<4xf32>
    %776 = vector.multi_reduction <add>, %775, %cst_318 [1] : vector<4x4xf32> to vector<4xf32>
    %777 = vector.shape_cast %776 : vector<4xf32> to vector<4x1xf32>
    %778 = vector.broadcast %777 : vector<4x1xf32> to vector<4x4xf32>
    %779 = arith.divf %775, %778 : vector<4x4xf32>
    %cst_319 = arith.constant dense<0.000000e+00> : vector<4x32xf32>
    %780 = tpu.matmul %779, %724, %cst_319 {dimension_numbers = #tpu.dot_dimension_numbers<[1], [0], [0], [1], [0, 0, 1, 1], [], []>} : vector<4x4xf32>, vector<4x32xf32>, vector<4x32xf32> -> vector<4x32xf32>
    %781 = vector.broadcast %764 : vector<1x32xf32> to vector<4x32xf32>
    %782 = arith.mulf %780, %781 : vector<4x32xf32>
    %783 = arith.addf %756, %782 : vector<4x32xf32>
    %784 = tpu.iota {dimensions = array<i32: 1>} : vector<1x32xi32>
    %c8_i32_320 = arith.constant 8 : i32
    %785 = vector.broadcast %c8_i32_320 : i32 to vector<1x32xi32>
    %786 = arith.cmpi sge, %784, %785 : vector<1x32xi32>
    %c16_i32_321 = arith.constant 16 : i32
    %787 = vector.broadcast %c16_i32_321 : i32 to vector<1x32xi32>
    %788 = arith.cmpi slt, %784, %787 : vector<1x32xi32>
    %789 = arith.andi %786, %788 : vector<1x32xi1>
    %790 = arith.extui %789 : vector<1x32xi1> to vector<1x32xi32>
    %791 = arith.sitofp %790 : vector<1x32xi32> to vector<1x32xf32>
    %792 = vector.broadcast %791 : vector<1x32xf32> to vector<4x32xf32>
    %793 = arith.mulf %718, %792 : vector<4x32xf32>
    %cst_322 = arith.constant dense<0.000000e+00> : vector<4x4xf32>
    %794 = tpu.matmul %793, %725, %cst_322 {dimension_numbers = #tpu.dot_dimension_numbers<[1], [0], [0], [1], [0, 0, 1, 1], [], []>} : vector<4x32xf32>, vector<32x4xf32>, vector<4x4xf32> -> vector<4x4xf32>
    %cst_323 = arith.constant 0.176776692 : f32
    %795 = vector.broadcast %cst_323 : f32 to vector<4x4xf32>
    %796 = arith.mulf %794, %795 : vector<4x4xf32>
    %797 = arith.addf %796, %755 : vector<4x4xf32>
    %cst_324 = arith.constant dense<0xFF800000> : vector<4xf32>
    %798 = vector.multi_reduction <maximumf>, %797, %cst_324 [1] : vector<4x4xf32> to vector<4xf32>
    %799 = vector.shape_cast %798 : vector<4xf32> to vector<4x1xf32>
    %800 = vector.broadcast %799 : vector<4x1xf32> to vector<4x4xf32>
    %801 = arith.subf %797, %800 : vector<4x4xf32>
    %802 = math.exp %801 : vector<4x4xf32>
    %cst_325 = arith.constant dense<0.000000e+00> : vector<4xf32>
    %803 = vector.multi_reduction <add>, %802, %cst_325 [1] : vector<4x4xf32> to vector<4xf32>
    %804 = vector.shape_cast %803 : vector<4xf32> to vector<4x1xf32>
    %805 = vector.broadcast %804 : vector<4x1xf32> to vector<4x4xf32>
    %806 = arith.divf %802, %805 : vector<4x4xf32>
    %cst_326 = arith.constant dense<0.000000e+00> : vector<4x32xf32>
    %807 = tpu.matmul %806, %724, %cst_326 {dimension_numbers = #tpu.dot_dimension_numbers<[1], [0], [0], [1], [0, 0, 1, 1], [], []>} : vector<4x4xf32>, vector<4x32xf32>, vector<4x32xf32> -> vector<4x32xf32>
    %808 = vector.broadcast %791 : vector<1x32xf32> to vector<4x32xf32>
    %809 = arith.mulf %807, %808 : vector<4x32xf32>
    %810 = arith.addf %783, %809 : vector<4x32xf32>
    %811 = tpu.iota {dimensions = array<i32: 1>} : vector<1x32xi32>
    %c16_i32_327 = arith.constant 16 : i32
    %812 = vector.broadcast %c16_i32_327 : i32 to vector<1x32xi32>
    %813 = arith.cmpi sge, %811, %812 : vector<1x32xi32>
    %c24_i32_328 = arith.constant 24 : i32
    %814 = vector.broadcast %c24_i32_328 : i32 to vector<1x32xi32>
    %815 = arith.cmpi slt, %811, %814 : vector<1x32xi32>
    %816 = arith.andi %813, %815 : vector<1x32xi1>
    %817 = arith.extui %816 : vector<1x32xi1> to vector<1x32xi32>
    %818 = arith.sitofp %817 : vector<1x32xi32> to vector<1x32xf32>
    %819 = vector.broadcast %818 : vector<1x32xf32> to vector<4x32xf32>
    %820 = arith.mulf %718, %819 : vector<4x32xf32>
    %cst_329 = arith.constant dense<0.000000e+00> : vector<4x4xf32>
    %821 = tpu.matmul %820, %725, %cst_329 {dimension_numbers = #tpu.dot_dimension_numbers<[1], [0], [0], [1], [0, 0, 1, 1], [], []>} : vector<4x32xf32>, vector<32x4xf32>, vector<4x4xf32> -> vector<4x4xf32>
    %cst_330 = arith.constant 0.176776692 : f32
    %822 = vector.broadcast %cst_330 : f32 to vector<4x4xf32>
    %823 = arith.mulf %821, %822 : vector<4x4xf32>
    %824 = arith.addf %823, %755 : vector<4x4xf32>
    %cst_331 = arith.constant dense<0xFF800000> : vector<4xf32>
    %825 = vector.multi_reduction <maximumf>, %824, %cst_331 [1] : vector<4x4xf32> to vector<4xf32>
    %826 = vector.shape_cast %825 : vector<4xf32> to vector<4x1xf32>
    %827 = vector.broadcast %826 : vector<4x1xf32> to vector<4x4xf32>
    %828 = arith.subf %824, %827 : vector<4x4xf32>
    %829 = math.exp %828 : vector<4x4xf32>
    %cst_332 = arith.constant dense<0.000000e+00> : vector<4xf32>
    %830 = vector.multi_reduction <add>, %829, %cst_332 [1] : vector<4x4xf32> to vector<4xf32>
    %831 = vector.shape_cast %830 : vector<4xf32> to vector<4x1xf32>
    %832 = vector.broadcast %831 : vector<4x1xf32> to vector<4x4xf32>
    %833 = arith.divf %829, %832 : vector<4x4xf32>
    %cst_333 = arith.constant dense<0.000000e+00> : vector<4x32xf32>
    %834 = tpu.matmul %833, %724, %cst_333 {dimension_numbers = #tpu.dot_dimension_numbers<[1], [0], [0], [1], [0, 0, 1, 1], [], []>} : vector<4x4xf32>, vector<4x32xf32>, vector<4x32xf32> -> vector<4x32xf32>
    %835 = vector.broadcast %818 : vector<1x32xf32> to vector<4x32xf32>
    %836 = arith.mulf %834, %835 : vector<4x32xf32>
    %837 = arith.addf %810, %836 : vector<4x32xf32>
    %838 = tpu.iota {dimensions = array<i32: 1>} : vector<1x32xi32>
    %c24_i32_334 = arith.constant 24 : i32
    %839 = vector.broadcast %c24_i32_334 : i32 to vector<1x32xi32>
    %840 = arith.cmpi sge, %838, %839 : vector<1x32xi32>
    %c32_i32_335 = arith.constant 32 : i32
    %841 = vector.broadcast %c32_i32_335 : i32 to vector<1x32xi32>
    %842 = arith.cmpi slt, %838, %841 : vector<1x32xi32>
    %843 = arith.andi %840, %842 : vector<1x32xi1>
    %844 = arith.extui %843 : vector<1x32xi1> to vector<1x32xi32>
    %845 = arith.sitofp %844 : vector<1x32xi32> to vector<1x32xf32>
    %846 = vector.broadcast %845 : vector<1x32xf32> to vector<4x32xf32>
    %847 = arith.mulf %718, %846 : vector<4x32xf32>
    %cst_336 = arith.constant dense<0.000000e+00> : vector<4x4xf32>
    %848 = tpu.matmul %847, %725, %cst_336 {dimension_numbers = #tpu.dot_dimension_numbers<[1], [0], [0], [1], [0, 0, 1, 1], [], []>} : vector<4x32xf32>, vector<32x4xf32>, vector<4x4xf32> -> vector<4x4xf32>
    %cst_337 = arith.constant 0.176776692 : f32
    %849 = vector.broadcast %cst_337 : f32 to vector<4x4xf32>
    %850 = arith.mulf %848, %849 : vector<4x4xf32>
    %851 = arith.addf %850, %755 : vector<4x4xf32>
    %cst_338 = arith.constant dense<0xFF800000> : vector<4xf32>
    %852 = vector.multi_reduction <maximumf>, %851, %cst_338 [1] : vector<4x4xf32> to vector<4xf32>
    %853 = vector.shape_cast %852 : vector<4xf32> to vector<4x1xf32>
    %854 = vector.broadcast %853 : vector<4x1xf32> to vector<4x4xf32>
    %855 = arith.subf %851, %854 : vector<4x4xf32>
    %856 = math.exp %855 : vector<4x4xf32>
    %cst_339 = arith.constant dense<0.000000e+00> : vector<4xf32>
    %857 = vector.multi_reduction <add>, %856, %cst_339 [1] : vector<4x4xf32> to vector<4xf32>
    %858 = vector.shape_cast %857 : vector<4xf32> to vector<4x1xf32>
    %859 = vector.broadcast %858 : vector<4x1xf32> to vector<4x4xf32>
    %860 = arith.divf %856, %859 : vector<4x4xf32>
    %cst_340 = arith.constant dense<0.000000e+00> : vector<4x32xf32>
    %861 = tpu.matmul %860, %724, %cst_340 {dimension_numbers = #tpu.dot_dimension_numbers<[1], [0], [0], [1], [0, 0, 1, 1], [], []>} : vector<4x4xf32>, vector<4x32xf32>, vector<4x32xf32> -> vector<4x32xf32>
    %862 = vector.broadcast %845 : vector<1x32xf32> to vector<4x32xf32>
    %863 = arith.mulf %861, %862 : vector<4x32xf32>
    %864 = arith.addf %837, %863 : vector<4x32xf32>
    %865 = arith.addf %718, %864 : vector<4x32xf32>
    %cst_341 = arith.constant dense<0.000000e+00> : vector<4xf32>
    %866 = vector.multi_reduction <add>, %865, %cst_341 [1] : vector<4x32xf32> to vector<4xf32>
    %867 = vector.shape_cast %866 : vector<4xf32> to vector<4x1xf32>
    %cst_342 = arith.constant 3.200000e+01 : f32
    %868 = vector.broadcast %cst_342 : f32 to vector<4x1xf32>
    %869 = arith.divf %867, %868 : vector<4x1xf32>
    %870 = vector.broadcast %869 : vector<4x1xf32> to vector<4x32xf32>
    %871 = arith.subf %865, %870 : vector<4x32xf32>
    %872 = arith.mulf %871, %871 : vector<4x32xf32>
    %cst_343 = arith.constant dense<0.000000e+00> : vector<4xf32>
    %873 = vector.multi_reduction <add>, %872, %cst_343 [1] : vector<4x32xf32> to vector<4xf32>
    %874 = vector.shape_cast %873 : vector<4xf32> to vector<4x1xf32>
    %cst_344 = arith.constant 3.200000e+01 : f32
    %875 = vector.broadcast %cst_344 : f32 to vector<4x1xf32>
    %876 = arith.divf %874, %875 : vector<4x1xf32>
    %877 = vector.broadcast %869 : vector<4x1xf32> to vector<4x32xf32>
    %878 = arith.subf %865, %877 : vector<4x32xf32>
    %cst_345 = arith.constant 9.99999974E-6 : f32
    %879 = vector.broadcast %cst_345 : f32 to vector<4x1xf32>
    %880 = arith.addf %876, %879 : vector<4x1xf32>
    %881 = math.rsqrt %880 : vector<4x1xf32>
    %882 = vector.broadcast %881 : vector<4x1xf32> to vector<4x32xf32>
    %883 = arith.mulf %878, %882 : vector<4x32xf32>
    %884 = vector.broadcast %712 : vector<1x32xf32> to vector<4x32xf32>
    %885 = arith.mulf %883, %884 : vector<4x32xf32>
    %886 = vector.broadcast %713 : vector<1x32xf32> to vector<4x32xf32>
    %887 = arith.addf %885, %886 : vector<4x32xf32>
    %cst_346 = arith.constant dense<0.000000e+00> : vector<4x32xf32>
    %888 = tpu.matmul %887, %710, %cst_346 {dimension_numbers = #tpu.dot_dimension_numbers<[1], [0], [0], [1], [0, 0, 1, 1], [], []>} : vector<4x32xf32>, vector<32x32xf32>, vector<4x32xf32> -> vector<4x32xf32>
    %889 = vector.broadcast %711 : vector<1x32xf32> to vector<4x32xf32>
    %890 = arith.addf %888, %889 : vector<4x32xf32>
    %cst_347 = arith.constant 0.000000e+00 : f32
    %891 = vector.broadcast %cst_347 : f32 to vector<4x32xf32>
    %892 = arith.maximumf %890, %891 : vector<4x32xf32>
    %893 = arith.addf %887, %892 : vector<4x32xf32>
    %cst_348 = arith.constant dense<0.000000e+00> : vector<4xf32>
    %894 = vector.multi_reduction <add>, %893, %cst_348 [1] : vector<4x32xf32> to vector<4xf32>
    %895 = vector.shape_cast %894 : vector<4xf32> to vector<4x1xf32>
    %cst_349 = arith.constant 3.200000e+01 : f32
    %896 = vector.broadcast %cst_349 : f32 to vector<4x1xf32>
    %897 = arith.divf %895, %896 : vector<4x1xf32>
    %898 = vector.broadcast %897 : vector<4x1xf32> to vector<4x32xf32>
    %899 = arith.subf %893, %898 : vector<4x32xf32>
    %900 = arith.mulf %899, %899 : vector<4x32xf32>
    %cst_350 = arith.constant dense<0.000000e+00> : vector<4xf32>
    %901 = vector.multi_reduction <add>, %900, %cst_350 [1] : vector<4x32xf32> to vector<4xf32>
    %902 = vector.shape_cast %901 : vector<4xf32> to vector<4x1xf32>
    %cst_351 = arith.constant 3.200000e+01 : f32
    %903 = vector.broadcast %cst_351 : f32 to vector<4x1xf32>
    %904 = arith.divf %902, %903 : vector<4x1xf32>
    %905 = vector.broadcast %897 : vector<4x1xf32> to vector<4x32xf32>
    %906 = arith.subf %893, %905 : vector<4x32xf32>
    %cst_352 = arith.constant 9.99999974E-6 : f32
    %907 = vector.broadcast %cst_352 : f32 to vector<4x1xf32>
    %908 = arith.addf %904, %907 : vector<4x1xf32>
    %909 = math.rsqrt %908 : vector<4x1xf32>
    %910 = vector.broadcast %909 : vector<4x1xf32> to vector<4x32xf32>
    %911 = arith.mulf %906, %910 : vector<4x32xf32>
    %912 = vector.broadcast %714 : vector<1x32xf32> to vector<4x32xf32>
    %913 = arith.mulf %911, %912 : vector<4x32xf32>
    %914 = vector.broadcast %715 : vector<1x32xf32> to vector<4x32xf32>
    %915 = arith.addf %913, %914 : vector<4x32xf32>
    %c0_353 = arith.constant 0 : index
    %c0_354 = arith.constant 0 : index
    %916 = vector.load %arg64[%c0_353, %c0_354] : memref<32x5xf32, #tpu.memory_space<vmem>>, vector<32x5xf32>
    %cst_355 = arith.constant dense<0.000000e+00> : vector<4x5xf32>
    %917 = tpu.matmul %915, %916, %cst_355 {dimension_numbers = #tpu.dot_dimension_numbers<[1], [0], [0], [1], [0, 0, 1, 1], [], []>} : vector<4x32xf32>, vector<32x5xf32>, vector<4x5xf32> -> vector<4x5xf32>
    %c0_356 = arith.constant 0 : index
    %c0_357 = arith.constant 0 : index
    %918 = vector.load %arg65[%c0_356, %c0_357] : memref<1x5xf32, #tpu.memory_space<vmem>>, vector<1x5xf32>
    %919 = vector.broadcast %918 : vector<1x5xf32> to vector<4x5xf32>
    %920 = arith.addf %917, %919 : vector<4x5xf32>
    %cst_358 = arith.constant dense<0xFF800000> : vector<4xf32>
    %921 = vector.multi_reduction <maximumf>, %920, %cst_358 [1] : vector<4x5xf32> to vector<4xf32>
    %922 = vector.shape_cast %921 : vector<4xf32> to vector<4x1xf32>
    %923 = vector.broadcast %922 : vector<4x1xf32> to vector<4x5xf32>
    %924 = arith.subf %920, %923 : vector<4x5xf32>
    %925 = math.exp %924 : vector<4x5xf32>
    %cst_359 = arith.constant dense<0.000000e+00> : vector<4xf32>
    %926 = vector.multi_reduction <add>, %925, %cst_359 [1] : vector<4x5xf32> to vector<4xf32>
    %927 = vector.shape_cast %926 : vector<4xf32> to vector<4x1xf32>
    %928 = math.log %927 : vector<4x1xf32>
    %929 = arith.addf %922, %928 : vector<4x1xf32>
    %930 = tpu.iota {dimensions = array<i32: 1>} : vector<4x5xi32>
    %931 = vector.broadcast %922 : vector<4x1xf32> to vector<4x5xf32>
    %932 = arith.cmpf oeq, %920, %931 : vector<4x5xf32>
    %c5_i32 = arith.constant 5 : i32
    %933 = vector.broadcast %c5_i32 : i32 to vector<4x5xi32>
    %934 = arith.select %932, %930, %933 : vector<4x5xi1>, vector<4x5xi32>
    %cst_360 = arith.constant dense<2147483647> : vector<4xi32>
    %935 = vector.multi_reduction <minsi>, %934, %cst_360 [1] : vector<4x5xi32> to vector<4xi32>
    %936 = vector.shape_cast %935 : vector<4xi32> to vector<4x1xi32>
    %c0_361 = arith.constant 0 : index
    %c0_362 = arith.constant 0 : index
    %937 = vector.load %arg66[%c0_361, %c0_362] : memref<4x1xi32, #tpu.memory_space<vmem>>, vector<4x1xi32>
    tpu.vector_store %arg66[%c0_361, %c0_362], %936 {strides = array<i32>} : memref<4x1xi32, #tpu.memory_space<vmem>>, vector<4x1xi32>,
    %938 = arith.subf %922, %929 : vector<4x1xf32>
    %c0_363 = arith.constant 0 : index
    %c0_364 = arith.constant 0 : index
    %939 = vector.load %arg67[%c0_363, %c0_364] : memref<4x1xf32, #tpu.memory_space<vmem>>, vector<4x1xf32>
    tpu.vector_store %arg67[%c0_363, %c0_364], %938 {strides = array<i32>} : memref<4x1xf32, #tpu.memory_space<vmem>>, vector<4x1xf32>,
    return
  }
}

</mosaic_0001>

<bundles_post_ra>
// kernel: actor_forward.1
= control target key start
LH: loop header
LB: loop body
LE: loop exit
PB: predicated region body
PF: predicated region fallthrough
CT: control target
= control target key end

     0   :  { %s7930_s6 = smov 1   ;;  %s7931_s10 = smov 2   ;;  %s9370_s0 = inlined_call_operand.smem [shape: u32[69], index: -1, kind: input, shape index: {}] }
   0x1   :  { %s8029_s5 = sld [smem:[%s9370_s0]]   ;;  %s7932_s14 = smov 3  }
   0x2   :  { %s8034_s9 = sld [smem:[%s9370_s0 + %s7930_s6]]   ;;  %s7933_s18 = smov 4  }
   0x3   :  { %s8039_s13 = sld [smem:[%s9370_s0 + %s7931_s10]]   ;;  %s7934_s22 = smov 5  }
   0x4   :  { %s8044_s17 = sld [smem:[%s9370_s0 + %s7932_s14]]   ;;  %s7935_s26 = smov 6  }
   0x5   :  { %s8049_s21 = sld [smem:[%s9370_s0 + %s7933_s18]]   ;;  %s7936_s30 = smov 7  }
   0x6   :  { %s8054_s25 = sld [smem:[%s9370_s0 + %s7934_s22]]   ;;  %s7937_s4 = smov 8  }
   0x7   :  { %9401 = sst [smem:[#allocation40_spill]] %s8029_s5  ;;  %s7938_s10 = smov 9  }
   0x8   :  { %9402 = sst [smem:[#allocation41_spill]] %s8034_s9  ;;  %s7939_s15 = smov 10  }
   0x9   :  { %9403 = sst [smem:[#allocation42_spill]] %s8039_s13  ;;  %s7940_s20 = smov 11  }
   0xa   :  { %9404 = sst [smem:[#allocation43_spill]] %s8044_s17  ;;  %s7942_s1 = smov 13  }
   0xb   :  { %9405 = sst [smem:[#allocation44_spill]] %s8049_s21  ;;  %s7943_s7 = smov 14  }
   0xc   :  { %9406 = sst [smem:[#allocation45_spill]] %s8054_s25  ;;  %s7945_s22 = smov 16  }
   0xd   :  { %s8059_s29 = sld [smem:[%s9370_s0 + %s7935_s26]]   ;;  %s7941_s26 = smov 12  }
   0xe   :  { %s8064_s3 = sld [smem:[%s9370_s0 + %s7936_s30]]   ;;  %s7946_s28 = smov 17  }
   0xf   :  { %s8069_s8 = sld [smem:[%s9370_s0 + %s7937_s4]]  }
  0x10   :  { %s8074_s14 = sld [smem:[%s9370_s0 + %s7938_s10]]  }
  0x11   :  { %s8079_s19 = sld [smem:[%s9370_s0 + %s7939_s15]]   ;;  %s7944_s15 = smov 15  }
  0x12   :  { %s8084_s24 = sld [smem:[%s9370_s0 + %s7940_s20]]  }
  0x13   :  { %9407 = sst [smem:[#allocation46_spill]] %s8059_s29 }
  0x14   :  { %9408 = sst [smem:[#allocation47_spill]] %s8064_s3 }
  0x15   :  { %9409 = sst [smem:[#allocation48_spill]] %s8069_s8 }
  0x16   :  { %9410 = sst [smem:[#allocation49_spill]] %s8074_s14 }
  0x17   :  { %9411 = sst [smem:[#allocation50_spill]] %s8079_s19 }
  0x18   :  { %9412 = sst [smem:[#allocation51_spill]] %s8084_s24 }
  0x19   :  { %s8089_s30 = sld [smem:[%s9370_s0 + %s7941_s26]]  }
  0x1a   :  { %s8094_s6 = sld [smem:[%s9370_s0 + %s7942_s1]]  }
  0x1b   :  { %s8099_s12 = sld [smem:[%s9370_s0 + %s7943_s7]]   ;;  %s7947_s7 = smov 18  }
  0x1c   :  { %s8104_s20 = sld [smem:[%s9370_s0 + %s7944_s15]]   ;;  %s7948_s15 = smov 19  }
  0x1d   :  { %s8109_s27 = sld [smem:[%s9370_s0 + %s7945_s22]]   ;;  %s7949_s22 = smov 20  }
  0x1e   :  { %s8114_s4 = sld [smem:[%s9370_s0 + %s7946_s28]]   ;;  %s7950_s28 = smov 21  }
  0x1f   :  { %9413 = sst [smem:[#allocation52_spill]] %s8089_s30 }
  0x20   :  { %9414 = sst [smem:[#allocation53_spill]] %s8094_s6 }
  0x21   :  { %9415 = sst [smem:[#allocation54_spill]] %s8099_s12 }
  0x22   :  { %9416 = sst [smem:[#allocation55_spill]] %s8104_s20 }
  0x23   :  { %9417 = sst [smem:[#allocation56_spill]] %s8109_s27 }
  0x24   :  { %9418 = sst [smem:[#allocation57_spill]] %s8114_s4 }
  0x25   :  { %s8119_s9 = sld [smem:[%s9370_s0 + %s7947_s7]]   ;;  %s7951_s7 = smov 22  }
  0x26   :  { %s8124_s13 = sld [smem:[%s9370_s0 + %s7948_s15]]   ;;  %s7952_s15 = smov 23  }
  0x27   :  { %s8129_s12 = sld [smem:[%s9370_s0 + %s7949_s22]]   ;;  %s7953_s22 = smov 24  }
  0x28   :  { %s8134_s27 = sld [smem:[%s9370_s0 + %s7950_s28]]   ;;  %s7954_s28 = smov 25  }
  0x2b   :  { %9419 = sst [smem:[#allocation58_spill]] %s8119_s9 }
  0x2c   :  { %9420 = sst [smem:[#allocation59_spill]] %s8124_s13 }
  0x2d   :  { %9421 = sst [smem:[#allocation60_spill]] %s8129_s12 }
  0x2e   :  { %9422 = sst [smem:[#allocation61_spill]] %s8134_s27 }
  0x2f   :  { %s8139_s9 = sld [smem:[%s9370_s0 + %s7951_s7]]   ;;  %s7955_s7 = smov 26  }
  0x30   :  { %s8144_s13 = sld [smem:[%s9370_s0 + %s7952_s15]]   ;;  %s7956_s15 = smov 27  }
  0x31   :  { %s8149_s12 = sld [smem:[%s9370_s0 + %s7953_s22]]   ;;  %s7957_s22 = smov 28  }
  0x32   :  { %s8154_s27 = sld [smem:[%s9370_s0 + %s7954_s28]]   ;;  %s7958_s28 = smov 29  }
  0x35   :  { %9423 = sst [smem:[#allocation62_spill]] %s8139_s9 }
  0x36   :  { %9424 = sst [smem:[#allocation63_spill]] %s8144_s13 }
  0x37   :  { %9425 = sst [smem:[#allocation64_spill]] %s8149_s12 }
  0x38   :  { %9426 = sst [smem:[#allocation65_spill]] %s8154_s27 }
  0x39   :  { %s8159_s9 = sld [smem:[%s9370_s0 + %s7955_s7]]   ;;  %s7959_s7 = smov 30  }
  0x3a   :  { %s8164_s13 = sld [smem:[%s9370_s0 + %s7956_s15]]   ;;  %s7960_s15 = smov 31  }
  0x3b   :  { %s8169_s12 = sld [smem:[%s9370_s0 + %s7957_s22]]   ;;  %s7961_s22 = smov 32  }
  0x3c   :  { %s8174_s27 = sld [smem:[%s9370_s0 + %s7958_s28]]   ;;  %s7962_s28 = smov 33  }
  0x3f   :  { %9427 = sst [smem:[#allocation66_spill]] %s8159_s9 }
  0x40   :  { %9428 = sst [smem:[#allocation67_spill]] %s8164_s13 }
  0x41   :  { %9429 = sst [smem:[#allocation68_spill]] %s8169_s12 }
  0x42   :  { %9430 = sst [smem:[#allocation69_spill]] %s8174_s27 }
  0x43   :  { %s8179_s9 = sld [smem:[%s9370_s0 + %s7959_s7]]   ;;  %s7963_s7 = smov 34  }
  0x44   :  { %s8184_s13 = sld [smem:[%s9370_s0 + %s7960_s15]]   ;;  %s7964_s15 = smov 35  }
  0x45   :  { %s8189_s12 = sld [smem:[%s9370_s0 + %s7961_s22]]   ;;  %s7965_s22 = smov 36  }
  0x46   :  { %s8194_s27 = sld [smem:[%s9370_s0 + %s7962_s28]]   ;;  %s7966_s28 = smov 37  }
  0x47   :  { %s8204_s30 = sld [smem:[%s9370_s0 + %s7964_s15]]   ;;  %s7968_s15 = smov 39  }
  0x48   :  { %s8214_s24 = sld [smem:[%s9370_s0 + %s7966_s28]]   ;;  %s7970_s28 = smov 41  }
  0x49   :  { %9431 = sst [smem:[#allocation70_spill]] %s8179_s9 }
  0x4a   :  { %s8199_s9 = sld [smem:[%s9370_s0 + %s7963_s7]]   ;;  %s7967_s7 = smov 38  }
  0x4b   :  { %9432 = sst [smem:[#allocation71_spill]] %s8189_s12 }
  0x4c   :  { %s8209_s12 = sld [smem:[%s9370_s0 + %s7965_s22]]   ;;  %s7969_s22 = smov 40  }
  0x4d   :  { %s8219_s4 = sld [smem:[%s9370_s0 + %s7967_s7]]   ;;  %s7971_s7 = smov 42  }
  0x4e   :  { %s8224_s20 = sld [smem:[%s9370_s0 + %s7968_s15]]   ;;  %s7972_s15 = smov 43  }
  0x4f   :  { %s8229_s6 = sld [smem:[%s9370_s0 + %s7969_s22]]   ;;  %s7973_s22 = smov 44  }
  0x50   :  { %s8234_s19 = sld [smem:[%s9370_s0 + %s7970_s28]]   ;;  %s7974_s28 = smov 45  }
  0x51   :  { %s8244_s8 = sld [smem:[%s9370_s0 + %s7972_s15]]   ;;  %s7976_s15 = smov 47  }
  0x52   :  { %s8254_s3 = sld [smem:[%s9370_s0 + %s7974_s28]]   ;;  %s7978_s28 = smov 49  }
  0x53   :  { %9433 = sst [smem:[#allocation72_spill]] %s8219_s4 }
  0x54   :  { %s8239_s4 = sld [smem:[%s9370_s0 + %s7971_s7]]   ;;  %s7975_s7 = smov 46  }
  0x55   :  { %9434 = sst [smem:[#allocation73_spill]] %s8229_s6 }
  0x56   :  { %s8249_s6 = sld [smem:[%s9370_s0 + %s7973_s22]]   ;;  %s7977_s22 = smov 48  }
  0x57   :  { %s8264_s14 = sld [smem:[%s9370_s0 + %s7976_s15]]   ;;  %s7980_s15 = smov 51  }
  0x58   :  { %s8274_s29 = sld [smem:[%s9370_s0 + %s7978_s28]]   ;;  %s7982_s28 = smov 53  }
  0x59   :  { %s8284_s17 = sld [smem:[%s9370_s0 + %s7980_s15]]   ;;  %s7984_s15 = smov 55  }
  0x5a   :  { %9435 = sst [smem:[#allocation74_spill]] %s8239_s4 }
  0x5b   :  { %s8259_s4 = sld [smem:[%s9370_s0 + %s7975_s7]]   ;;  %s7979_s7 = smov 50  }
  0x5c   :  { %9436 = sst [smem:[#allocation75_spill]] %s8249_s6 }
  0x5d   :  { %s8269_s6 = sld [smem:[%s9370_s0 + %s7977_s22]]   ;;  %s7981_s22 = smov 52  }
  0x5e   :  { %s8279_s21 = sld [smem:[%s9370_s0 + %s7979_s7]]   ;;  %s7983_s7 = smov 54  }
  0x5f   :  { %9439 = sst [smem:[#allocation78_spill]] %s8284_s17 }
  0x60   :  { %s8289_s25 = sld [smem:[%s9370_s0 + %s7981_s22]]   ;;  %s7985_s22 = smov 56  }
  0x61   :  { %s8294_s5 = sld [smem:[%s9370_s0 + %s7982_s28]]   ;;  %s7986_s28 = smov 57  }
  0x62   :  { %s8304_s17 = sld [smem:[%s9370_s0 + %s7984_s15]]   ;;  %s7988_s15 = smov 59  }
  0x63   :  { %9437 = sst [smem:[#allocation76_spill]] %s8269_s6 }
  0x64   :  { %9438 = sst [smem:[#allocation77_spill]] %s8279_s21 }
  0x65   :  { %s8299_s21 = sld [smem:[%s9370_s0 + %s7983_s7]]   ;;  %s7987_s7 = smov 58  }
  0x66   :  { %9440 = sst [smem:[#allocation79_spill]] %s8289_s25 }
  0x67   :  { %9441 = sst [smem:[#allocation80_spill]] %s8294_s5 }
  0x68   :  { %9443 = sst [smem:[#allocation82_spill]] %s8304_s17 }
  0x69   :  { %s8309_s25 = sld [smem:[%s9370_s0 + %s7985_s22]]   ;;  %s7989_s22 = smov 60  }
  0x6a   :  { %s8314_s5 = sld [smem:[%s9370_s0 + %s7986_s28]]   ;;  %s7990_s28 = smov 61  }
  0x6b   :  { %9442 = sst [smem:[#allocation81_spill]] %s8299_s21 }
  0x6c   :  { %s8319_s21 = sld [smem:[%s9370_s0 + %s7987_s7]]   ;;  %s7991_s7 = smov 62  }
  0x6d   :  { %s8324_s17 = sld [smem:[%s9370_s0 + %s7988_s15]]   ;;  %s7992_s15 = smov 63  }
  0x6f   :  { %9444 = sst [smem:[#allocation83_spill]] %s8309_s25 }
  0x70   :  { %9445 = sst [smem:[#allocation84_spill]] %s8314_s5 }
  0x71   :  { %s8329_s25 = sld [smem:[%s9370_s0 + %s7989_s22]]   ;;  %s7993_s22 = smov 64  }
  0x72   :  { %9446 = sst [smem:[#allocation85_spill]] %s8319_s21 }
  0x73   :  { %9447 = sst [smem:[#allocation86_spill]] %s8324_s17 }
  0x74   :  { %s8334_s5 = sld [smem:[%s9370_s0 + %s7990_s28]]   ;;  %s7994_s28 = smov 65  }
  0x75   :  { %s8339_s21 = sld [smem:[%s9370_s0 + %s7991_s7]]   ;;  %s7995_s7 = smov 66  }
  0x76   :  { %s8344_s17 = sld [smem:[%s9370_s0 + %s7992_s15]]   ;;  %s7996_s15 = smov 67  }
  0x77   :  { %9448 = sst [smem:[#allocation87_spill]] %s8329_s25 }
  0x78   :  { %s8349_s25 = sld [smem:[%s9370_s0 + %s7993_s22]]   ;;  %s7997_s22 = smov 68  }
  0x79   :  { %s8364_s6 = sld [smem:[%s9370_s0 + %s7996_s15]]  }
  0x7a   :  { %9449 = sst [smem:[#allocation88_spill]] %s8334_s5 }
  0x7b   :  { %9450 = sst [smem:[#allocation89_spill]] %s8339_s21 }
  0x7c   :  { %s8354_s5 = sld [smem:[%s9370_s0 + %s7994_s28]]  }
  0x7d   :  { %s8359_s21 = sld [smem:[%s9370_s0 + %s7995_s7]]  }
  0x7e   :  { %9451 = sst [smem:[#allocation90_spill]] %s8349_s25 }
  0x7f   :  { %s8369_s25 = sld [smem:[%s9370_s0 + %s7997_s22]]  }
  0x80   :  { %143 = vsyncpa [#allocation3], 0 }
  0x81   :  { %144 = vsyncpa [#allocation6], 0 }
  0x82   :  { %145 = vsyncpa [#allocation9], 0 }
  0x83   :  { %146 = vsyncpa [#allocation12], 0 }
  0x84   :  { %147 = vsyncpa [#allocation15], 0 }
  0x85   :  { %148 = vsyncpa [#allocation18], 0 }
  0x86   :  { %149 = vsyncpa [#allocation21], 0 }
  0x87   :  { %150 = vsyncpa [#allocation24], 0 }
  0x88   :  { %151 = vsyncpa [#allocation27], 0 }
  0x89   :  { %152 = vsyncpa [#allocation4], 0  ;;  %s7998_s28 = smov [#allocation5]   ;;  %s7999_s2 = smov [#allocation8]  }
  0x8a   :  { %s233_s1 = sshll.u32 %s7998_s28, 4  ;;  %s253_s7 = sshll.u32 %s7999_s2, 4  ;;  %s234_s1 = int_to_ptr.vmem [resolvable:$true] %s233_s1  ;;  %s254_s7 = int_to_ptr.vmem [resolvable:$true] %s253_s7 }
  0x8b   :  { %s7514_s0 = scalar_lea.hbm %s8194_s27, 16 }
  0x8c   :  { %p7515_p0 = scmp.ne.s32.totalorder %s8194_s27, %s7514_s0  ;;  %p7518_p1 = scmp.lt.u32.totalorder %s7514_s0, %s8194_s27 }
  0x8e   :  { %p7520_p2 = pnand %p7518_p1, %p7515_p0 }
  0x90   :  { %7523 = shalt.err (!%p7520_p2)
}
  0x91   :  { %s7524_s10 = scalar_lea.vmem %s234_s1, 16  ;;  %s7528_s11 = scalar_lea.vmem %s234_s1, 32 }
  0x92   :  { %p7525_p3 = scmp.ne.s32.totalorder %s234_s1, %s7524_s10  ;;  %p7529_p4 = scmp.lt.s32.totalorder %s234_s1, %s234_s1 }
  0x93   :  { %p7530_p5 = scmp.lt.s32.totalorder %s7528_s11, %s7524_s10 }
  0x95   :  { %p7531_p6 = por %p7530_p5, %p7529_p4 }
  0x97   :  { %p7532_p7 = pnand %p7531_p6, %p7525_p3 }
  0x99   :  { %7535 = shalt.err (!%p7532_p7)
}
  0x9a   :  { %236 = dma.hbm_to_vmem [thread:$0]  %s8194_s27, 16, %s234_s1, [#allocation6]  }
  0x9b   :  { %s7536_s15 = scalar_lea.hbm %s8204_s30, 16 }
  0x9c   :  { %p7537_p8 = scmp.ne.s32.totalorder %s8204_s30, %s7536_s15  ;;  %p7540_p9 = scmp.lt.u32.totalorder %s7536_s15, %s8204_s30 }
  0x9e   :  { %p7542_p10 = pnand %p7540_p9, %p7537_p8 }
  0xa0   :  { %7545 = shalt.err (!%p7542_p10)
}
  0xa1   :  { %s7546_s16 = scalar_lea.vmem %s254_s7, 16  ;;  %s7550_s18 = scalar_lea.vmem %s254_s7, 32 }
  0xa2   :  { %p7547_p11 = scmp.ne.s32.totalorder %s254_s7, %s7546_s16  ;;  %p7551_p12 = scmp.lt.s32.totalorder %s254_s7, %s254_s7 }
  0xa3   :  { %p7552_p13 = scmp.lt.s32.totalorder %s7550_s18, %s7546_s16 }
  0xa5   :  { %p7553_p0 = por %p7552_p13, %p7551_p12 }
  0xa7   :  { %p7554_p1 = pnand %p7553_p0, %p7547_p11 }
  0xa9   :  { %7557 = shalt.err (!%p7554_p1)
}
  0xaa   :  { %256 = dma.hbm_to_vmem [thread:$0]  %s8204_s30, 16, %s254_s7, [#allocation9]  }
  0xab   :  { %s8000_s22 = smov [#allocation11]   ;;  %s8001_s23 = smov [#allocation14]  }
  0xac   :  { %s273_s27 = sshll.u32 %s8000_s22, 4  ;;  %s297_s26 = sshll.u32 %s8001_s23, 4  ;;  %s274_s27 = int_to_ptr.vmem [resolvable:$true] %s273_s27  ;;  %s298_s26 = int_to_ptr.vmem [resolvable:$true] %s297_s26 }
  0xad   :  { %s7558_s28 = scalar_lea.hbm %s8214_s24, 16 }
  0xae   :  { %p7559_p2 = scmp.ne.s32.totalorder %s8214_s24, %s7558_s28  ;;  %p7562_p3 = scmp.lt.u32.totalorder %s7558_s28, %s8214_s24 }
  0xb0   :  { %p7564_p4 = pnand %p7562_p3, %p7559_p2 }
  0xb2   :  { %7567 = shalt.err (!%p7564_p4)
}
  0xb3   :  { %s7568_s1 = scalar_lea.vmem %s274_s27, 16  ;;  %s7572_s2 = scalar_lea.vmem %s274_s27, 32 }
  0xb4   :  { %p7569_p5 = scmp.ne.s32.totalorder %s274_s27, %s7568_s1  ;;  %p7573_p6 = scmp.lt.s32.totalorder %s274_s27, %s274_s27 }
  0xb5   :  { %p7574_p7 = scmp.lt.s32.totalorder %s7572_s2, %s7568_s1 }
  0xb7   :  { %p7575_p8 = por %p7574_p7, %p7573_p6 }
  0xb9   :  { %p7576_p9 = pnand %p7575_p8, %p7569_p5 }
  0xbb   :  { %7579 = shalt.err (!%p7576_p9)
}
  0xbc   :  { %276 = dma.hbm_to_vmem [thread:$0]  %s8214_s24, 16, %s274_s27, [#allocation12]  }
  0xbd   :  { %s7580_s30 = scalar_lea.hbm %s8234_s19, 16 }
  0xbe   :  { %p7581_p10 = scmp.ne.s32.totalorder %s8234_s19, %s7580_s30  ;;  %p7584_p11 = scmp.lt.u32.totalorder %s7580_s30, %s8234_s19 }
  0xc0   :  { %p7586_p12 = pnand %p7584_p11, %p7581_p10 }
  0xc2   :  { %7589 = shalt.err (!%p7586_p12)
}
  0xc3   :  { %s7590_s7 = scalar_lea.vmem %s298_s26, 16  ;;  %s7594_s0 = scalar_lea.vmem %s298_s26, 32 }
  0xc4   :  { %p7591_p13 = scmp.ne.s32.totalorder %s298_s26, %s7590_s7  ;;  %p7595_p0 = scmp.lt.s32.totalorder %s298_s26, %s298_s26 }
  0xc5   :  { %p7596_p1 = scmp.lt.s32.totalorder %s7594_s0, %s7590_s7 }
  0xc7   :  { %p7597_p2 = por %p7596_p1, %p7595_p0 }
  0xc9   :  { %p7598_p3 = pnand %p7597_p2, %p7591_p13 }
  0xcb   :  { %7601 = shalt.err (!%p7598_p3)
}
  0xcc   :  { %300 = dma.hbm_to_vmem [thread:$0]  %s8234_s19, 16, %s298_s26, [#allocation15]  }
  0xcd   :  { %s8002_s10 = smov [#allocation17]   ;;  %s8003_s11 = smov [#allocation20]  }
  0xce   :  { %s321_s24 = sshll.u32 %s8002_s10, 4  ;;  %s341_s15 = sshll.u32 %s8003_s11, 4  ;;  %s322_s24 = int_to_ptr.vmem [resolvable:$true] %s321_s24  ;;  %s342_s15 = int_to_ptr.vmem [resolvable:$true] %s341_s15 }
  0xcf   :  { %s7602_s16 = scalar_lea.hbm %s8254_s3, 16 }
  0xd0   :  { %p7603_p4 = scmp.ne.s32.totalorder %s8254_s3, %s7602_s16  ;;  %p7606_p5 = scmp.lt.u32.totalorder %s7602_s16, %s8254_s3 }
  0xd2   :  { %p7608_p6 = pnand %p7606_p5, %p7603_p4 }
  0xd4   :  { %7611 = shalt.err (!%p7608_p6)
}
  0xd5   :  { %s7612_s18 = scalar_lea.vmem %s322_s24, 16  ;;  %s7616_s22 = scalar_lea.vmem %s322_s24, 32 }
  0xd6   :  { %p7613_p7 = scmp.ne.s32.totalorder %s322_s24, %s7612_s18  ;;  %p7617_p8 = scmp.lt.s32.totalorder %s322_s24, %s322_s24 }
  0xd7   :  { %p7618_p9 = scmp.lt.s32.totalorder %s7616_s22, %s7612_s18 }
  0xd9   :  { %p7619_p10 = por %p7618_p9, %p7617_p8 }
  0xdb   :  { %p7620_p11 = pnand %p7619_p10, %p7613_p7 }
  0xdd   :  { %7623 = shalt.err (!%p7620_p11)
}
  0xde   :  { %324 = dma.hbm_to_vmem [thread:$0]  %s8254_s3, 16, %s322_s24, [#allocation18]  }
  0xdf   :  { %s7624_s19 = scalar_lea.hbm %s8264_s14, 16 }
  0xe0   :  { %p7625_p12 = scmp.ne.s32.totalorder %s8264_s14, %s7624_s19  ;;  %p7628_p13 = scmp.lt.u32.totalorder %s7624_s19, %s8264_s14 }
  0xe2   :  { %p7630_p0 = pnand %p7628_p13, %p7625_p12 }
  0xe4   :  { %7633 = shalt.err (!%p7630_p0)
}
  0xe5   :  { %s7634_s27 = scalar_lea.vmem %s342_s15, 16  ;;  %s7638_s23 = scalar_lea.vmem %s342_s15, 32 }
  0xe6   :  { %p7635_p1 = scmp.ne.s32.totalorder %s342_s15, %s7634_s27  ;;  %p7639_p2 = scmp.lt.s32.totalorder %s342_s15, %s342_s15 }
  0xe7   :  { %p7640_p3 = scmp.lt.s32.totalorder %s7638_s23, %s7634_s27 }
  0xe9   :  { %p7641_p4 = por %p7640_p3, %p7639_p2 }
  0xeb   :  { %p7642_p5 = pnand %p7641_p4, %p7635_p1 }
  0xed   :  { %7645 = shalt.err (!%p7642_p5)
}
  0xee   :  { %344 = dma.hbm_to_vmem [thread:$0]  %s8264_s14, 16, %s342_s15, [#allocation21]  }
  0xef   :  { %s8004_s26 = smov [#allocation23]   ;;  %s8005_s28 = smov [#allocation26]  }
  0xf0   :  { %s361_s3 = sshll.u32 %s8004_s26, 4  ;;  %s405_s1 = sshll.u32 %s8005_s28, 4  ;;  %s362_s3 = int_to_ptr.vmem [resolvable:$true] %s361_s3  ;;  %s406_s1 = int_to_ptr.vmem [resolvable:$true] %s405_s1 }
  0xf1   :  { %s7646_s2 = scalar_lea.hbm %s8274_s29, 16 }
  0xf2   :  { %p7647_p6 = scmp.ne.s32.totalorder %s8274_s29, %s7646_s2  ;;  %p7650_p7 = scmp.lt.u32.totalorder %s7646_s2, %s8274_s29 }
  0xf4   :  { %p7652_p8 = pnand %p7650_p7, %p7647_p6 }
  0xf6   :  { %7655 = shalt.err (!%p7652_p8)
}
  0xf7   :  { %s7656_s30 = scalar_lea.vmem %s362_s3, 16  ;;  %s7660_s7 = scalar_lea.vmem %s362_s3, 32 }
  0xf8   :  { %p7657_p9 = scmp.ne.s32.totalorder %s362_s3, %s7656_s30  ;;  %p7661_p10 = scmp.lt.s32.totalorder %s362_s3, %s362_s3 }
  0xf9   :  { %p7662_p11 = scmp.lt.s32.totalorder %s7660_s7, %s7656_s30 }
  0xfb   :  { %p7663_p12 = por %p7662_p11, %p7661_p10 }
  0xfd   :  { %p7664_p13 = pnand %p7663_p12, %p7657_p9 }
  0xff   :  { %7667 = shalt.err (!%p7664_p13)
}
 0x100   :  { %364 = dma.hbm_to_vmem [thread:$0]  %s8274_s29, 16, %s362_s3, [#allocation24]  }
 0x101   :  { %s7668_s14 = scalar_lea.hbm %s8344_s17, 16 }
 0x102   :  { %p7669_p0 = scmp.ne.s32.totalorder %s8344_s17, %s7668_s14  ;;  %p7672_p1 = scmp.lt.u32.totalorder %s7668_s14, %s8344_s17 }
 0x104   :  { %p7674_p2 = pnand %p7672_p1, %p7669_p0 }
 0x106   :  { %7677 = shalt.err (!%p7674_p2)
}
 0x107   :  { %s7678_s0 = scalar_lea.vmem %s406_s1, 16  ;;  %s7682_s10 = scalar_lea.vmem %s406_s1, 32 }
 0x108   :  { %p7679_p3 = scmp.ne.s32.totalorder %s406_s1, %s7678_s0  ;;  %p7683_p4 = scmp.lt.s32.totalorder %s406_s1, %s406_s1 }
 0x109   :  { %p7684_p5 = scmp.lt.s32.totalorder %s7682_s10, %s7678_s0 }
 0x10b   :  { %p7685_p6 = por %p7684_p5, %p7683_p4 }
 0x10d   :  { %p7686_p7 = pnand %p7685_p6, %p7679_p3 }
 0x10f   :  { %7689 = shalt.err (!%p7686_p7)
}
 0x110   :  { %408 = dma.hbm_to_vmem [thread:$0]  %s8344_s17, 16, %s406_s1, [#allocation27]  }
 0x111   :  { %s8006_s24 = smov [#allocation2]   ;;  %s8007_s11 = smov [#allocation7]  }
 0x112   :  { %s221_s29 = sshll.u32 %s8006_s24, 4  ;;  %s243_s15 = sshll.u32 %s8007_s11, 4  ;;  %s222_s29 = int_to_ptr.vmem [resolvable:$true] %s221_s29  ;;  %s244_s15 = int_to_ptr.vmem [resolvable:$true] %s243_s15 }
 0x113   :  { %s7690_s16 = scalar_lea.hbm %s8184_s13, 16 }
 0x114   :  { %p7691_p8 = scmp.ne.s32.totalorder %s8184_s13, %s7690_s16  ;;  %p7694_p9 = scmp.lt.u32.totalorder %s7690_s16, %s8184_s13 }
 0x116   :  { %p7696_p10 = pnand %p7694_p9, %p7691_p8 }
 0x118   :  { %7699 = shalt.err (!%p7696_p10)
}
 0x119   :  { %s7700_s18 = scalar_lea.vmem %s222_s29, 16  ;;  %s7704_s22 = scalar_lea.vmem %s222_s29, 32 }
 0x11a   :  { %p7701_p11 = scmp.ne.s32.totalorder %s222_s29, %s7700_s18  ;;  %p7705_p12 = scmp.lt.s32.totalorder %s222_s29, %s222_s29 }
 0x11b   :  { %p7706_p13 = scmp.lt.s32.totalorder %s7704_s22, %s7700_s18 }
 0x11d   :  { %p7707_p0 = por %p7706_p13, %p7705_p12 }
 0x11f   :  { %p7708_p1 = pnand %p7707_p0, %p7701_p11 }
 0x121   :  { %7711 = shalt.err (!%p7708_p1)
}
 0x122   :  { %224 = dma.hbm_to_vmem [thread:$0]  %s8184_s13, 16, %s222_s29, [#allocation3]  }
 0x123   :  { %s7712_s17 = scalar_lea.hbm %s8199_s9, 16 }
 0x124   :  { %p7713_p2 = scmp.ne.s32.totalorder %s8199_s9, %s7712_s17  ;;  %p7716_p3 = scmp.lt.u32.totalorder %s7712_s17, %s8199_s9 }
 0x126   :  { %p7718_p4 = pnand %p7716_p3, %p7713_p2 }
 0x128   :  { %7721 = shalt.err (!%p7718_p4)
}
 0x129   :  { %s7722_s19 = scalar_lea.vmem %s244_s15, 16  ;;  %s7726_s27 = scalar_lea.vmem %s244_s15, 32 }
 0x12a   :  { %p7723_p5 = scmp.ne.s32.totalorder %s244_s15, %s7722_s19  ;;  %p7727_p6 = scmp.lt.s32.totalorder %s244_s15, %s244_s15 }
 0x12b   :  { %p7728_p7 = scmp.lt.s32.totalorder %s7726_s27, %s7722_s19 }
 0x12d   :  { %p7729_p8 = por %p7728_p7, %p7727_p6 }
 0x12f   :  { %p7730_p9 = pnand %p7729_p8, %p7723_p5 }
 0x131   :  { %7733 = shalt.err (!%p7730_p9)
}
 0x132   :  { %246 = dma.hbm_to_vmem [thread:$0]  %s8199_s9, 16, %s244_s15, [#allocation6]  }
 0x133   :  { %s8008_s23 = smov [#allocation10]   ;;  %s8009_s26 = smov [#allocation13]  }
 0x134   :  { %s263_s13 = sshll.u32 %s8008_s23, 4  ;;  %s285_s3 = sshll.u32 %s8009_s26, 4  ;;  %s264_s13 = int_to_ptr.vmem [resolvable:$true] %s263_s13  ;;  %s286_s3 = int_to_ptr.vmem [resolvable:$true] %s285_s3 }
 0x135   :  { %s7734_s28 = scalar_lea.hbm %s8209_s12, 16 }
 0x136   :  { %p7735_p10 = scmp.ne.s32.totalorder %s8209_s12, %s7734_s28  ;;  %p7738_p11 = scmp.lt.u32.totalorder %s7734_s28, %s8209_s12 }
 0x138   :  { %p7740_p12 = pnand %p7738_p11, %p7735_p10 }
 0x13a   :  { %7743 = shalt.err (!%p7740_p12)
}
 0x13b   :  { %s7744_s1 = scalar_lea.vmem %s264_s13, 16  ;;  %s7748_s2 = scalar_lea.vmem %s264_s13, 32 }
 0x13c   :  { %p7745_p13 = scmp.ne.s32.totalorder %s264_s13, %s7744_s1  ;;  %p7749_p0 = scmp.lt.s32.totalorder %s264_s13, %s264_s13 }
 0x13d   :  { %p7750_p1 = scmp.lt.s32.totalorder %s7748_s2, %s7744_s1 }
 0x13f   :  { %p7751_p2 = por %p7750_p1, %p7749_p0 }
 0x141   :  { %p7752_p3 = pnand %p7751_p2, %p7745_p13 }
 0x143   :  { %7755 = shalt.err (!%p7752_p3)
}
 0x144   :  { %266 = dma.hbm_to_vmem [thread:$0]  %s8209_s12, 16, %s264_s13, [#allocation9]  }
 0x145   :  { %s7756_s9 = scalar_lea.hbm %s8224_s20, 16 }
 0x146   :  { %p7757_p4 = scmp.ne.s32.totalorder %s8224_s20, %s7756_s9  ;;  %p7760_p5 = scmp.lt.u32.totalorder %s7756_s9, %s8224_s20 }
 0x148   :  { %p7762_p6 = pnand %p7760_p5, %p7757_p4 }
 0x14a   :  { %7765 = shalt.err (!%p7762_p6)
}
 0x14b   :  { %s7766_s30 = scalar_lea.vmem %s286_s3, 16  ;;  %s7770_s7 = scalar_lea.vmem %s286_s3, 32 }
 0x14c   :  { %p7767_p7 = scmp.ne.s32.totalorder %s286_s3, %s7766_s30  ;;  %p7771_p8 = scmp.lt.s32.totalorder %s286_s3, %s286_s3 }
 0x14d   :  { %p7772_p9 = scmp.lt.s32.totalorder %s7770_s7, %s7766_s30 }
 0x14f   :  { %p7773_p10 = por %p7772_p9, %p7771_p8 }
 0x151   :  { %p7774_p11 = pnand %p7773_p10, %p7767_p7 }
 0x153   :  { %7777 = shalt.err (!%p7774_p11)
}
 0x154   :  { %288 = dma.hbm_to_vmem [thread:$0]  %s8224_s20, 16, %s286_s3, [#allocation12]  }
 0x155   :  { %s8010_s14 = smov [#allocation16]   ;;  %s8011_s0 = smov [#allocation19]  }
 0x156   :  { %s309_s12 = sshll.u32 %s8010_s14, 4  ;;  %s331_s10 = sshll.u32 %s8011_s0, 4  ;;  %s310_s12 = int_to_ptr.vmem [resolvable:$true] %s309_s12  ;;  %s332_s10 = int_to_ptr.vmem [resolvable:$true] %s331_s10 }
 0x157   :  { %s7778_s24 = scalar_lea.hbm %s8244_s8, 16 }
 0x158   :  { %p7779_p12 = scmp.ne.s32.totalorder %s8244_s8, %s7778_s24  ;;  %p7782_p13 = scmp.lt.u32.totalorder %s7778_s24, %s8244_s8 }
 0x15a   :  { %p7784_p0 = pnand %p7782_p13, %p7779_p12 }
 0x15c   :  { %7787 = shalt.err (!%p7784_p0)
}
 0x15d   :  { %s7788_s29 = scalar_lea.vmem %s310_s12, 16  ;;  %s7792_s11 = scalar_lea.vmem %s310_s12, 32 }
 0x15e   :  { %p7789_p1 = scmp.ne.s32.totalorder %s310_s12, %s7788_s29  ;;  %p7793_p2 = scmp.lt.s32.totalorder %s310_s12, %s310_s12 }
 0x15f   :  { %p7794_p3 = scmp.lt.s32.totalorder %s7792_s11, %s7788_s29 }
 0x161   :  { %p7795_p4 = por %p7794_p3, %p7793_p2 }
 0x163   :  { %p7796_p5 = pnand %p7795_p4, %p7789_p1 }
 0x165   :  { %7799 = shalt.err (!%p7796_p5)
}
 0x166   :  { %312 = dma.hbm_to_vmem [thread:$0]  %s8244_s8, 16, %s310_s12, [#allocation15]  }
 0x167   :  { %s7800_s20 = scalar_lea.hbm %s8259_s4, 16 }
 0x168   :  { %p7801_p6 = scmp.ne.s32.totalorder %s8259_s4, %s7800_s20  ;;  %p7804_p7 = scmp.lt.u32.totalorder %s7800_s20, %s8259_s4 }
 0x16a   :  { %p7806_p8 = pnand %p7804_p7, %p7801_p6 }
 0x16c   :  { %7809 = shalt.err (!%p7806_p8)
}
 0x16d   :  { %s7810_s15 = scalar_lea.vmem %s332_s10, 16  ;;  %s7814_s16 = scalar_lea.vmem %s332_s10, 32 }
 0x16e   :  { %p7811_p9 = scmp.ne.s32.totalorder %s332_s10, %s7810_s15  ;;  %p7815_p10 = scmp.lt.s32.totalorder %s332_s10, %s332_s10 }
 0x16f   :  { %p7816_p11 = scmp.lt.s32.totalorder %s7814_s16, %s7810_s15 }
 0x171   :  { %p7817_p12 = por %p7816_p11, %p7815_p10 }
 0x173   :  { %p7818_p13 = pnand %p7817_p12, %p7811_p9 }
 0x175   :  { %7821 = shalt.err (!%p7818_p13)
}
 0x176   :  { %s9452_s18 = sld [smem:[#allocation76_spill]]  ;;  %s8012_s22 = smov [#allocation22]  }
 0x177   :  { %334 = dma.hbm_to_vmem [thread:$0]  %s8259_s4, 16, %s332_s10, [#allocation18]  }
 0x178   :  { %s351_s8 = sshll.u32 %s8012_s22, 4  ;;  %s8013_s17 = smov [#allocation25]   ;;  %s352_s8 = int_to_ptr.vmem [resolvable:$true] %s351_s8 }
 0x179   :  { %s395_s19 = sshll.u32 %s8013_s17, 4  ;;  %s396_s19 = int_to_ptr.vmem [resolvable:$true] %s395_s19 }
 0x17c   :  { %s7822_s27 = scalar_lea.hbm %s9452_s18, 16 }
 0x17d   :  { %p7823_p0 = scmp.ne.s32.totalorder %s9452_s18, %s7822_s27  ;;  %p7826_p1 = scmp.lt.u32.totalorder %s7822_s27, %s9452_s18 }
 0x17f   :  { %p7828_p2 = pnand %p7826_p1, %p7823_p0 }
 0x181   :  { %7831 = shalt.err (!%p7828_p2)
}
 0x182   :  { %s7832_s23 = scalar_lea.vmem %s352_s8, 16  ;;  %s7836_s13 = scalar_lea.vmem %s352_s8, 32 }
 0x183   :  { %p7833_p3 = scmp.ne.s32.totalorder %s352_s8, %s7832_s23  ;;  %p7837_p4 = scmp.lt.s32.totalorder %s352_s8, %s352_s8 }
 0x184   :  { %p7838_p5 = scmp.lt.s32.totalorder %s7836_s13, %s7832_s23 }
 0x186   :  { %p7839_p6 = por %p7838_p5, %p7837_p4 }
 0x188   :  { %p7840_p7 = pnand %p7839_p6, %p7833_p3 }
 0x18a   :  { %7843 = shalt.err (!%p7840_p7)
}
 0x18b   :  { %s9453_s4 = sld [smem:[#allocation89_spill]] }
 0x18c   :  { %354 = dma.hbm_to_vmem [thread:$0]  %s9452_s18, 16, %s352_s8, [#allocation21]  }
 0x191   :  { %s7844_s26 = scalar_lea.hbm %s9453_s4, 16 }
 0x192   :  { %p7845_p8 = scmp.ne.s32.totalorder %s9453_s4, %s7844_s26  ;;  %p7848_p9 = scmp.lt.u32.totalorder %s7844_s26, %s9453_s4 }
 0x194   :  { %p7850_p10 = pnand %p7848_p9, %p7845_p8 }
 0x196   :  { %7853 = shalt.err (!%p7850_p10)
}
 0x197   :  { %s7854_s3 = scalar_lea.vmem %s396_s19, 16  ;;  %s7858_s28 = scalar_lea.vmem %s396_s19, 32 }
 0x198   :  { %p7855_p11 = scmp.ne.s32.totalorder %s396_s19, %s7854_s3  ;;  %p7859_p12 = scmp.lt.s32.totalorder %s396_s19, %s396_s19 }
 0x199   :  { %p7860_p13 = scmp.lt.s32.totalorder %s7858_s28, %s7854_s3 }
 0x19b   :  { %p7861_p0 = por %p7860_p13, %p7859_p12 }
 0x19d   :  { %p7862_p1 = pnand %p7861_p0, %p7855_p11 }
 0x19f   :  { %7865 = shalt.err (!%p7862_p1)
}
 0x1a0   :  { %398 = dma.hbm_to_vmem [thread:$0]  %s9453_s4, 16, %s396_s19, [#allocation24]  }
 0x1a1   :  { %s8014_s1 = smov [#allocation28]   ;;  %s7866_s9 = scalar_lea.hbm %s8354_s5, 16 }
 0x1a2   :  { %s417_s2 = sshll.u32 %s8014_s1, 4  ;;  %p7867_p2 = scmp.ne.s32.totalorder %s8354_s5, %s7866_s9  ;;  %s418_s2 = int_to_ptr.vmem [resolvable:$true] %s417_s2 }
 0x1a3   :  { %p7870_p3 = scmp.lt.u32.totalorder %s7866_s9, %s8354_s5 }
 0x1a5   :  { %p7872_p4 = pnand %p7870_p3, %p7867_p2 }
 0x1a7   :  { %7875 = shalt.err (!%p7872_p4)
}
 0x1a8   :  { %s7876_s30 = scalar_lea.vmem %s418_s2, 16  ;;  %s7880_s7 = scalar_lea.vmem %s418_s2, 32 }
 0x1a9   :  { %p7877_p5 = scmp.ne.s32.totalorder %s418_s2, %s7876_s30  ;;  %p7881_p6 = scmp.lt.s32.totalorder %s418_s2, %s418_s2 }
 0x1aa   :  { %p7882_p7 = scmp.lt.s32.totalorder %s7880_s7, %s7876_s30 }
 0x1ac   :  { %p7883_p8 = por %p7882_p7, %p7881_p6 }
 0x1ae   :  { %p7884_p9 = pnand %p7883_p8, %p7877_p5 }
 0x1b0   :  { %7887 = shalt.err (!%p7884_p9)
}
 0x1b1   :  { %420 = dma.hbm_to_vmem [thread:$0]  %s8354_s5, 16, %s418_s2, [#allocation27]  }
 0x1b2   :  { %7910 = dma.done.wait [#allocation3], 16  }
 0x1b3   :  { %7911 = vsyncadd [#allocation3], 4294967280 }
 0x1b4   :  { %7912 = dma.done.wait [#allocation6], 32  }
 0x1b5   :  { %7913 = vsyncadd [#allocation6], 4294967264 }
 0x1b6   :  { %7914 = dma.done.wait [#allocation9], 32  }
 0x1b7   :  { %7915 = vsyncadd [#allocation9], 4294967264 }
 0x1b8   :  { %7916 = dma.done.wait [#allocation12], 32  }
 0x1b9   :  { %7917 = vsyncadd [#allocation12], 4294967264 }
 0x1ba   :  { %7918 = dma.done.wait [#allocation15], 32  }
 0x1bb   :  { %7919 = vsyncadd [#allocation15], 4294967264 }
 0x1bc   :  { %7920 = dma.done.wait [#allocation18], 32  }
 0x1bd   :  { %7921 = vsyncadd [#allocation18], 4294967264 }
 0x1be   :  { %7922 = dma.done.wait [#allocation21], 32  }
 0x1bf   :  { %7923 = vsyncadd [#allocation21], 4294967264 }
 0x1c0   :  { %7924 = dma.done.wait [#allocation24], 32  }
 0x1c1   :  { %7925 = vsyncadd [#allocation24], 4294967264 }
 0x1c2   :  { %7926 = dma.done.wait [#allocation27], 32  }
 0x1c3   :  { %7927 = vsyncadd [#allocation27], 4294967264  ;;  %s9454_s14 = sld [smem:[#allocation40_spill]]  ;;  %vm9396_vm0 = vcmask 130048   ;;  %s9455_s5 = sld [smem:[#allocation45_spill]]  ;;  %vm664_vm1 = vcmask 261120  }
 0x1c4   :  { %s9456_s12 = sld [smem:[#allocation43_spill]]  ;;  %s9457_s0 = sld [smem:[#allocation44_spill]]  ;;  %vm8548_vm3 = vmpackc.low %vm664_vm1, %vm664_vm1  ;;  %vm9395_vm13 = vcmask 1043456  }
 0x1c5   :  { %s9458_s10 = sld [smem:[#allocation46_spill]]  ;;  %s9459_s24 = sld [smem:[#allocation49_spill]] }
 0x1c6   :  { %s9460_s29 = sld [smem:[#allocation47_spill]]  ;;  %s9461_s11 = sld [smem:[#allocation48_spill]] }
 0x1c7   :  { %s9462_s20 = sld [smem:[#allocation50_spill]]  ;;  %s9463_s15 = sld [smem:[#allocation53_spill]] }
 0x1c8   :  { %s9464_s16 = sld [smem:[#allocation55_spill]]  ;;  %s9465_s18 = sld [smem:[#allocation57_spill]] }
 0x1c9   :  { %v472_v0 = vld [vmem:[%s9454_s14] sm:$0xff]  ;;  %v474_v1 = vld [vmem:[%s9454_s14 + $0x10] sm:$0xff]  ;;  %v473_v2 = vld [vmem:[%s9454_s14 + $0x8] sm:$0xff]  ;;  %s9466_s22 = sld [smem:[#allocation51_spill]]  ;;  %s9467_s8 = sld [smem:[#allocation52_spill]] }
 0x1ca   :  { %v479_v3 = vsel %vm9396_vm0, %v472_v0, 0.0  ;;  %v485_v4 = vsel %vm9396_vm0, %v474_v1, 0.0  ;;  %v475_v5 = vld [vmem:[%s9454_s14 + $0x18] sm:$0xff]  ;;  %v482_v6 = vsel %vm9396_vm0, %v473_v2, 0.0  ;;  %v552_v28 = vld [vmem:[%s9455_s5] sm:$0xff]  ;;  %v553_v29 = vld [vmem:[%s9455_s5 + $0x8] sm:$0xff] }
 0x1cb   :  { %480 = vadd.xlane.f32.xlu0 %v479_v3  ;;  %486 = vadd.xlane.f32.xlu1 %v485_v4  ;;  %v488_v7 = vsel %vm9396_vm0, %v475_v5, 0.0  ;;  %v6937_v30 = vpack.c.bf16 %v553_v29, %v552_v28  ;;  %v5975_v44 = vld [vmem:[%s9456_s12] ss:$0 sm:$0xff]  ;;  %s9468_s17 = sld [smem:[#allocation56_spill]]  ;;  %s9469_s19 = sld [smem:[#allocation54_spill]] }
 0x1cc   :  { %v5976_v46 = vld [vmem:[%s9457_s0] ss:$0 sm:$0xff]  ;;  %s9470_s27 = sld [smem:[#allocation58_spill]]  ;;  %s9479_s23 = sld [smem:[#allocation59_spill]] }
 0x1cd   :  { %6938 = vmatprep.subr.bf16.mxu0 %v6937_v30  ;;  %v5977_v61 = vld [vmem:[%s9458_s10] ss:$0 sm:$0xff]  ;;  %s9480_s13 = sld [smem:[#allocation61_spill]]  ;;  %s9481_s4 = sld [smem:[#allocation62_spill]] }
 0x1ce   :  { %6940 = vmatpush3.bf16.msra.mxu0 %v6937_v30  ;;  %s9482_s26 = sld [smem:[#allocation65_spill]]  ;;  %s9483_s3 = sld [smem:[#allocation60_spill]] }
 0x1cf   :  { %483 = vadd.xlane.f32.xlu0 %v482_v6  ;;  %489 = vadd.xlane.f32.xlu1 %v488_v7  ;;  %s9484_s28 = sld [smem:[#allocation66_spill]]  ;;  %s9485_s1 = sld [smem:[#allocation68_spill]] }
 0x1d0   :  { %s9486_s2 = sld [smem:[#allocation70_spill]]  ;;  %s9487_s9 = sld [smem:[#allocation63_spill]] }
 0x1d1   :  { %s9488_s30 = sld [smem:[#allocation64_spill]]  ;;  %s9489_s7 = sld [smem:[#allocation67_spill]] }
 0x1d2   :  { %s9490_s14 = sld [smem:[#allocation69_spill]]  ;;  %s9492_s5 = sld [smem:[#allocation71_spill]] }
 0x1d3   :  { %s9493_s12 = sld [smem:[#allocation42_spill]]  ;;  %s9494_s0 = sld [smem:[#allocation77_spill]] }
 0x1d4   :  { %s9501_s10 = sld [smem:[#allocation80_spill]] }
 0x258   :  { %v481_v8 = vpop.xlane.xlu0 %480  ;;  %v487_v9 = vpop.xlane.xlu1 %486 }
 0x259   :  { %v492_v10 = vmul.f32 0.0625, %v481_v8  ;;  %v494_v11 = vmul.f32 0.0625, %v487_v9 }
 0x25b   :  { %v496_v12 = vsub.f32 %v472_v0, %v492_v10  ;;  %v498_v13 = vsub.f32 %v474_v1, %v494_v11 }
 0x25c   :  { %v484_v14 = vpop.xlane.xlu0 %483  ;;  %v490_v15 = vpop.xlane.xlu1 %489 }
 0x25d   :  { %v493_v16 = vmul.f32 0.0625, %v484_v14  ;;  %v495_v17 = vmul.f32 0.0625, %v490_v15  ;;  %v500_v18 = vmul.f32 %v496_v12, %v496_v12  ;;  %v502_v19 = vmul.f32 %v498_v13, %v498_v13 }
 0x25f   :  { %v497_v20 = vsub.f32 %v473_v2, %v493_v16  ;;  %v499_v21 = vsub.f32 %v475_v5, %v495_v17  ;;  %v504_v22 = vsel %vm9396_vm0, %v500_v18, 0.0  ;;  %v510_v23 = vsel %vm9396_vm0, %v502_v19, 0.0 }
 0x260   :  { %505 = vadd.xlane.f32.xlu0 %v504_v22 }
 0x261   :  { %v501_v24 = vmul.f32 %v497_v20, %v497_v20  ;;  %v503_v25 = vmul.f32 %v499_v21, %v499_v21 }
 0x263   :  { %v507_v26 = vsel %vm9396_vm0, %v501_v24, 0.0  ;;  %v513_v27 = vsel %vm9396_vm0, %v503_v25, 0.0 }
 0x264   :  { %511 = vadd.xlane.f32.xlu0 %v510_v23  ;;  %508 = vadd.xlane.f32.xlu1 %v507_v26 }
 0x268   :  { %514 = vadd.xlane.f32.xlu1 %v513_v27 }
 0x2ed   :  { %v506_v31 = vpop.xlane.xlu0 %505 }
 0x2ee   :  { %v516_v32 = vmul.f32 0.0625, %v506_v31 }
 0x2f0   :  { %v520_v33 = vadd.f32 1e-05, %v516_v32 }
 0x2f1   :  { %v509_v34 = vpop.xlane.xlu1 %508  ;;  %v512_v35 = vpop.xlane.xlu0 %511 }
 0x2f2   :  { %7334 = vrsqrt.f32 %v520_v33  ;;  %v517_v36 = vmul.f32 0.0625, %v509_v34  ;;  %v518_v37 = vmul.f32 0.0625, %v512_v35  ;;  %v738_v34 = vld [vmem:[%s9459_s24] sm:$0xff]  ;;  %v739_v35 = vld [vmem:[%s9459_s24 + $0x8] sm:$0xff] }
 0x2f4   :  { %v521_v38 = vadd.f32 1e-05, %v517_v36  ;;  %v522_v39 = vadd.f32 1e-05, %v518_v37  ;;  %v740_v36 = vld [vmem:[%s9459_s24 + $0x10] sm:$0xff]  ;;  %v6941_v37 = vpack.c.bf16 %v739_v35, %v738_v34 }
 0x2f5   :  { %v515_v40 = vpop.xlane.xlu1 %514 }
 0x2f6   :  { %7336 = vrsqrt.f32 %v521_v38  ;;  %v519_v41 = vmul.f32 0.0625, %v515_v40  ;;  %v741_v38 = vld [vmem:[%s9459_s24 + $0x18] sm:$0xff]  ;;  %6942 = vmatprep.subr.bf16.mxu1 %v6941_v37  ;;  %s9503_s24 = sld [smem:[#allocation41_spill]] }
 0x2f7   :  { %7338 = vrsqrt.f32 %v522_v39  ;;  %v6945_v39 = vpack.c.bf16 %v741_v38, %v740_v36  ;;  %6944 = vmatpush3.bf16.msra.mxu1 %v6941_v37 }
 0x2f8   :  { %v523_v42 = vadd.f32 1e-05, %v519_v41 }
 0x2f9   :  { %6946 = vmatprep.subr.bf16.mxu1 %v6945_v39 }
 0x2fa   :  { %7340 = vrsqrt.f32 %v523_v42 }
 0x2fb   :  { %6948 = vmatpush3.bf16.msra.mxu1 %v6945_v39 }
 0x2fc   :  { %v7335_v43 = vpop.eup %7334 }
 0x2fd   :  { %v528_v45 = vmul.f32 %v7335_v43, %v496_v12 }
 0x2ff   :  { %v538_v47 = vmul.f32 %v5975_v44, %v528_v45 }
 0x300   :  { %v7337_v48 = vpop.eup %7336 }
 0x301   :  { %v7339_v49 = vpop.eup %7338  ;;  %v548_v50 = vadd.f32 %v5976_v46, %v538_v47  ;;  %v529_v51 = vmul.f32 %v7337_v48, %v497_v20 }
 0x302   :  { %v530_v52 = vmul.f32 %v7339_v49, %v498_v13 }
 0x303   :  { %6438 = vmatprep.mubr.msk.f32.mxu0 %vm9396_vm0, %v548_v50  ;;  %v539_v53 = vmul.f32 %v5975_v44, %v529_v51 }
 0x304   :  { %v7341_v54 = vpop.eup %7340  ;;  %v540_v55 = vmul.f32 %v5975_v44, %v530_v52 }
 0x305   :  { %v549_v56 = vadd.f32 %v5976_v46, %v539_v53  ;;  %v531_v57 = vmul.f32 %v7341_v54, %v499_v21  ;;  %v5982_v53 = vld [vmem:[%s9460_s29] ss:$0 sm:$0xff]  ;;  %s9504_s29 = sld [smem:[#allocation81_spill]] }
 0x306   :  { %v550_v58 = vadd.f32 %v5976_v46, %v540_v55 }
 0x307   :  { %6439 = vmatmul.mubr.msk.f32.vlgmr.msra.gmra.mrb[0].mxu0 %vm9396_vm0, %v549_v56  ;;  %v541_v59 = vmul.f32 %v5975_v44, %v531_v57  ;;  %v5983_v57 = vld [vmem:[%s9461_s11] ss:$0 sm:$0xff]  ;;  %s9506_s11 = sld [smem:[#allocation82_spill]] }
 0x308   :  { %6441 = vmatprep.mubr.msk.f32.mxu0 %vm9396_vm0, %v550_v58 }
 0x309   :  { %v551_v60 = vadd.f32 %v5976_v46, %v541_v59 }
 0x30b   :  { %6442 = vmatmul.mubr.msk.f32.gmra.mrb[2].mxu0 %vm9396_vm0, %v551_v60 }
 0x3da   :  { %v6440_v62 = vpop.f32.mrb[0].mxu0 }
 0x3db   :  { %v645_v63 = vadd.f32 %v6440_v62, %v5977_v61  ;;  %v639_v0 = vpop.f32.mrb[1].mxu0 }
 0x3dc   :  { %v640_v1 = vadd.f32 %v5977_v61, %v639_v0 }
 0x3dd   :  { %v659_v2 = vmax.f32 %v645_v63, 0.0 }
 0x3de   :  { %v658_v3 = vmax.f32 %v640_v1, 0.0  ;;  %v6443_v4 = vpop.f32.mrb[2].mxu0 }
 0x3df   :  { %v655_v5 = vadd.f32 %v6443_v4, %v5977_v61  ;;  %v649_v6 = vpop.f32.mrb[3].mxu0  ;;  %v668_v7 = vsel %vm664_vm1, %v659_v2, 0.0 }
 0x3e0   :  { %v650_v8 = vadd.f32 %v5977_v61, %v649_v6  ;;  %669 = vadd.xlane.f32.xlu1 %v668_v7  ;;  %v665_v9 = vsel %vm664_vm1, %v658_v3, 0.0  ;;  %v5984_v6 = vld [vmem:[%s9462_s20] ss:$0 sm:$0xff]  ;;  %s9507_s20 = sld [smem:[#allocation78_spill]] }
 0x3e1   :  { %v661_v10 = vmax.f32 %v655_v5, 0.0  ;;  %666 = vadd.xlane.f32.xlu0 %v665_v9 }
 0x3e2   :  { %v660_v11 = vmax.f32 %v650_v8, 0.0 }
 0x3e3   :  { %v674_v12 = vsel %vm664_vm1, %v661_v10, 0.0 }
 0x3e4   :  { %675 = vadd.xlane.f32.xlu1 %v674_v12  ;;  %v671_v13 = vsel %vm664_vm1, %v660_v11, 0.0 }
 0x3e5   :  { %672 = vadd.xlane.f32.xlu0 %v671_v13 }
 0x46d   :  { %v670_v14 = vpop.xlane.xlu1 %669 }
 0x46e   :  { %v679_v15 = vmul.f32 0.03125, %v670_v14  ;;  %v667_v16 = vpop.xlane.xlu0 %666 }
 0x46f   :  { %v678_v17 = vmul.f32 0.03125, %v667_v16 }
 0x470   :  { %v683_v18 = vsub.f32 %v659_v2, %v679_v15 }
 0x471   :  { %v682_v19 = vsub.f32 %v658_v3, %v678_v17  ;;  %v676_v20 = vpop.xlane.xlu1 %675 }
 0x472   :  { %v681_v21 = vmul.f32 0.03125, %v676_v20  ;;  %v673_v22 = vpop.xlane.xlu0 %672  ;;  %v687_v23 = vmul.f32 %v683_v18, %v683_v18 }
 0x473   :  { %v680_v24 = vmul.f32 0.03125, %v673_v22  ;;  %v686_v25 = vmul.f32 %v682_v19, %v682_v19 }
 0x474   :  { %v685_v26 = vsub.f32 %v661_v10, %v681_v21  ;;  %v693_v27 = vsel %vm664_vm1, %v687_v23, 0.0 }
 0x475   :  { %v684_v28 = vsub.f32 %v660_v11, %v680_v24  ;;  %694 = vadd.xlane.f32.xlu1 %v693_v27  ;;  %v690_v29 = vsel %vm664_vm1, %v686_v25, 0.0 }
 0x476   :  { %691 = vadd.xlane.f32.xlu0 %v690_v29  ;;  %v689_v30 = vmul.f32 %v685_v26, %v685_v26 }
 0x477   :  { %v688_v31 = vmul.f32 %v684_v28, %v684_v28 }
 0x478   :  { %v699_v32 = vsel %vm664_vm1, %v689_v30, 0.0 }
 0x479   :  { %700 = vadd.xlane.f32.xlu1 %v699_v32  ;;  %v696_v33 = vsel %vm664_vm1, %v688_v31, 0.0 }
 0x47a   :  { %697 = vadd.xlane.f32.xlu0 %v696_v33 }
 0x502   :  { %v695_v40 = vpop.xlane.xlu1 %694 }
 0x503   :  { %v703_v41 = vmul.f32 0.03125, %v695_v40  ;;  %v692_v42 = vpop.xlane.xlu0 %691 }
 0x504   :  { %v702_v43 = vmul.f32 0.03125, %v692_v42 }
 0x505   :  { %v707_v44 = vadd.f32 1e-05, %v703_v41 }
 0x506   :  { %v706_v45 = vadd.f32 1e-05, %v702_v43  ;;  %v701_v46 = vpop.xlane.xlu1 %700  ;;  %v924_v43 = vld [vmem:[%s9463_s15] sm:$0xff] }
 0x507   :  { %7342 = vrsqrt.f32 %v707_v44  ;;  %v705_v47 = vmul.f32 0.03125, %v701_v46  ;;  %v698_v48 = vpop.xlane.xlu0 %697  ;;  %v925_v44 = vld [vmem:[%s9463_s15 + $0x8] sm:$0xff] }
 0x508   :  { %7344 = vrsqrt.f32 %v706_v45  ;;  %v704_v49 = vmul.f32 0.03125, %v698_v48  ;;  %v929_v45 = vld [vmem:[%s9464_s16] sm:$0xff]  ;;  %v6949_v46 = vpack.c.bf16 %v925_v44, %v924_v43 }
 0x509   :  { %v709_v50 = vadd.f32 1e-05, %v705_v47  ;;  %v930_v47 = vld [vmem:[%s9464_s16 + $0x8] sm:$0xff] }
 0x50a   :  { %v708_v51 = vadd.f32 1e-05, %v704_v49  ;;  %v6957_v48 = vpack.c.bf16 %v930_v47, %v929_v45  ;;  %v926_v49 = vld [vmem:[%s9463_s15 + $0x10] sm:$0xff]  ;;  %6950 = vmatprep.subr.bf16.mxu0 %v6949_v46 }
 0x50b   :  { %7346 = vrsqrt.f32 %v709_v50  ;;  %v927_v50 = vld [vmem:[%s9463_s15 + $0x18] sm:$0xff]  ;;  %6952 = vmatpush3.bf16.msra.mxu0 %v6949_v46  ;;  %s9508_s15 = sld [smem:[#allocation79_spill]] }
 0x50c   :  { %7348 = vrsqrt.f32 %v708_v51  ;;  %v931_v51 = vld [vmem:[%s9464_s16 + $0x10] sm:$0xff]  ;;  %6958 = vmatprep.subr.bf16.mxu1 %v6957_v48 }
 0x511   :  { %v7343_v52 = vpop.eup %7342 }
 0x512   :  { %v7345_v54 = vpop.eup %7344  ;;  %v715_v55 = vmul.f32 %v7343_v52, %v683_v18  ;;  %v6953_v52 = vpack.c.bf16 %v927_v50, %v926_v49  ;;  %v6001_v49 = vld [vmem:[%s9470_s27] ss:$0 sm:$0xff]  ;;  %s9515_s27 = sld [smem:[#allocation72_spill]] }
 0x513   :  { %v714_v56 = vmul.f32 %v7345_v54, %v682_v19 }
 0x514   :  { %v725_v58 = vmul.f32 %v5982_v53, %v715_v55  ;;  %6954 = vmatprep.subr.bf16.mxu0 %v6953_v52  ;;  %v934_v55 = vld [vmem:[%s9465_s18] sm:$0xff] }
 0x515   :  { %v7347_v59 = vpop.eup %7346  ;;  %v724_v60 = vmul.f32 %v5982_v53, %v714_v56  ;;  %6956 = vmatpush3.bf16.msra.mxu0 %v6953_v52  ;;  %v935_v56 = vld [vmem:[%s9465_s18 + $0x8] sm:$0xff] }
 0x516   :  { %v7349_v61 = vpop.eup %7348  ;;  %v717_v62 = vmul.f32 %v7347_v59, %v685_v26  ;;  %v735_v1 = vadd.f32 %v5983_v57, %v725_v58 }
 0x517   :  { %v734_v63 = vadd.f32 %v5983_v57, %v724_v60  ;;  %v716_v0 = vmul.f32 %v7349_v61, %v684_v28 }
 0x518   :  { %v727_v2 = vmul.f32 %v5982_v53, %v717_v62 }
 0x519   :  { %6452 = vmatprep.mubr.msk.f32.mxu1 %vm664_vm1, %v734_v63  ;;  %v726_v3 = vmul.f32 %v5982_v53, %v716_v0  ;;  %v932_v53 = vld [vmem:[%s9464_s16 + $0x18] sm:$0xff]  ;;  %s9509_s16 = sld [smem:[#allocation83_spill]] }
 0x51a   :  { %6453 = vmatmul.mubr.msk.f32.vlgmr.msra.gmra.mrb[0].mxu1 %vm664_vm1, %v735_v1  ;;  %v737_v5 = vadd.f32 %v5983_v57, %v727_v2  ;;  %v6961_v54 = vpack.c.bf16 %v932_v53, %v931_v51 }
 0x51b   :  { %v736_v4 = vadd.f32 %v5983_v57, %v726_v3  ;;  %6960 = vmatpush3.bf16.msra.mxu1 %v6957_v48  ;;  %v6965_v57 = vpack.c.bf16 %v935_v56, %v934_v55 }
 0x51c   :  { %6962 = vmatprep.subr.bf16.mxu1 %v6961_v54 }
 0x51d   :  { %6455 = vmatprep.mubr.msk.f32.mxu1 %vm664_vm1, %v736_v4  ;;  %6966 = vmatprep.subr.bf16.mxu0 %v6965_v57 }
 0x51e   :  { %6456 = vmatmul.mubr.msk.f32.gmra.mrb[2].mxu1 %vm664_vm1, %v737_v5 }
 0x51f   :  { %6964 = vmatpush3.bf16.msra.mxu1 %v6961_v54 }
 0x5ed   :  { %v6454_v7 = vpop.f32.mrb[0].mxu1 }
 0x5ee   :  { %v833_v8 = vadd.f32 %v6454_v7, %v5984_v6  ;;  %v827_v9 = vpop.f32.mrb[1].mxu1  ;;  %v5989_v7 = vld [vmem:[%s9466_s22] ss:$0 sm:$0xff]  ;;  %s9511_s22 = sld [smem:[#allocation84_spill]] }
 0x5ef   :  { %v828_v10 = vadd.f32 %v5984_v6, %v827_v9 }
 0x5f0   :  { %v847_v11 = vmax.f32 %v833_v8, 0.0 }
 0x5f1   :  { %v846_v12 = vmax.f32 %v828_v10, 0.0  ;;  %v6457_v13 = vpop.f32.mrb[2].mxu1 }
 0x5f2   :  { %v843_v14 = vadd.f32 %v6457_v13, %v5984_v6  ;;  %v837_v15 = vpop.f32.mrb[3].mxu1  ;;  %v855_v16 = vsel %vm664_vm1, %v847_v11, 0.0 }
 0x5f3   :  { %v838_v17 = vadd.f32 %v5984_v6, %v837_v15  ;;  %856 = vadd.xlane.f32.xlu1 %v855_v16  ;;  %v852_v18 = vsel %vm664_vm1, %v846_v12, 0.0  ;;  %v936_v15 = vld [vmem:[%s9465_s18 + $0x10] sm:$0xff]  ;;  %v937_v16 = vld [vmem:[%s9465_s18 + $0x18] sm:$0xff]  ;;  %s9510_s18 = sld [smem:[#allocation86_spill]] }
 0x5f4   :  { %v849_v19 = vmax.f32 %v843_v14, 0.0  ;;  %853 = vadd.xlane.f32.xlu0 %v852_v18 }
 0x5f5   :  { %v848_v20 = vmax.f32 %v838_v17, 0.0 }
 0x5f6   :  { %v861_v21 = vsel %vm664_vm1, %v849_v19, 0.0 }
 0x5f7   :  { %862 = vadd.xlane.f32.xlu1 %v861_v21  ;;  %v858_v22 = vsel %vm664_vm1, %v848_v20, 0.0 }
 0x5f8   :  { %859 = vadd.xlane.f32.xlu0 %v858_v22 }
 0x680   :  { %v857_v23 = vpop.xlane.xlu1 %856 }
 0x681   :  { %v865_v24 = vmul.f32 0.03125, %v857_v23  ;;  %v854_v25 = vpop.xlane.xlu0 %853  ;;  %v6969_v23 = vpack.c.bf16 %v937_v16, %v936_v15 }
 0x682   :  { %v864_v26 = vmul.f32 0.03125, %v854_v25 }
 0x683   :  { %v8483_v27 = vsub.f32 %v847_v11, %v865_v24  ;;  %v5990_v11 = vld [vmem:[%s9467_s8] ss:$0 sm:$0xff]  ;;  %s9512_s8 = sld [smem:[#allocation87_spill]] }
 0x684   :  { %v8485_v28 = vsub.f32 %v846_v12, %v864_v26  ;;  %v863_v29 = vpop.xlane.xlu1 %862 }
 0x685   :  { %v867_v30 = vmul.f32 0.03125, %v863_v29  ;;  %v860_v31 = vpop.xlane.xlu0 %859  ;;  %v873_v32 = vmul.f32 %v8483_v27, %v8483_v27  ;;  %v5996_v29 = vld [vmem:[%s9468_s17] ss:$0 sm:$0xff]  ;;  %s9513_s17 = sld [smem:[#allocation88_spill]] }
 0x686   :  { %v866_v33 = vmul.f32 0.03125, %v860_v31  ;;  %v872_v34 = vmul.f32 %v8485_v28, %v8485_v28 }
 0x687   :  { %v8491_v35 = vsub.f32 %v849_v19, %v867_v30  ;;  %v879_v36 = vsel %vm664_vm1, %v873_v32, 0.0  ;;  %v5991_v30 = vld [vmem:[%s9469_s19] ss:$0 sm:$0xff]  ;;  %s9514_s19 = sld [smem:[#allocation85_spill]] }
 0x688   :  { %v8494_v37 = vsub.f32 %v848_v20, %v866_v33  ;;  %880 = vadd.xlane.f32.xlu1 %v879_v36  ;;  %v876_v38 = vsel %vm664_vm1, %v872_v34, 0.0  ;;  %v8015_v33 = vmov 0.0  }
 0x689   :  { %877 = vadd.xlane.f32.xlu0 %v876_v38  ;;  %v875_v39 = vmul.f32 %v8491_v35, %v8491_v35 }
 0x68a   :  { %v874_v40 = vmul.f32 %v8494_v37, %v8494_v37 }
 0x68b   :  { %v885_v41 = vsel %vm664_vm1, %v875_v39, 0.0 }
 0x68c   :  { %886 = vadd.xlane.f32.xlu1 %v885_v41  ;;  %v882_v42 = vsel %vm664_vm1, %v874_v40, 0.0 }
 0x68d   :  { %883 = vadd.xlane.f32.xlu0 %v882_v42 }
 0x715   :  { %v881_v58 = vpop.xlane.xlu1 %880 }
 0x716   :  { %v889_v59 = vmul.f32 0.03125, %v881_v58  ;;  %v878_v60 = vpop.xlane.xlu0 %877 }
 0x717   :  { %v888_v61 = vmul.f32 0.03125, %v878_v60 }
 0x718   :  { %v893_v62 = vadd.f32 1e-05, %v889_v59 }
 0x719   :  { %v892_v63 = vadd.f32 1e-05, %v888_v61  ;;  %v887_v0 = vpop.xlane.xlu1 %886 }
 0x71a   :  { %7350 = vrsqrt.f32 %v893_v62  ;;  %v891_v1 = vmul.f32 0.03125, %v887_v0  ;;  %v884_v2 = vpop.xlane.xlu0 %883 }
 0x71b   :  { %7352 = vrsqrt.f32 %v892_v63  ;;  %v890_v3 = vmul.f32 0.03125, %v884_v2 }
 0x71c   :  { %v895_v4 = vadd.f32 1e-05, %v891_v1 }
 0x71d   :  { %v894_v5 = vadd.f32 1e-05, %v890_v3 }
 0x71e   :  { %7354 = vrsqrt.f32 %v895_v4 }
 0x71f   :  { %7356 = vrsqrt.f32 %v894_v5  ;;  %v8016_v5 = vmov -1e+30  }
 0x724   :  { %v7351_v6 = vpop.eup %7350 }
 0x725   :  { %v7353_v8 = vpop.eup %7352  ;;  %v901_v9 = vmul.f32 %v7351_v6, %v8483_v27  ;;  %v1233_v27 = vlaneseq }
 0x726   :  { %v900_v10 = vmul.f32 %v7353_v8, %v8485_v28 }
 0x727   :  { %v911_v12 = vmul.f32 %v5989_v7, %v901_v9  ;;  %v8534_v28 = vand.u32 127, %v1233_v27 }
 0x728   :  { %v7355_v13 = vpop.eup %7354  ;;  %v910_v14 = vmul.f32 %v5989_v7, %v900_v10 }
 0x729   :  { %v7357_v17 = vpop.eup %7356  ;;  %v903_v18 = vmul.f32 %v7355_v13, %v8491_v35  ;;  %v921_v21 = vadd.f32 %v5990_v11, %v911_v12  ;;  %vm9399_vm2 = vcmp.lt.s32.totalorder %v8534_v28, 8  ;;  %vm9398_vm4 = vcmp.ge.s32.totalorder %v8534_v28, 8 }
 0x72a   :  { %v920_v19 = vadd.f32 %v5990_v11, %v910_v14  ;;  %v902_v20 = vmul.f32 %v7357_v17, %v8494_v37  ;;  %v8542_v34 = vsel %vm9399_vm2, 1.0, %v8015_v33  ;;  %vm9397_vm5 = vcmp.lt.s32.totalorder %v8534_v28, 16 }
 0x72b   :  { %v913_v22 = vmul.f32 %v5989_v7, %v903_v18  ;;  %vm8611_vm6 = vmand %vm9398_vm4, %vm9397_vm5  ;;  %vm1317_vm7 = vcmp.ge.s32.totalorder %v8534_v28, 24  ;;  %vm1318_vm8 = vcmp.lt.s32.totalorder %v8534_v28, 32  ;;  %v8625_v9 = vsel %vm9399_vm2, 0.0, %v8016_v5 }
 0x72c   :  { %6466 = vmatprep.mubr.msk.f32.mxu0 %vm664_vm1, %v920_v19  ;;  %6480 = vmatprep.mubr.msk.f32.mxu1 %vm664_vm1, %v920_v19  ;;  %v912_v24 = vmul.f32 %v5989_v7, %v902_v20  ;;  %v8618_v6 = vsel %vm8611_vm6, 0.0, %v8016_v5  ;;  %vm1294_vm9 = vcmp.ge.s32.totalorder %v8534_v28, 16  ;;  %vm1295_vm10 = vcmp.lt.s32.totalorder %v8534_v28, 24  ;;  %vm8630_vm11 = vmand %vm1317_vm7, %vm1318_vm8 }
 0x72d   :  { %6467 = vmatmul.mubr.msk.f32.vlgmr.msra.gmra.mrb[4].mxu0 %vm664_vm1, %v921_v21  ;;  %6481 = vmatmul.mubr.msk.f32.vlgmr.msra.gmra.mrb[4].mxu1 %vm664_vm1, %v921_v21  ;;  %v923_v26 = vadd.f32 %v5990_v11, %v913_v22  ;;  %v8638_v15 = vsel %vm8630_vm11, 0.0, %v8016_v5  ;;  %vm8640_vm12 = vmand %vm1294_vm9, %vm1295_vm10  ;;  %vm9400_vm7 = vcmask 31744  }
 0x72e   :  { %6968 = vmatpush3.bf16.msra.mxu0 %v6965_v57  ;;  %v922_v25 = vadd.f32 %v5990_v11, %v912_v24  ;;  %v8648_v20 = vsel %vm8640_vm12, 0.0, %v8016_v5 }
 0x72f   :  { %6970 = vmatprep.subr.bf16.mxu0 %v6969_v23 }
 0x730   :  { %6469 = vmatprep.mubr.msk.f32.mxu0 %vm664_vm1, %v922_v25  ;;  %6483 = vmatprep.mubr.msk.f32.mxu1 %vm664_vm1, %v922_v25 }
 0x731   :  { %6470 = vmatmul.mubr.msk.f32.gmra.mrb[6].mxu0 %vm664_vm1, %v923_v26  ;;  %6484 = vmatmul.mubr.msk.f32.gmra.mrb[6].mxu1 %vm664_vm1, %v923_v26 }
 0x732   :  { %6972 = vmatpush3.bf16.msra.mxu0 %v6969_v23  ;;  %6494 = vmatprep.mubr.msk.f32.mxu0 %vm664_vm1, %v920_v19 }
 0x735   :  { %6495 = vmatmul.mubr.msk.f32.vlgmr.msra.gmra.mrb[8].mxu0 %vm664_vm1, %v921_v21 }
 0x736   :  { %6497 = vmatprep.mubr.msk.f32.mxu0 %vm664_vm1, %v922_v25 }
 0x739   :  { %6498 = vmatmul.mubr.msk.f32.gmra.mrb[10].mxu0 %vm664_vm1, %v923_v26 }
 0x800   :  { %v6468_v31 = vpop.f32.mrb[4].mxu0  ;;  %v6482_v32 = vpop.f32.mrb[4].mxu1 }
 0x801   :  { %v1129_v35 = vadd.f32 %v6482_v32, %v5996_v29  ;;  %v1032_v36 = vpop.f32.mrb[5].mxu0  ;;  %v1123_v37 = vpop.f32.mrb[5].mxu1  ;;  %v8576_v60 = vadd.f32 %v6468_v31, %v5991_v30 }
 0x802   :  { %v8544_v38 = vadd.f32 %v5991_v30, %v1032_v36  ;;  %v1124_v39 = vadd.f32 %v5996_v29, %v1123_v37 }
 0x803   :  { %v1335_v63 = vmul.f32 %v8542_v34, %v8576_v60 }
 0x804   :  { %v8552_v41 = vpack.c.bf16 %v1129_v35, %v1124_v39  ;;  %v6471_v42 = vpop.f32.mrb[6].mxu0  ;;  %v6485_v43 = vpop.f32.mrb[6].mxu1  ;;  %v1334_v44 = vmul.f32 %v8542_v34, %v8544_v38 }
 0x805   :  { %v1139_v45 = vadd.f32 %v6485_v43, %v5996_v29  ;;  %v1042_v46 = vpop.f32.mrb[7].mxu0  ;;  %v1133_v47 = vpop.f32.mrb[7].mxu1  ;;  %v8587_v0 = vadd.f32 %v6471_v42, %v5991_v30 }
 0x806   :  { %v1134_v48 = vadd.f32 %v5996_v29, %v1133_v47  ;;  %6975 = vmatprep.subr.msk.bf16.mxu1 %vm8548_vm3, %v8552_v41  ;;  %6508 = vmatprep.mubr.msk.f32.mxu1 %vm664_vm1, %v1334_v44  ;;  %v8581_v62 = vadd.f32 %v5991_v30, %v1042_v46 }
 0x807   :  { %6978 = vmatpush3.bf16.xpose.msk.msra.mxu1 %vm8548_vm3, %v8552_v41  ;;  %v1337_v2 = vmul.f32 %v8542_v34, %v8587_v0 }
 0x808   :  { %v8564_v50 = vpack.c.bf16 %v1139_v45, %v1134_v48  ;;  %v6496_v51 = vpop.f32.mrb[8].mxu0  ;;  %v1336_v1 = vmul.f32 %v8542_v34, %v8581_v62 }
 0x809   :  { %v1220_v52 = vadd.f32 %v6496_v51, %v6001_v49  ;;  %v1214_v53 = vpop.f32.mrb[9].mxu0 }
 0x80a   :  { %v1215_v54 = vadd.f32 %v6001_v49, %v1214_v53  ;;  %6981 = vmatprep.subr.msk.bf16.mxu1 %vm8548_vm3, %v8564_v50 }
 0x80c   :  { %v8569_v55 = vpack.c.bf16 %v1220_v52, %v1215_v54  ;;  %v6499_v56 = vpop.f32.mrb[10].mxu0 }
 0x80d   :  { %v1230_v57 = vadd.f32 %v6499_v56, %v6001_v49  ;;  %v1224_v58 = vpop.f32.mrb[11].mxu0 }
 0x80e   :  { %v1225_v59 = vadd.f32 %v6001_v49, %v1224_v58  ;;  %6986 = vmatprep.subr.bf16.mxu0 %v8569_v55 }
 0x80f   :  { %6984 = vmatpush3.bf16.xpose.msk.msra.mxu1 %vm8548_vm3, %v8564_v50  ;;  %6988 = vmatpush3.bf16.msra.mxu0 %v8569_v55 }
 0x810   :  { %v8578_v61 = vpack.c.bf16 %v1230_v57, %v1225_v59  ;;  %7006 = vmatprep.subr.bf16.mxu1 %v8569_v55 }
 0x812   :  { %6990 = vmatprep.subr.bf16.mxu0 %v8578_v61 }
 0x813   :  { %6992 = vmatpush3.bf16.msra.mxu0 %v8578_v61 }
 0x814   :  { %6995 = vmatprep.subr.msk.bf16.mxu0 %vm8548_vm3, %v8552_v41 }
 0x816   :  { %6509 = vmatmul.mubr.msk.f32.vlgmr.msra.gmra.mrb[8].mxu1 %vm664_vm1, %v1335_v63 }
 0x817   :  { %6511 = vmatprep.mubr.msk.f32.mxu1 %vm664_vm1, %v1336_v1  ;;  %7008 = vmatpush3.bf16.msra.mxu1 %v8569_v55 }
 0x818   :  { %7010 = vmatprep.subr.bf16.mxu1 %v8578_v61 }
 0x81a   :  { %6512 = vmatmul.mubr.msk.f32.gmra.mrb[10].mxu1 %vm664_vm1, %v1337_v2 }
 0x81b   :  { %7012 = vmatpush3.bf16.msra.mxu1 %v8578_v61 }
 0x81c   :  { %7015 = vmatprep.subr.msk.bf16.mxu1 %vm8548_vm3, %v8552_v41 }
 0x8e9   :  { %v6510_v4 = vpop.f32.mrb[8].mxu1 }
 0x8ea   :  { %v1448_v7 = vmul.f32 0.17677669, %v6510_v4  ;;  %v1428_v8 = vpop.f32.mrb[9].mxu1 }
 0x8eb   :  { %v1447_v10 = vmul.f32 0.17677669, %v1428_v8 }
 0x8ec   :  { %v1452_v11 = vadd.f32 %v1448_v7, %v8618_v6 }
 0x8ed   :  { %v6513_v13 = vpop.f32.mrb[10].mxu1  ;;  %v1451_v14 = vadd.f32 %v1447_v10, %v8625_v9  ;;  %v8663_v10 = vsel %vm8611_vm6, 1.0, %v8015_v33 }
 0x8ee   :  { %v1450_v17 = vmul.f32 0.17677669, %v6513_v13  ;;  %v1438_v18 = vpop.f32.mrb[11].mxu1  ;;  %v1458_v19 = vsel %vm664_vm1, %v1452_v11, -inf }
 0x8ef   :  { %v1449_v21 = vmul.f32 0.17677669, %v1438_v18  ;;  %1459 = vmax.xlane.f32.xlu1 %v1458_v19  ;;  %v1455_v22 = vsel %vm664_vm1, %v1451_v14, -inf  ;;  %v1608_v18 = vmul.f32 %v8663_v10, %v8581_v62  ;;  %v1609_v19 = vmul.f32 %v8663_v10, %v8587_v0 }
 0x8f0   :  { %1456 = vmax.xlane.f32.xlu0 %v1455_v22  ;;  %v1454_v23 = vadd.f32 %v1450_v17, %v8638_v15  ;;  %v1607_v17 = vmul.f32 %v8663_v10, %v8576_v60 }
 0x8f1   :  { %v1453_v24 = vadd.f32 %v1449_v21, %v8648_v20 }
 0x8f2   :  { %v1464_v25 = vsel %vm664_vm1, %v1454_v23, -inf }
 0x8f3   :  { %1465 = vmax.xlane.f32.xlu1 %v1464_v25  ;;  %v1461_v26 = vsel %vm664_vm1, %v1453_v24, -inf }
 0x8f4   :  { %1462 = vmax.xlane.f32.xlu0 %v1461_v26 }
 0x97c   :  { %v1460_v29 = vpop.xlane.xlu1 %1459 }
 0x97d   :  { %v1468_v30 = vsub.f32 %v1452_v11, %v1460_v29  ;;  %v1457_v31 = vpop.xlane.xlu0 %1456 }
 0x97e   :  { %v1467_v32 = vsub.f32 %v1451_v14, %v1457_v31  ;;  %v1606_v14 = vmul.f32 %v8663_v10, %v8544_v38 }
 0x97f   :  { %v1473_v35 = vmul.f32 1.442695, %v1468_v30 }
 0x980   :  { %v1471_v36 = vmul.f32 1.442695, %v1467_v32  ;;  %v1466_v37 = vpop.xlane.xlu1 %1465 }
 0x981   :  { %7358 = vpow2.f32 %v1473_v35  ;;  %v1470_v39 = vsub.f32 %v1454_v23, %v1466_v37  ;;  %v1463_v42 = vpop.xlane.xlu0 %1462 }
 0x982   :  { %7360 = vpow2.f32 %v1471_v36  ;;  %v1469_v43 = vsub.f32 %v1453_v24, %v1463_v42 }
 0x983   :  { %v1477_v44 = vmul.f32 1.442695, %v1470_v39 }
 0x984   :  { %v1475_v45 = vmul.f32 1.442695, %v1469_v43 }
 0x985   :  { %7362 = vpow2.f32 %v1477_v44 }
 0x986   :  { %7364 = vpow2.f32 %v1475_v45 }
 0x98b   :  { %v7359_v46 = vpop.eup %7358 }
 0x98c   :  { %v7361_v47 = vpop.eup %7360  ;;  %v1482_v48 = vsel %vm664_vm1, %v7359_v46, 0.0 }
 0x98d   :  { %1483 = vadd.xlane.f32.xlu1 %v1482_v48  ;;  %v1479_v49 = vsel %vm664_vm1, %v7361_v47, 0.0 }
 0x98e   :  { %1480 = vadd.xlane.f32.xlu0 %v1479_v49 }
 0x98f   :  { %v7363_v51 = vpop.eup %7362 }
 0x990   :  { %v7365_v52 = vpop.eup %7364  ;;  %v1488_v53 = vsel %vm664_vm1, %v7363_v51, 0.0 }
 0x991   :  { %1489 = vadd.xlane.f32.xlu1 %v1488_v53  ;;  %v1485_v54 = vsel %vm664_vm1, %v7365_v52, 0.0 }
 0x992   :  { %1486 = vadd.xlane.f32.xlu0 %v1485_v54 }
 0xa1a   :  { %v1484_v56 = vpop.xlane.xlu1 %1483 }
 0xa1b   :  { %7366 = vrcp.f32 %v1484_v56  ;;  %v1481_v57 = vpop.xlane.xlu0 %1480 }
 0xa1c   :  { %7368 = vrcp.f32 %v1481_v57 }
 0xa1e   :  { %v1490_v58 = vpop.xlane.xlu1 %1489 }
 0xa1f   :  { %7370 = vrcp.f32 %v1490_v58  ;;  %v1487_v59 = vpop.xlane.xlu0 %1486 }
 0xa20   :  { %7372 = vrcp.f32 %v1487_v59 }
 0xa25   :  { %v7367_v63 = vpop.eup %7366 }
 0xa26   :  { %v7369_v1 = vpop.eup %7368  ;;  %v1494_v4 = vmul.f32 %v7367_v63, %v7359_v46 }
 0xa27   :  { %v1492_v2 = vmul.f32 %v7369_v1, %v7361_v47 }
 0xa29   :  { %v7371_v7 = vpop.eup %7370  ;;  %6522 = vmatprep.mubr.msk.f32.mxu0 %vm664_vm1, %v1492_v2 }
 0xa2a   :  { %v7373_v8 = vpop.eup %7372  ;;  %6523 = vmatmul.mubr.msk.f32.vlgmr.msra.gmra.mrb[12].mxu0 %vm664_vm1, %v1494_v4  ;;  %v1498_v13 = vmul.f32 %v7371_v7, %v7363_v51 }
 0xa2b   :  { %6998 = vmatpush3.bf16.xpose.msk.msra.mxu0 %vm8548_vm3, %v8552_v41  ;;  %v1496_v11 = vmul.f32 %v7373_v8, %v7365_v52 }
 0xa2c   :  { %7001 = vmatprep.subr.msk.bf16.mxu0 %vm8548_vm3, %v8564_v50 }
 0xa2d   :  { %6525 = vmatprep.mubr.msk.f32.mxu0 %vm664_vm1, %v1496_v11 }
 0xa2e   :  { %6526 = vmatmul.mubr.msk.f32.gmra.mrb[14].mxu0 %vm664_vm1, %v1498_v13 }
 0xa2f   :  { %6536 = vmatprep.mubr.msk.f32.mxu0 %vm664_vm1, %v1606_v14 }
 0xa33   :  { %7004 = vmatpush3.bf16.xpose.msk.msra.mxu0 %vm8548_vm3, %v8564_v50 }
 0xa34   :  { %7026 = vmatprep.subr.bf16.mxu0 %v8569_v55 }
 0xa3a   :  { %6537 = vmatmul.mubr.msk.f32.vlgmr.msra.gmra.mrb[16].mxu0 %vm664_vm1, %v1607_v17 }
 0xa3b   :  { %6539 = vmatprep.mubr.msk.f32.mxu0 %vm664_vm1, %v1608_v18  ;;  %7028 = vmatpush3.bf16.msra.mxu0 %v8569_v55 }
 0xa3c   :  { %7030 = vmatprep.subr.bf16.mxu0 %v8578_v61 }
 0xa3e   :  { %6540 = vmatmul.mubr.msk.f32.gmra.mrb[18].mxu0 %vm664_vm1, %v1609_v19 }
 0xa3f   :  { %7032 = vmatpush3.bf16.msra.mxu0 %v8578_v61 }
 0xa40   :  { %7035 = vmatprep.subr.msk.bf16.mxu0 %vm8548_vm3, %v8552_v41 }
 0xafd   :  { %v8696_v21 = vpop.f32.mrb[12].mxu0 }
 0xafe   :  { %v8698_v22 = vpop.f32.mrb[13].mxu0 }
 0xb01   :  { %v8700_v23 = vpop.f32.mrb[14].mxu0 }
 0xb02   :  { %v8702_v24 = vpop.f32.mrb[15].mxu0 }
 0xb0d   :  { %v6538_v25 = vpop.f32.mrb[16].mxu0 }
 0xb0e   :  { %v1708_v26 = vmul.f32 0.17677669, %v6538_v25  ;;  %v1688_v29 = vpop.f32.mrb[17].mxu0 }
 0xb0f   :  { %v1707_v30 = vmul.f32 0.17677669, %v1688_v29 }
 0xb10   :  { %v1712_v31 = vadd.f32 %v1708_v26, %v8618_v6 }
 0xb11   :  { %v6541_v32 = vpop.f32.mrb[18].mxu0  ;;  %v1711_v35 = vadd.f32 %v1707_v30, %v8625_v9 }
 0xb12   :  { %v1710_v36 = vmul.f32 0.17677669, %v6541_v32  ;;  %v1698_v37 = vpop.f32.mrb[19].mxu0  ;;  %v1718_v39 = vsel %vm664_vm1, %v1712_v31, -inf }
 0xb13   :  { %v1709_v42 = vmul.f32 0.17677669, %v1698_v37  ;;  %1719 = vmax.xlane.f32.xlu1 %v1718_v39  ;;  %v1715_v43 = vsel %vm664_vm1, %v1711_v35, -inf  ;;  %v8720_v37 = vsel %vm8640_vm12, 1.0, %v8015_v33 }
 0xb14   :  { %1716 = vmax.xlane.f32.xlu0 %v1715_v43  ;;  %v1714_v44 = vadd.f32 %v1710_v36, %v8638_v15  ;;  %v1866_v43 = vmul.f32 %v8720_v37, %v8544_v38 }
 0xb15   :  { %v1713_v45 = vadd.f32 %v1709_v42, %v8648_v20 }
 0xb16   :  { %v1724_v46 = vsel %vm664_vm1, %v1714_v44, -inf }
 0xb17   :  { %1725 = vmax.xlane.f32.xlu1 %v1724_v46  ;;  %v1721_v47 = vsel %vm664_vm1, %v1713_v45, -inf  ;;  %v1869_v46 = vmul.f32 %v8720_v37, %v8587_v0 }
 0xb18   :  { %1722 = vmax.xlane.f32.xlu0 %v1721_v47 }
 0xba0   :  { %v1720_v48 = vpop.xlane.xlu1 %1719 }
 0xba1   :  { %v1728_v49 = vsub.f32 %v1712_v31, %v1720_v48  ;;  %v1717_v51 = vpop.xlane.xlu0 %1716  ;;  %v1597_v48 = vmul.f32 %v8696_v21, %v8542_v34  ;;  %v1598_v21 = vmul.f32 %v8542_v34, %v8702_v24 }
 0xba2   :  { %v1727_v52 = vsub.f32 %v1711_v35, %v1717_v51 }
 0xba3   :  { %v1733_v53 = vmul.f32 1.442695, %v1728_v49 }
 0xba4   :  { %v1731_v54 = vmul.f32 1.442695, %v1727_v52  ;;  %v1726_v56 = vpop.xlane.xlu1 %1725  ;;  %v1596_v52 = vmul.f32 %v8542_v34, %v8698_v22 }
 0xba5   :  { %7374 = vpow2.f32 %v1733_v53  ;;  %v1730_v57 = vsub.f32 %v1714_v44, %v1726_v56  ;;  %v1723_v58 = vpop.xlane.xlu0 %1722  ;;  %v1867_v44 = vmul.f32 %v8720_v37, %v8576_v60 }
 0xba6   :  { %7376 = vpow2.f32 %v1731_v54  ;;  %v1729_v59 = vsub.f32 %v1713_v45, %v1723_v58  ;;  %v1868_v45 = vmul.f32 %v8720_v37, %v8581_v62 }
 0xba7   :  { %v1737_v63 = vmul.f32 1.442695, %v1730_v57 }
 0xba8   :  { %v1735_v1 = vmul.f32 1.442695, %v1729_v59 }
 0xba9   :  { %7378 = vpow2.f32 %v1737_v63 }
 0xbaa   :  { %7380 = vpow2.f32 %v1735_v1 }
 0xbaf   :  { %v7375_v2 = vpop.eup %7374 }
 0xbb0   :  { %v7377_v4 = vpop.eup %7376  ;;  %v1742_v7 = vsel %vm664_vm1, %v7375_v2, 0.0 }
 0xbb1   :  { %1743 = vadd.xlane.f32.xlu1 %v1742_v7  ;;  %v1739_v8 = vsel %vm664_vm1, %v7377_v4, 0.0 }
 0xbb2   :  { %1740 = vadd.xlane.f32.xlu0 %v1739_v8 }
 0xbb3   :  { %v7379_v11 = vpop.eup %7378 }
 0xbb4   :  { %v7381_v13 = vpop.eup %7380  ;;  %v1748_v14 = vsel %vm664_vm1, %v7379_v11, 0.0 }
 0xbb5   :  { %1749 = vadd.xlane.f32.xlu1 %v1748_v14  ;;  %v1745_v17 = vsel %vm664_vm1, %v7381_v13, 0.0 }
 0xbb6   :  { %1746 = vadd.xlane.f32.xlu0 %v1745_v17 }
 0xc3e   :  { %v1744_v18 = vpop.xlane.xlu1 %1743 }
 0xc3f   :  { %7382 = vrcp.f32 %v1744_v18  ;;  %v1741_v19 = vpop.xlane.xlu0 %1740 }
 0xc40   :  { %7384 = vrcp.f32 %v1741_v19 }
 0xc42   :  { %v1750_v25 = vpop.xlane.xlu1 %1749 }
 0xc43   :  { %7386 = vrcp.f32 %v1750_v25  ;;  %v1747_v26 = vpop.xlane.xlu0 %1746 }
 0xc44   :  { %7388 = vrcp.f32 %v1747_v26 }
 0xc49   :  { %v7383_v29 = vpop.eup %7382 }
 0xc4a   :  { %v7385_v30 = vpop.eup %7384  ;;  %v1754_v32 = vmul.f32 %v7383_v29, %v7375_v2 }
 0xc4b   :  { %v1752_v31 = vmul.f32 %v7385_v30, %v7377_v4 }
 0xc4d   :  { %v7387_v35 = vpop.eup %7386  ;;  %6550 = vmatprep.mubr.msk.f32.mxu1 %vm664_vm1, %v1752_v31 }
 0xc4e   :  { %v7389_v36 = vpop.eup %7388  ;;  %6551 = vmatmul.mubr.msk.f32.vlgmr.msra.gmra.mrb[12].mxu1 %vm664_vm1, %v1754_v32  ;;  %v1758_v42 = vmul.f32 %v7387_v35, %v7379_v11 }
 0xc4f   :  { %7018 = vmatpush3.bf16.xpose.msk.msra.mxu1 %vm8548_vm3, %v8552_v41  ;;  %v1756_v39 = vmul.f32 %v7389_v36, %v7381_v13 }
 0xc50   :  { %7021 = vmatprep.subr.msk.bf16.mxu1 %vm8548_vm3, %v8564_v50 }
 0xc51   :  { %6553 = vmatprep.mubr.msk.f32.mxu1 %vm664_vm1, %v1756_v39 }
 0xc52   :  { %6554 = vmatmul.mubr.msk.f32.gmra.mrb[14].mxu1 %vm664_vm1, %v1758_v42 }
 0xc53   :  { %6564 = vmatprep.mubr.msk.f32.mxu1 %vm664_vm1, %v1866_v43 }
 0xc57   :  { %7024 = vmatpush3.bf16.xpose.msk.msra.mxu1 %vm8548_vm3, %v8564_v50 }
 0xc58   :  { %7046 = vmatprep.subr.bf16.mxu1 %v8569_v55 }
 0xc5e   :  { %6565 = vmatmul.mubr.msk.f32.vlgmr.msra.gmra.mrb[16].mxu1 %vm664_vm1, %v1867_v44 }
 0xc5f   :  { %6567 = vmatprep.mubr.msk.f32.mxu1 %vm664_vm1, %v1868_v45  ;;  %7048 = vmatpush3.bf16.msra.mxu1 %v8569_v55 }
 0xc60   :  { %7050 = vmatprep.subr.bf16.mxu1 %v8578_v61 }
 0xc62   :  { %6568 = vmatmul.mubr.msk.f32.gmra.mrb[18].mxu1 %vm664_vm1, %v1869_v46 }
 0xc63   :  { %7052 = vmatpush3.bf16.msra.mxu1 %v8578_v61  ;;  %v1599_v61 = vmul.f32 %v8700_v23, %v8542_v34 }
 0xd21   :  { %v6552_v47 = vpop.f32.mrb[12].mxu1 }
 0xd22   :  { %v1857_v49 = vmul.f32 %v6552_v47, %v8663_v10  ;;  %v1837_v51 = vpop.f32.mrb[13].mxu1 }
 0xd23   :  { %v1856_v55 = vmul.f32 %v8663_v10, %v1837_v51 }
 0xd24   :  { %v8756_v53 = vadd.f32 %v1857_v49, %v1597_v48 }
 0xd25   :  { %v8758_v54 = vadd.f32 %v1856_v55, %v1596_v52  ;;  %v6555_v56 = vpop.f32.mrb[14].mxu1 }
 0xd26   :  { %v1859_v57 = vmul.f32 %v6555_v56, %v8663_v10  ;;  %v1847_v58 = vpop.f32.mrb[15].mxu1 }
 0xd27   :  { %v1858_v59 = vmul.f32 %v8663_v10, %v1847_v58 }
 0xd28   :  { %v8766_v63 = vadd.f32 %v1859_v57, %v1599_v61 }
 0xd29   :  { %v8768_v22 = vadd.f32 %v1858_v59, %v1598_v21 }
 0xd31   :  { %v6566_v1 = vpop.f32.mrb[16].mxu1 }
 0xd32   :  { %v1968_v2 = vmul.f32 0.17677669, %v6566_v1  ;;  %v1948_v4 = vpop.f32.mrb[17].mxu1 }
 0xd33   :  { %v1967_v7 = vmul.f32 0.17677669, %v1948_v4 }
 0xd34   :  { %v1972_v8 = vadd.f32 %v1968_v2, %v8618_v6 }
 0xd35   :  { %v6569_v11 = vpop.f32.mrb[18].mxu1  ;;  %v1971_v23 = vadd.f32 %v1967_v7, %v8625_v9 }
 0xd36   :  { %v1970_v13 = vmul.f32 0.17677669, %v6569_v11  ;;  %v1958_v14 = vpop.f32.mrb[19].mxu1  ;;  %v1978_v17 = vsel %vm664_vm1, %v1972_v8, -inf }
 0xd37   :  { %v1969_v24 = vmul.f32 0.17677669, %v1958_v14  ;;  %1979 = vmax.xlane.f32.xlu1 %v1978_v17  ;;  %v1975_v18 = vsel %vm664_vm1, %v1971_v23, -inf }
 0xd38   :  { %1976 = vmax.xlane.f32.xlu0 %v1975_v18  ;;  %v1974_v19 = vadd.f32 %v1970_v13, %v8638_v15  ;;  %v8786_v13 = vsel %vm8630_vm11, 1.0, %v8015_v33 }
 0xd39   :  { %v1973_v25 = vadd.f32 %v1969_v24, %v8648_v20  ;;  %v2126_v24 = vmul.f32 %v8786_v13, %v8544_v38  ;;  %v2128_v18 = vmul.f32 %v8786_v13, %v8581_v62 }
 0xd3a   :  { %v1984_v26 = vsel %vm664_vm1, %v1974_v19, -inf }
 0xd3b   :  { %1985 = vmax.xlane.f32.xlu1 %v1984_v26  ;;  %v1981_v29 = vsel %vm664_vm1, %v1973_v25, -inf }
 0xd3c   :  { %1982 = vmax.xlane.f32.xlu0 %v1981_v29 }
 0xdc4   :  { %v1980_v30 = vpop.xlane.xlu1 %1979 }
 0xdc5   :  { %v1988_v31 = vsub.f32 %v1972_v8, %v1980_v30  ;;  %v1977_v32 = vpop.xlane.xlu0 %1976 }
 0xdc6   :  { %v1987_v35 = vsub.f32 %v1971_v23, %v1977_v32 }
 0xdc7   :  { %v1993_v36 = vmul.f32 1.442695, %v1988_v31 }
 0xdc8   :  { %v1991_v39 = vmul.f32 1.442695, %v1987_v35  ;;  %v1986_v42 = vpop.xlane.xlu1 %1985 }
 0xdc9   :  { %7390 = vpow2.f32 %v1993_v36  ;;  %v1990_v43 = vsub.f32 %v1974_v19, %v1986_v42  ;;  %v1983_v44 = vpop.xlane.xlu0 %1982  ;;  %v2129_v19 = vmul.f32 %v8786_v13, %v8587_v0 }
 0xdca   :  { %7392 = vpow2.f32 %v1991_v39  ;;  %v1989_v45 = vsub.f32 %v1973_v25, %v1983_v44 }
 0xdcb   :  { %v1997_v46 = vmul.f32 1.442695, %v1990_v43 }
 0xdcc   :  { %v1995_v47 = vmul.f32 1.442695, %v1989_v45 }
 0xdcd   :  { %7394 = vpow2.f32 %v1997_v46 }
 0xdce   :  { %7396 = vpow2.f32 %v1995_v47 }
 0xdd3   :  { %v7391_v48 = vpop.eup %7390 }
 0xdd4   :  { %v7393_v49 = vpop.eup %7392  ;;  %v2002_v51 = vsel %vm664_vm1, %v7391_v48, 0.0 }
 0xdd5   :  { %2003 = vadd.xlane.f32.xlu1 %v2002_v51  ;;  %v1999_v52 = vsel %vm664_vm1, %v7393_v49, 0.0 }
 0xdd6   :  { %2000 = vadd.xlane.f32.xlu0 %v1999_v52 }
 0xdd7   :  { %v7395_v55 = vpop.eup %7394 }
 0xdd8   :  { %v7397_v56 = vpop.eup %7396  ;;  %v2008_v61 = vsel %vm664_vm1, %v7395_v55, 0.0 }
 0xdd9   :  { %2009 = vadd.xlane.f32.xlu1 %v2008_v61  ;;  %v2005_v57 = vsel %vm664_vm1, %v7397_v56, 0.0 }
 0xdda   :  { %2006 = vadd.xlane.f32.xlu0 %v2005_v57 }
 0xe62   :  { %v2004_v58 = vpop.xlane.xlu1 %2003 }
 0xe63   :  { %7398 = vrcp.f32 %v2004_v58  ;;  %v2001_v21 = vpop.xlane.xlu0 %2000 }
 0xe64   :  { %7400 = vrcp.f32 %v2001_v21 }
 0xe66   :  { %v2010_v59 = vpop.xlane.xlu1 %2009 }
 0xe67   :  { %7402 = vrcp.f32 %v2010_v59  ;;  %v2007_v1 = vpop.xlane.xlu0 %2006 }
 0xe68   :  { %7404 = vrcp.f32 %v2007_v1 }
 0xe6d   :  { %v7399_v2 = vpop.eup %7398 }
 0xe6e   :  { %v7401_v4 = vpop.eup %7400  ;;  %v2014_v8 = vmul.f32 %v7399_v2, %v7391_v48 }
 0xe6f   :  { %v2012_v7 = vmul.f32 %v7401_v4, %v7393_v49 }
 0xe71   :  { %v7403_v11 = vpop.eup %7402  ;;  %6578 = vmatprep.mubr.msk.f32.mxu0 %vm664_vm1, %v2012_v7 }
 0xe72   :  { %v7405_v23 = vpop.eup %7404  ;;  %6579 = vmatmul.mubr.msk.f32.vlgmr.msra.gmra.mrb[20].mxu0 %vm664_vm1, %v2014_v8  ;;  %v2018_v17 = vmul.f32 %v7403_v11, %v7395_v55 }
 0xe73   :  { %7038 = vmatpush3.bf16.xpose.msk.msra.mxu0 %vm8548_vm3, %v8552_v41  ;;  %v2016_v14 = vmul.f32 %v7405_v23, %v7397_v56  ;;  %v2127_v41 = vmul.f32 %v8786_v13, %v8576_v60 }
 0xe74   :  { %7041 = vmatprep.subr.msk.bf16.mxu0 %vm8548_vm3, %v8564_v50 }
 0xe75   :  { %6581 = vmatprep.mubr.msk.f32.mxu0 %vm664_vm1, %v2016_v14 }
 0xe76   :  { %6582 = vmatmul.mubr.msk.f32.gmra.mrb[22].mxu0 %vm664_vm1, %v2018_v17 }
 0xe77   :  { %6592 = vmatprep.mubr.msk.f32.mxu0 %vm664_vm1, %v2126_v24 }
 0xe7b   :  { %7044 = vmatpush3.bf16.xpose.msk.msra.mxu0 %vm8548_vm3, %v8564_v50 }
 0xe82   :  { %6593 = vmatmul.mubr.msk.f32.vlgmr.msra.gmra.mrb[24].mxu0 %vm664_vm1, %v2127_v41 }
 0xe83   :  { %6595 = vmatprep.mubr.msk.f32.mxu0 %vm664_vm1, %v2128_v18 }
 0xe86   :  { %6596 = vmatmul.mubr.msk.f32.gmra.mrb[26].mxu0 %vm664_vm1, %v2129_v19 }
 0xf45   :  { %v6580_v25 = vpop.f32.mrb[20].mxu0 }
 0xf46   :  { %v2117_v26 = vmul.f32 %v6580_v25, %v8720_v37  ;;  %v2097_v29 = vpop.f32.mrb[21].mxu0 }
 0xf47   :  { %v2116_v50 = vmul.f32 %v8720_v37, %v2097_v29 }
 0xf48   :  { %v8815_v30 = vadd.f32 %v2117_v26, %v8756_v53 }
 0xf49   :  { %v8818_v31 = vadd.f32 %v2116_v50, %v8758_v54  ;;  %v6583_v32 = vpop.f32.mrb[22].mxu0 }
 0xf4a   :  { %v2119_v35 = vmul.f32 %v6583_v32, %v8720_v37  ;;  %v2107_v36 = vpop.f32.mrb[23].mxu0 }
 0xf4b   :  { %v2118_v39 = vmul.f32 %v8720_v37, %v2107_v36 }
 0xf4c   :  { %v8823_v42 = vadd.f32 %v2119_v35, %v8766_v63 }
 0xf4d   :  { %v8826_v43 = vadd.f32 %v2118_v39, %v8768_v22 }
 0xf55   :  { %v6594_v44 = vpop.f32.mrb[24].mxu0 }
 0xf56   :  { %v2228_v45 = vmul.f32 0.17677669, %v6594_v44  ;;  %v2208_v46 = vpop.f32.mrb[25].mxu0 }
 0xf57   :  { %v2227_v53 = vmul.f32 0.17677669, %v2208_v46 }
 0xf58   :  { %v2232_v47 = vadd.f32 %v2228_v45, %v8618_v6 }
 0xf59   :  { %v6597_v54 = vpop.f32.mrb[26].mxu0  ;;  %v2231_v48 = vadd.f32 %v2227_v53, %v8625_v9 }
 0xf5a   :  { %v2230_v49 = vmul.f32 0.17677669, %v6597_v54  ;;  %v2218_v51 = vpop.f32.mrb[27].mxu0  ;;  %v2238_v52 = vsel %vm664_vm1, %v2232_v47, -inf }
 0xf5b   :  { %v2229_v55 = vmul.f32 0.17677669, %v2218_v51  ;;  %2239 = vmax.xlane.f32.xlu1 %v2238_v52  ;;  %v2235_v63 = vsel %vm664_vm1, %v2231_v48, -inf }
 0xf5c   :  { %2236 = vmax.xlane.f32.xlu0 %v2235_v63  ;;  %v2234_v22 = vadd.f32 %v2230_v49, %v8638_v15 }
 0xf5d   :  { %v2233_v56 = vadd.f32 %v2229_v55, %v8648_v20 }
 0xf5e   :  { %v2244_v61 = vsel %vm664_vm1, %v2234_v22, -inf }
 0xf5f   :  { %2245 = vmax.xlane.f32.xlu1 %v2244_v61  ;;  %v2241_v6 = vsel %vm664_vm1, %v2233_v56, -inf }
 0xf60   :  { %2242 = vmax.xlane.f32.xlu0 %v2241_v6 }
 0xfe8   :  { %v2240_v9 = vpop.xlane.xlu1 %2239 }
 0xfe9   :  { %v2248_v57 = vsub.f32 %v2232_v47, %v2240_v9  ;;  %v2237_v58 = vpop.xlane.xlu0 %2236 }
 0xfea   :  { %v2247_v21 = vsub.f32 %v2231_v48, %v2237_v58 }
 0xfeb   :  { %v2253_v59 = vmul.f32 1.442695, %v2248_v57 }
 0xfec   :  { %v2251_v1 = vmul.f32 1.442695, %v2247_v21  ;;  %v2246_v2 = vpop.xlane.xlu1 %2245 }
 0xfed   :  { %7406 = vpow2.f32 %v2253_v59  ;;  %v2250_v4 = vsub.f32 %v2234_v22, %v2246_v2  ;;  %v2243_v7 = vpop.xlane.xlu0 %2242 }
 0xfee   :  { %7408 = vpow2.f32 %v2251_v1  ;;  %v2249_v15 = vsub.f32 %v2233_v56, %v2243_v7 }
 0xfef   :  { %v2257_v8 = vmul.f32 1.442695, %v2250_v4 }
 0xff0   :  { %v2255_v20 = vmul.f32 1.442695, %v2249_v15 }
 0xff1   :  { %7410 = vpow2.f32 %v2257_v8 }
 0xff2   :  { %7412 = vpow2.f32 %v2255_v20 }
 0xff7   :  { %v7407_v11 = vpop.eup %7406 }
 0xff8   :  { %v7409_v23 = vpop.eup %7408  ;;  %v2262_v14 = vsel %vm664_vm1, %v7407_v11, 0.0 }
 0xff9   :  { %2263 = vadd.xlane.f32.xlu1 %v2262_v14  ;;  %v2259_v17 = vsel %vm664_vm1, %v7409_v23, 0.0 }
 0xffa   :  { %2260 = vadd.xlane.f32.xlu0 %v2259_v17 }
 0xffb   :  { %v7411_v24 = vpop.eup %7410 }
 0xffc   :  { %v7413_v41 = vpop.eup %7412  ;;  %v2268_v18 = vsel %vm664_vm1, %v7411_v24, 0.0 }
 0xffd   :  { %2269 = vadd.xlane.f32.xlu1 %v2268_v18  ;;  %v2265_v19 = vsel %vm664_vm1, %v7413_v41, 0.0 }
 0xffe   :  { %2266 = vadd.xlane.f32.xlu0 %v2265_v19 }
0x1086   :  { %v2264_v25 = vpop.xlane.xlu1 %2263 }
0x1087   :  { %7414 = vrcp.f32 %v2264_v25  ;;  %v2261_v26 = vpop.xlane.xlu0 %2260  ;;  %v939_v25 = vld [vmem:[%s9479_s23] sm:$0xff] }
0x1088   :  { %7416 = vrcp.f32 %v2261_v26  ;;  %v940_v26 = vld [vmem:[%s9479_s23 + $0x8] sm:$0xff] }
0x108a   :  { %v2270_v29 = vpop.xlane.xlu1 %2269 }
0x108b   :  { %7418 = vrcp.f32 %v2270_v29  ;;  %v2267_v50 = vpop.xlane.xlu0 %2266  ;;  %v7053_v29 = vpack.c.bf16 %v940_v26, %v939_v25 }
0x108c   :  { %7420 = vrcp.f32 %v2267_v50  ;;  %v941_v50 = vld [vmem:[%s9479_s23 + $0x10] sm:$0xff] }
0x108d   :  { %7054 = vmatprep.subr.bf16.mxu1 %v7053_v29 }
0x1091   :  { %v7415_v32 = vpop.eup %7414 }
0x1092   :  { %v7417_v35 = vpop.eup %7416  ;;  %v2274_v39 = vmul.f32 %v7415_v32, %v7407_v11  ;;  %v942_v32 = vld [vmem:[%s9479_s23 + $0x18] sm:$0xff]  ;;  %s9516_s23 = sld [smem:[#allocation73_spill]] }
0x1093   :  { %v2272_v36 = vmul.f32 %v7417_v35, %v7409_v23  ;;  %v7057_v35 = vpack.c.bf16 %v942_v32, %v941_v50 }
0x1095   :  { %v7419_v44 = vpop.eup %7418  ;;  %6606 = vmatprep.mubr.msk.f32.mxu1 %vm664_vm1, %v2272_v36 }
0x1096   :  { %v7421_v45 = vpop.eup %7420  ;;  %6607 = vmatmul.mubr.msk.f32.vlgmr.msra.gmra.mrb[20].mxu1 %vm664_vm1, %v2274_v39  ;;  %v2278_v53 = vmul.f32 %v7419_v44, %v7411_v24 }
0x1097   :  { %v2276_v46 = vmul.f32 %v7421_v45, %v7413_v41  ;;  %7056 = vmatpush3.bf16.msra.mxu1 %v7053_v29 }
0x1098   :  { %7058 = vmatprep.subr.bf16.mxu1 %v7057_v35 }
0x1099   :  { %6609 = vmatprep.mubr.msk.f32.mxu1 %vm664_vm1, %v2276_v46 }
0x109a   :  { %6610 = vmatmul.mubr.msk.f32.gmra.mrb[22].mxu1 %vm664_vm1, %v2278_v53 }
0x109b   :  { %7060 = vmatpush3.bf16.msra.mxu1 %v7057_v35 }
0x1169   :  { %v6608_v47 = vpop.f32.mrb[20].mxu1 }
0x116a   :  { %v2377_v54 = vmul.f32 %v6608_v47, %v8786_v13  ;;  %v2357_v48 = vpop.f32.mrb[21].mxu1 }
0x116b   :  { %v2376_v49 = vmul.f32 %v8786_v13, %v2357_v48 }
0x116c   :  { %v2381_v51 = vadd.f32 %v2377_v54, %v8815_v30 }
0x116d   :  { %v2380_v52 = vadd.f32 %v2376_v49, %v8818_v31  ;;  %v6611_v55 = vpop.f32.mrb[22].mxu1 }
0x116e   :  { %v2379_v63 = vmul.f32 %v6611_v55, %v8786_v13  ;;  %v2367_v22 = vpop.f32.mrb[23].mxu1  ;;  %v2385_v56 = vadd.f32 %v2381_v51, %v8576_v60 }
0x116f   :  { %v2378_v61 = vmul.f32 %v8786_v13, %v2367_v22  ;;  %v2384_v6 = vadd.f32 %v2380_v52, %v8544_v38 }
0x1170   :  { %v2383_v9 = vadd.f32 %v2379_v63, %v8823_v42  ;;  %v2391_v57 = vsel %vm664_vm1, %v2385_v56, 0.0  ;;  %v6058_v63 = vld [vmem:[%s9480_s13] ss:$0 sm:$0xff]  ;;  %s9517_s13 = sld [smem:[#allocation74_spill]] }
0x1171   :  { %v2382_v58 = vadd.f32 %v2378_v61, %v8826_v43  ;;  %2392 = vadd.xlane.f32.xlu1 %v2391_v57  ;;  %v2388_v30 = vsel %vm664_vm1, %v2384_v6, 0.0 }
0x1172   :  { %2389 = vadd.xlane.f32.xlu0 %v2388_v30  ;;  %v2387_v31 = vadd.f32 %v2383_v9, %v8587_v0 }
0x1173   :  { %v2386_v21 = vadd.f32 %v2382_v58, %v8581_v62 }
0x1174   :  { %v2397_v60 = vsel %vm664_vm1, %v2387_v31, 0.0 }
0x1175   :  { %2398 = vadd.xlane.f32.xlu1 %v2397_v60  ;;  %v2394_v59 = vsel %vm664_vm1, %v2386_v21, 0.0 }
0x1176   :  { %2395 = vadd.xlane.f32.xlu0 %v2394_v59 }
0x11fe   :  { %v2393_v38 = vpop.xlane.xlu1 %2392 }
0x11ff   :  { %v2401_v42 = vmul.f32 0.03125, %v2393_v38  ;;  %v2390_v1 = vpop.xlane.xlu0 %2389 }
0x1200   :  { %v2400_v2 = vmul.f32 0.03125, %v2390_v1 }
0x1201   :  { %v2405_v4 = vsub.f32 %v2385_v56, %v2401_v42 }
0x1202   :  { %v2404_v43 = vsub.f32 %v2384_v6, %v2400_v2  ;;  %v2399_v7 = vpop.xlane.xlu1 %2398  ;;  %v6059_v6 = vld [vmem:[%s9481_s4] ss:$0 sm:$0xff]  ;;  %s9526_s4 = sld [smem:[#allocation75_spill]] }
0x1203   :  { %v2403_v15 = vmul.f32 0.03125, %v2399_v7  ;;  %v2396_v8 = vpop.xlane.xlu0 %2395  ;;  %v2409_v20 = vmul.f32 %v2405_v4, %v2405_v4  ;;  %v2645_v7 = vadd.s32 4, %v8534_v28 }
0x1204   :  { %v2402_v0 = vmul.f32 0.03125, %v2396_v8  ;;  %v2408_v62 = vmul.f32 %v2404_v43, %v2404_v43  ;;  %v2655_v8 = vadd.s32 12, %v8534_v28 }
0x1205   :  { %v2407_v11 = vsub.f32 %v2387_v31, %v2403_v15  ;;  %v2415_v23 = vsel %vm664_vm1, %v2409_v20, 0.0  ;;  %v2650_v15 = vadd.s32 8, %v8534_v28 }
0x1206   :  { %v2406_v14 = vsub.f32 %v2386_v21, %v2402_v0  ;;  %2416 = vadd.xlane.f32.xlu1 %v2415_v23  ;;  %v2412_v17 = vsel %vm664_vm1, %v2408_v62, 0.0  ;;  %v6060_v62 = vld [vmem:[%s9483_s3] ss:$0 sm:$0xff]  ;;  %s8020_s3 = smov [#allocation29]  }
0x1207   :  { %2413 = vadd.xlane.f32.xlu0 %v2412_v17  ;;  %v2411_v24 = vmul.f32 %v2407_v11, %v2407_v11 }
0x1208   :  { %v2410_v41 = vmul.f32 %v2406_v14, %v2406_v14 }
0x1209   :  { %v2421_v18 = vsel %vm664_vm1, %v2411_v24, 0.0 }
0x120a   :  { %2422 = vadd.xlane.f32.xlu1 %v2421_v18  ;;  %v2418_v19 = vsel %vm664_vm1, %v2410_v41, 0.0 }
0x120b   :  { %2419 = vadd.xlane.f32.xlu0 %v2418_v19 }
0x1293   :  { %v2417_v36 = vpop.xlane.xlu1 %2416 }
0x1294   :  { %v2425_v39 = vmul.f32 0.03125, %v2417_v36  ;;  %v2414_v44 = vpop.xlane.xlu0 %2413 }
0x1295   :  { %v2424_v45 = vmul.f32 0.03125, %v2414_v44 }
0x1296   :  { %v2429_v46 = vadd.f32 1e-05, %v2425_v39 }
0x1297   :  { %v2428_v53 = vadd.f32 1e-05, %v2424_v45  ;;  %v2423_v47 = vpop.xlane.xlu1 %2422 }
0x1298   :  { %7422 = vrsqrt.f32 %v2429_v46  ;;  %v2427_v54 = vmul.f32 0.03125, %v2423_v47  ;;  %v2420_v48 = vpop.xlane.xlu0 %2419 }
0x1299   :  { %7424 = vrsqrt.f32 %v2428_v53  ;;  %v2426_v49 = vmul.f32 0.03125, %v2420_v48 }
0x129a   :  { %v2431_v51 = vadd.f32 1e-05, %v2427_v54 }
0x129b   :  { %v2430_v52 = vadd.f32 1e-05, %v2426_v49 }
0x129c   :  { %7426 = vrsqrt.f32 %v2431_v51 }
0x129d   :  { %7428 = vrsqrt.f32 %v2430_v52 }
0x12a2   :  { %v7423_v55 = vpop.eup %7422 }
0x12a3   :  { %v7425_v22 = vpop.eup %7424  ;;  %v2437_v56 = vmul.f32 %v7423_v55, %v2405_v4  ;;  %v2664_v4 = vld [vmem:[%s9482_s26] sm:$0xf]  ;;  %s9527_s26 = sld [smem:[#allocation90_spill]] }
0x12a4   :  { %v2436_v61 = vmul.f32 %v7425_v22, %v2404_v43  ;;  %v8876_v43 = vshrl.u32 %v1233_v27, 7  ;;  %6626 = vmatprep.subr.msk.mxu0 %vm9395_vm13, %v2664_v4 }
0x12a5   :  { %v2447_v9 = vmul.f32 %v6058_v63, %v2437_v56  ;;  %6627 = vmatpush3.msk.msra.mxu0 %vm9395_vm13, %v2664_v4  ;;  %v2754_v4 = vld [vmem:[%s9484_s28 + $0x18] sm:$0xff] }
0x12a6   :  { %v7427_v57 = vpop.eup %7426  ;;  %v2446_v58 = vmul.f32 %v6058_v63, %v2436_v61  ;;  %v8884_v20 = vadd.s32 8, %v8876_v43  ;;  %vm2643_vm14 = vcmp.eq.s32.totalorder %v8876_v43, %v8534_v28  ;;  %vm2646_vm15 = vcmp.eq.s32.totalorder %v8876_v43, %v2645_v7 }
0x12a7   :  { %v7429_v30 = vpop.eup %7428  ;;  %v2439_v31 = vmul.f32 %v7427_v57, %v2407_v11  ;;  %v2457_v59 = vadd.f32 %v6059_v6, %v2447_v9  ;;  %vm2648_vm8 = vmor %vm2643_vm14, %vm2646_vm15  ;;  %vm9491_vm15 = vcmp.lt.s32.totalorder %v8534_v28, 8 }
0x12a8   :  { %v2456_v21 = vadd.f32 %v6059_v6, %v2446_v58  ;;  %v2438_v60 = vmul.f32 %v7429_v30, %v2406_v14  ;;  %vm2644_vm9 = vcmp.eq.s32.totalorder %v8884_v20, %v8534_v28  ;;  %vm2647_vm10 = vcmp.eq.s32.totalorder %v8884_v20, %v2645_v7 }
0x12a9   :  { %v2449_v38 = vmul.f32 %v6058_v63, %v2439_v31  ;;  %v6067_v27 = vsel %vm2648_vm8, 1.0, %v8015_v33  ;;  %vm2652_vm13 = vcmp.eq.s32.totalorder %v8884_v20, %v2650_v15  ;;  %vm2649_vm0 = vmor %vm2644_vm9, %vm2647_vm10  ;;  %vm2657_vm5 = vcmp.eq.s32.totalorder %v8884_v20, %v2655_v8  ;;  %v2756_v15 = vld [vmem:[%s9485_s1] sm:$0xff]  ;;  %v2757_v8 = vld [vmem:[%s9485_s1 + $0x8] sm:$0xff] }
0x12aa   :  { %6620 = vmatprep.mubr.msk.f32.mxu1 %vm664_vm1, %v2456_v21  ;;  %v2448_v42 = vmul.f32 %v6058_v63, %v2438_v60  ;;  %6628 = vmatprep.mubr.msk.f32.mxu0 %vm9400_vm7, %v6067_v27  ;;  %vm2654_vm4 = vmor %vm2649_vm0, %vm2652_vm13  ;;  %v2761_v27 = vld [vmem:[%s9486_s2] sm:$0xff]  ;;  %vm3071_vm0 = vcmp.lt.s32.totalorder %v8884_v20, 12  ;;  %vm3062_vm13 = vcmp.ge.s32.totalorder %v8876_v43, 4 }
0x12ab   :  { %6621 = vmatmul.mubr.msk.f32.vlgmr.msra.gmra.mrb[24].mxu1 %vm664_vm1, %v2457_v59  ;;  %v2459_v2 = vadd.f32 %v6059_v6, %v2449_v38  ;;  %vm2659_vm2 = vmor %vm2654_vm4, %vm2657_vm5  ;;  %v2751_v38 = vld [vmem:[%s9484_s28] sm:$0xff]  ;;  %vm3056_vm4 = vcmp.lt.s32.totalorder %v8876_v43, 4 }
0x12ac   :  { %v2458_v1 = vadd.f32 %v6059_v6, %v2448_v42  ;;  %v6068_v0 = vsel %vm2659_vm2, 1.0, %v8015_v33  ;;  %v2752_v42 = vld [vmem:[%s9484_s28 + $0x8] sm:$0xff]  ;;  %vm3079_vm2 = vcmp.ge.s32.totalorder %v8884_v20, 12  ;;  %vm3075_vm5 = vmand %vm3071_vm0, %vm8640_vm12  ;;  %vm4054_vm12 = vcmp.lt.s32.totalorder %v8534_v28, 4 }
0x12ad   :  { %6629 = vmatmul.mubr.msk.f32.vlgmr.msra.gmra.mrb[28].mxu0 %vm9400_vm7, %v6068_v0  ;;  %vm3083_vm14 = vmand %vm3079_vm2, %vm8630_vm11  ;;  %vm4053_vm11 = vcmp.eq.s32.totalorder %v8876_v43, 0 }
0x12ae   :  { %6623 = vmatprep.mubr.msk.f32.mxu1 %vm664_vm1, %v2458_v1  ;;  %vm3060_vm8 = vmand %vm3056_vm4, %vm9491_vm15 }
0x12af   :  { %6624 = vmatmul.mubr.msk.f32.gmra.mrb[26].mxu1 %vm664_vm1, %v2459_v2  ;;  %vm3066_vm9 = vmand %vm3062_vm13, %vm8611_vm6  ;;  %vm4058_vm6 = vcmp.ge.s32.totalorder %v8534_v28, 4 }
0x12b0   :  { %vm3085_vm10 = vmor %vm3075_vm5, %vm3083_vm14  ;;  %vm4063_vm5 = vcmp.lt.s32.totalorder %v8534_v28, 12 }
0x12b1   :  { %vm3068_vm7 = vmor %vm3060_vm8, %vm3066_vm9  ;;  %vm9500_vm8 = vcmp.ge.s32.totalorder %v8534_v28, 8 }
0x12b2   :  { %vm9495_vm0 = vmmov %vm9491_vm15  ;;  %vm4062_vm15 = vcmp.eq.s32.totalorder %v8876_v43, 2 }
0x12b3   :  { %vm4059_vm2 = vmand %vm4058_vm6, %vm9495_vm0  ;;  %vm9502_vm0 = vcmp.lt.s32.totalorder %v8534_v28, 16 }
0x12b4   :  { %vm9151_vm13 = vmand %vm4053_vm11, %vm4054_vm12 }
0x12b5   :  { %vm4064_vm9 = vmand %vm9500_vm8, %vm4063_vm5  ;;  %vm4669_vm8 = vcmask 257024  }
0x12b6   :  { %vm4065_vm11 = vmand %vm4062_vm15, %vm4064_vm9  ;;  %vm9505_vm15 = vcmask 130048   ;;  %vm9518_vm9 = vcmask 1043456  }
0x137e   :  { %v6622_v11 = vpop.f32.mrb[24].mxu1 }
0x137f   :  { %v2550_v23 = vadd.f32 %v6622_v11, %v6060_v62  ;;  %v2544_v14 = vpop.f32.mrb[25].mxu1  ;;  %v2762_v11 = vld [vmem:[%s9486_s2 + $0x8] sm:$0xff] }
0x1380   :  { %v2545_v17 = vadd.f32 %v6060_v62, %v2544_v14  ;;  %v6630_v0 = vpop.f32.mrb[28].mxu0  ;;  %v7077_v14 = vpack.c.bf16 %v2762_v11, %v2761_v27 }
0x1381   :  { %v2564_v24 = vmax.f32 %v2550_v23, 0.0  ;;  %v2742_v23 = vpop.f32.mrb[29].mxu0 }
0x1382   :  { %v2563_v41 = vmax.f32 %v2545_v17, 0.0  ;;  %v6625_v18 = vpop.f32.mrb[26].mxu1  ;;  %6639 = vmatprep.mubr.msk.f32.mxu1 %vm664_vm1, %v2742_v23  ;;  %v2758_v17 = vld [vmem:[%s9485_s1 + $0x10] sm:$0xff] }
0x1383   :  { %v2560_v19 = vadd.f32 %v6625_v18, %v6060_v62  ;;  %v2554_v25 = vpop.f32.mrb[27].mxu1  ;;  %v2568_v26 = vadd.f32 %v2564_v24, %v2457_v59  ;;  %v2759_v24 = vld [vmem:[%s9485_s1 + $0x18] sm:$0xff] }
0x1384   :  { %v2555_v29 = vadd.f32 %v6060_v62, %v2554_v25  ;;  %v2567_v50 = vadd.f32 %v2563_v41, %v2456_v21  ;;  %v7069_v62 = vpack.c.bf16 %v2757_v8, %v2756_v15  ;;  %v2763_v41 = vld [vmem:[%s9486_s2 + $0x10] sm:$0xff]  ;;  %v7073_v18 = vpack.c.bf16 %v2759_v24, %v2758_v17  ;;  %v6080_v15 = vld [vmem:[#allocation2] ss:$0 sm:$0xff] }
0x1385   :  { %v2566_v32 = vmax.f32 %v2560_v19, 0.0  ;;  %v2574_v35 = vsel %vm664_vm1, %v2568_v26, 0.0  ;;  %v2764_v19 = vld [vmem:[%s9486_s2 + $0x18] sm:$0xff] }
0x1386   :  { %v2565_v36 = vmax.f32 %v2555_v29, 0.0  ;;  %2575 = vadd.xlane.f32.xlu1 %v2574_v35  ;;  %v2571_v39 = vsel %vm664_vm1, %v2567_v50, 0.0  ;;  %7070 = vmatprep.subr.bf16.mxu0 %v7069_v62  ;;  %v7081_v25 = vpack.c.bf16 %v2764_v19, %v2763_v41 }
0x1387   :  { %2572 = vadd.xlane.f32.xlu0 %v2571_v39  ;;  %v2570_v44 = vadd.f32 %v2566_v32, %v2459_v2  ;;  %v2753_v2 = vld [vmem:[%s9484_s28 + $0x10] sm:$0xff]  ;;  %7072 = vmatpush3.bf16.msra.mxu0 %v7069_v62  ;;  %s5886_s28 = sshll.u32 %s8020_s3, 4  ;;  %s5887_s28 = int_to_ptr.vmem [resolvable:$true] %s5886_s28 }
0x1388   :  { %v2569_v45 = vadd.f32 %v2565_v36, %v2458_v1  ;;  %v7061_v1 = vpack.c.bf16 %v2752_v42, %v2751_v38  ;;  %v7065_v7 = vpack.c.bf16 %v2754_v4, %v2753_v2  ;;  %7074 = vmatprep.subr.bf16.mxu0 %v7073_v18  ;;  %s7888_s1 = scalar_lea.vmem %s5887_s28, 64  ;;  %p7893_p11 = scmp.lt.s32.totalorder %s5887_s28, %s5887_s28 }
0x1389   :  { %v2580_v46 = vsel %vm664_vm1, %v2570_v44, 0.0  ;;  %p7889_p10 = scmp.ne.s32.totalorder %s5887_s28, %s7888_s1  ;;  %p7894_p12 = scmp.lt.s32.totalorder %s7888_s1, %s7888_s1 }
0x138a   :  { %2581 = vadd.xlane.f32.xlu1 %v2580_v46  ;;  %v2577_v53 = vsel %vm664_vm1, %v2569_v45, 0.0  ;;  %7062 = vmatprep.subr.bf16.mxu1 %v7061_v1 }
0x138b   :  { %2578 = vadd.xlane.f32.xlu0 %v2577_v53  ;;  %7064 = vmatpush3.bf16.msra.mxu1 %v7061_v1  ;;  %p7895_p13 = por %p7894_p12, %p7893_p11 }
0x138c   :  { %7066 = vmatprep.subr.bf16.mxu1 %v7065_v7  ;;  %7076 = vmatpush3.bf16.msra.mxu0 %v7073_v18 }
0x138d   :  { %p7896_p0 = pnand %p7895_p13, %p7889_p10 }
0x138f   :  { %7068 = vmatpush3.bf16.msra.mxu1 %v7065_v7  ;;  %v6075_v7 = vld [vmem:[%s9490_s14] ss:$0 sm:$0xff] }
0x1390   :  { %7078 = vmatprep.subr.bf16.mxu1 %v7077_v14 }
0x1392   :  { %6640 = vmatmul.mubr.msk.f32.vlgmr.msra.gmra.mrb[28].mxu1 %vm664_vm1, %v6630_v0 }
0x1393   :  { %7080 = vmatpush3.bf16.msra.mxu1 %v7077_v14 }
0x1394   :  { %7082 = vmatprep.subr.bf16.mxu1 %v7081_v25 }
0x1397   :  { %7084 = vmatpush3.bf16.msra.mxu1 %v7081_v25 }
0x1413   :  { %v2576_v47 = vpop.xlane.xlu1 %2575 }
0x1414   :  { %v2584_v54 = vmul.f32 0.03125, %v2576_v47  ;;  %v2573_v48 = vpop.xlane.xlu0 %2572 }
0x1415   :  { %v2583_v49 = vmul.f32 0.03125, %v2573_v48  ;;  %v6065_v48 = vld [vmem:[%s9487_s9] ss:$0 sm:$0xff] }
0x1416   :  { %v8903_v51 = vsub.f32 %v2568_v26, %v2584_v54 }
0x1417   :  { %v8905_v52 = vsub.f32 %v2567_v50, %v2583_v49  ;;  %v2582_v55 = vpop.xlane.xlu1 %2581 }
0x1418   :  { %v2586_v63 = vmul.f32 0.03125, %v2582_v55  ;;  %v2579_v22 = vpop.xlane.xlu0 %2578  ;;  %v2592_v56 = vmul.f32 %v8903_v51, %v8903_v51 }
0x1419   :  { %v2585_v61 = vmul.f32 0.03125, %v2579_v22  ;;  %v2591_v6 = vmul.f32 %v8905_v52, %v8905_v52  ;;  %v6066_v22 = vld [vmem:[%s9488_s30] ss:$0 sm:$0xff] }
0x141a   :  { %v8911_v9 = vsub.f32 %v2570_v44, %v2586_v63  ;;  %v2598_v57 = vsel %vm664_vm1, %v2592_v56, 0.0 }
0x141b   :  { %v8914_v58 = vsub.f32 %v2569_v45, %v2585_v61  ;;  %2599 = vadd.xlane.f32.xlu1 %v2598_v57  ;;  %v2595_v30 = vsel %vm664_vm1, %v2591_v6, 0.0 }
0x141c   :  { %2596 = vadd.xlane.f32.xlu0 %v2595_v30  ;;  %v2594_v31 = vmul.f32 %v8911_v9, %v8911_v9 }
0x141d   :  { %v2593_v21 = vmul.f32 %v8914_v58, %v8914_v58 }
0x141e   :  { %v2604_v60 = vsel %vm664_vm1, %v2594_v31, 0.0 }
0x141f   :  { %2605 = vadd.xlane.f32.xlu1 %v2604_v60  ;;  %v2601_v59 = vsel %vm664_vm1, %v2593_v21, 0.0 }
0x1420   :  { %2602 = vadd.xlane.f32.xlu0 %v2601_v59 }
0x14a8   :  { %v2600_v26 = vpop.xlane.xlu1 %2599 }
0x14a9   :  { %v2608_v29 = vmul.f32 0.03125, %v2600_v26  ;;  %v2597_v50 = vpop.xlane.xlu0 %2596 }
0x14aa   :  { %v2607_v32 = vmul.f32 0.03125, %v2597_v50 }
0x14ab   :  { %v2612_v35 = vadd.f32 1e-05, %v2608_v29 }
0x14ac   :  { %v2611_v36 = vadd.f32 1e-05, %v2607_v32  ;;  %v2606_v39 = vpop.xlane.xlu1 %2605 }
0x14ad   :  { %7430 = vrsqrt.f32 %v2612_v35  ;;  %v2610_v44 = vmul.f32 0.03125, %v2606_v39  ;;  %v2603_v45 = vpop.xlane.xlu0 %2602 }
0x14ae   :  { %7432 = vrsqrt.f32 %v2611_v36  ;;  %v2609_v46 = vmul.f32 0.03125, %v2603_v45  ;;  %v9012_v45 = vsel %vm3085_vm10, 0.0, %v8016_v5  ;;  %vm4068_vm10 = vcmp.ge.s32.totalorder %v8534_v28, 12 }
0x14af   :  { %v2614_v53 = vadd.f32 1e-05, %v2610_v44 }
0x14b0   :  { %v2613_v47 = vadd.f32 1e-05, %v2609_v46 }
0x14b1   :  { %7434 = vrsqrt.f32 %v2614_v53  ;;  %v9015_v53 = vsel %vm3068_vm7, 0.0, %v8016_v5  ;;  %vm4057_vm7 = vcmp.eq.s32.totalorder %v8876_v43, 1 }
0x14b2   :  { %7436 = vrsqrt.f32 %v2613_v47  ;;  %vm9155_vm14 = vmand %vm4057_vm7, %vm4059_vm2  ;;  %vm4067_vm7 = vcmp.eq.s32.totalorder %v8876_v43, 3 }
0x14b3   :  { %vm4061_vm6 = vmor %vm9151_vm13, %vm9155_vm14 }
0x14b4   :  { %vm4069_vm2 = vmand %vm4068_vm10, %vm9502_vm0  ;;  %vm4960_vm10 = vcmp.ge.s32.totalorder %v8876_v43, 2 }
0x14b5   :  { %vm4066_vm5 = vmor %vm4061_vm6, %vm4065_vm11  ;;  %vm4962_vm6 = vcmp.ge.s32.totalorder %v8534_v28, 2  ;;  %vm4955_vm11 = vcmp.lt.s32.totalorder %v8876_v43, 2 }
0x14b6   :  { %vm4070_vm13 = vmand %vm4067_vm7, %vm4069_vm2  ;;  %vm4957_vm7 = vcmp.lt.s32.totalorder %v8534_v28, 2 }
0x14b7   :  { %v7431_v54 = vpop.eup %7430  ;;  %vm4071_vm14 = vmor %vm4066_vm5, %vm4070_vm13 }
0x14b8   :  { %v7433_v49 = vpop.eup %7432  ;;  %v2620_v55 = vmul.f32 %v7431_v54, %v8903_v51  ;;  %vm4961_vm0 = vmand %vm4960_vm10, %vm3056_vm4  ;;  %vm9519_vm4 = vcmask 31744  }
0x14b9   :  { %v2619_v63 = vmul.f32 %v7433_v49, %v8905_v52  ;;  %vm4963_vm2 = vmand %vm4962_vm6, %vm4054_vm12 }
0x14ba   :  { %v2630_v56 = vmul.f32 %v6065_v48, %v2620_v55  ;;  %vm4959_vm5 = vmand %vm4955_vm11, %vm4957_vm7 }
0x14bb   :  { %v7435_v61 = vpop.eup %7434  ;;  %v2629_v6 = vmul.f32 %v6065_v48, %v2619_v63  ;;  %vm4964_vm13 = vmand %vm4961_vm0, %vm4963_vm2 }
0x14bc   :  { %v7437_v57 = vpop.eup %7436  ;;  %v2622_v30 = vmul.f32 %v7435_v61, %v8911_v9  ;;  %v2640_v60 = vadd.f32 %v6066_v22, %v2630_v56  ;;  %v6072_v9 = vld [vmem:[%s9489_s7] ss:$0 sm:$0xff]  ;;  %vm9520_vm12 = vmmov %vm9518_vm9 }
0x14bd   :  { %v2639_v31 = vadd.f32 %v6066_v22, %v2629_v6  ;;  %v2621_v21 = vmul.f32 %v7437_v57, %v8914_v58  ;;  %v6641_v58 = vpop.f32.mrb[28].mxu1  ;;  %vm9522_vm10 = vmmov %vm9520_vm12 }
0x14be   :  { %v2632_v59 = vmul.f32 %v6065_v48, %v2622_v30  ;;  %v8952_v42 = vadd.f32 %v6641_v58, %v6072_v9  ;;  %v2853_v1 = vpop.f32.mrb[29].mxu1  ;;  %vm9523_vm6 = vmmov %vm9519_vm4 }
0x14bf   :  { %6650 = vmatprep.mubr.msk.f32.mxu0 %vm664_vm1, %v2639_v31  ;;  %6664 = vmatprep.mubr.msk.f32.mxu1 %vm664_vm1, %v2639_v31  ;;  %v2631_v51 = vmul.f32 %v6065_v48, %v2621_v21  ;;  %v8954_v2 = vadd.f32 %v6072_v9, %v2853_v1  ;;  %vm9524_vm11 = vmmov %vm9522_vm10 }
0x14c0   :  { %6651 = vmatmul.mubr.msk.f32.vlgmr.msra.gmra.mrb[30].mxu0 %vm664_vm1, %v2640_v60  ;;  %6665 = vmatmul.mubr.msk.f32.vlgmr.msra.gmra.mrb[30].mxu1 %vm664_vm1, %v2640_v60  ;;  %v2642_v38 = vadd.f32 %v6066_v22, %v2632_v59  ;;  %v3089_v44 = vmul.f32 %v8542_v34, %v8952_v42  ;;  %v3295_v58 = vmul.f32 %v8663_v10, %v8952_v42  ;;  %vm9525_vm7 = vmmov %vm9519_vm4 }
0x14c1   :  { %v2641_v52 = vadd.f32 %v6066_v22, %v2631_v51  ;;  %v3088_v4 = vmul.f32 %v8542_v34, %v8954_v2  ;;  %v3294_v9 = vmul.f32 %v8663_v10, %v8954_v2 }
0x14c3   :  { %6653 = vmatprep.mubr.msk.f32.mxu0 %vm664_vm1, %v2641_v52  ;;  %6667 = vmatprep.mubr.msk.f32.mxu1 %vm664_vm1, %v2641_v52 }
0x14c4   :  { %6654 = vmatmul.mubr.msk.f32.gmra.mrb[32].mxu0 %vm664_vm1, %v2642_v38  ;;  %6668 = vmatmul.mubr.msk.f32.gmra.mrb[32].mxu1 %vm664_vm1, %v2642_v38 }
0x14c5   :  { %6678 = vmatprep.mubr.msk.f32.mxu0 %vm664_vm1, %v3088_v4 }
0x1593   :  { %v6652_v8 = vpop.f32.mrb[30].mxu0  ;;  %v6666_v27 = vpop.f32.mrb[30].mxu1 }
0x1594   :  { %v2952_v0 = vadd.f32 %v6652_v8, %v6075_v7  ;;  %v3043_v62 = vadd.f32 %v6666_v27, %v6080_v15  ;;  %v2946_v11 = vpop.f32.mrb[31].mxu0  ;;  %v3037_v23 = vpop.f32.mrb[31].mxu1 }
0x1595   :  { %v2947_v14 = vadd.f32 %v6075_v7, %v2946_v11  ;;  %v3038_v17 = vadd.f32 %v6080_v15, %v3037_v23 }
0x1597   :  { %v8960_v24 = vpack.c.bf16 %v2952_v0, %v2947_v14  ;;  %v8962_v41 = vpack.c.bf16 %v3043_v62, %v3038_v17  ;;  %v6655_v18 = vpop.f32.mrb[32].mxu0  ;;  %v6669_v19 = vpop.f32.mrb[32].mxu1 }
0x1598   :  { %v2962_v25 = vadd.f32 %v6655_v18, %v6075_v7  ;;  %v3053_v26 = vadd.f32 %v6669_v19, %v6080_v15  ;;  %v2956_v29 = vpop.f32.mrb[33].mxu0  ;;  %v3047_v50 = vpop.f32.mrb[33].mxu1 }
0x1599   :  { %v2957_v32 = vadd.f32 %v6075_v7, %v2956_v29  ;;  %v3048_v35 = vadd.f32 %v6080_v15, %v3047_v50  ;;  %7087 = vmatprep.subr.msk.bf16.mxu0 %vm8548_vm3, %v8960_v24  ;;  %7098 = vmatprep.subr.bf16.mxu1 %v8962_v41 }
0x159a   :  { %7090 = vmatpush3.bf16.xpose.msk.msra.mxu0 %vm8548_vm3, %v8960_v24  ;;  %7100 = vmatpush3.bf16.msra.mxu1 %v8962_v41 }
0x159b   :  { %v8972_v36 = vpack.c.bf16 %v2962_v25, %v2957_v32  ;;  %v8974_v39 = vpack.c.bf16 %v3053_v26, %v3048_v35 }
0x159d   :  { %7093 = vmatprep.subr.msk.bf16.mxu0 %vm8548_vm3, %v8972_v36  ;;  %7102 = vmatprep.subr.bf16.mxu1 %v8974_v39 }
0x159e   :  { %7104 = vmatpush3.bf16.msra.mxu1 %v8974_v39 }
0x159f   :  { %7107 = vmatprep.subr.msk.bf16.mxu1 %vm8548_vm3, %v8960_v24 }
0x15a2   :  { %7096 = vmatpush3.bf16.xpose.msk.msra.mxu0 %vm8548_vm3, %v8972_v36 }
0x15a3   :  { %7118 = vmatprep.subr.bf16.mxu0 %v8962_v41 }
0x15a9   :  { %6679 = vmatmul.mubr.msk.f32.vlgmr.msra.gmra.mrb[34].mxu0 %vm664_vm1, %v3089_v44 }
0x15aa   :  { %7120 = vmatpush3.bf16.msra.mxu0 %v8962_v41 }
0x15ab   :  { %7122 = vmatprep.subr.bf16.mxu0 %v8974_v39 }
0x15ae   :  { %7124 = vmatpush3.bf16.msra.mxu0 %v8974_v39 }
0x15af   :  { %7127 = vmatprep.subr.msk.bf16.mxu0 %vm8548_vm3, %v8960_v24 }
0x167c   :  { %v6680_v20 = vpop.f32.mrb[34].mxu0 }
0x167d   :  { %v3184_v16 = vmul.f32 0.17677669, %v6680_v20  ;;  %v3174_v46 = vpop.f32.mrb[35].mxu0 }
0x167e   :  { %v3183_v12 = vmul.f32 0.17677669, %v3174_v46 }
0x167f   :  { %v3186_v47 = vadd.f32 %v3184_v16, %v9012_v45 }
0x1680   :  { %v3185_v54 = vadd.f32 %v3183_v12, %v9015_v53 }
0x1681   :  { %v3190_v48 = vsel %vm664_vm1, %v3186_v47, -inf }
0x1682   :  { %3191 = vmax.xlane.f32.xlu1 %v3190_v48  ;;  %v3187_v3 = vsel %vm664_vm1, %v3185_v54, -inf  ;;  %v3489_v48 = vmul.f32 %v8720_v37, %v8952_v42 }
0x1683   :  { %3188 = vmax.xlane.f32.xlu0 %v3187_v3 }
0x170f   :  { %v3192_v49 = vpop.xlane.xlu1 %3191 }
0x1710   :  { %v3194_v55 = vsub.f32 %v3186_v47, %v3192_v49  ;;  %v3189_v63 = vpop.xlane.xlu0 %3188 }
0x1711   :  { %v3193_v22 = vsub.f32 %v3185_v54, %v3189_v63  ;;  %v3488_v54 = vmul.f32 %v8720_v37, %v8954_v2 }
0x1712   :  { %v3197_v56 = vmul.f32 1.442695, %v3194_v55 }
0x1713   :  { %v3195_v61 = vmul.f32 1.442695, %v3193_v22 }
0x1714   :  { %7438 = vpow2.f32 %v3197_v56 }
0x1715   :  { %7440 = vpow2.f32 %v3195_v61 }
0x171e   :  { %v7439_v6 = vpop.eup %7438 }
0x171f   :  { %v7441_v57 = vpop.eup %7440  ;;  %v3202_v30 = vsel %vm664_vm1, %v7439_v6, 0.0 }
0x1720   :  { %3203 = vadd.xlane.f32.xlu1 %v3202_v30  ;;  %v3199_v31 = vsel %vm664_vm1, %v7441_v57, 0.0 }
0x1721   :  { %3200 = vadd.xlane.f32.xlu0 %v3199_v31 }
0x17ad   :  { %v3204_v21 = vpop.xlane.xlu1 %3203 }
0x17ae   :  { %7442 = vrcp.f32 %v3204_v21  ;;  %v3201_v60 = vpop.xlane.xlu0 %3200 }
0x17af   :  { %7444 = vrcp.f32 %v3201_v60 }
0x17b8   :  { %v7443_v59 = vpop.eup %7442 }
0x17b9   :  { %v7445_v51 = vpop.eup %7444  ;;  %v3208_v38 = vmul.f32 %v7443_v59, %v7439_v6 }
0x17ba   :  { %v3206_v52 = vmul.f32 %v7445_v51, %v7441_v57 }
0x17bc   :  { %6689 = vmatprep.mubr.msk.f32.mxu1 %vm664_vm1, %v3206_v52 }
0x17bd   :  { %6690 = vmatmul.mubr.msk.f32.vlgmr.msra.gmra.mrb[34].mxu1 %vm664_vm1, %v3208_v38 }
0x17be   :  { %7110 = vmatpush3.bf16.xpose.msk.msra.mxu1 %vm8548_vm3, %v8960_v24  ;;  %6700 = vmatprep.mubr.msk.f32.mxu1 %vm664_vm1, %v3294_v9 }
0x17bf   :  { %7113 = vmatprep.subr.msk.bf16.mxu1 %vm8548_vm3, %v8972_v36 }
0x17c6   :  { %7116 = vmatpush3.bf16.xpose.msk.msra.mxu1 %vm8548_vm3, %v8972_v36 }
0x17c7   :  { %7138 = vmatprep.subr.bf16.mxu1 %v8962_v41 }
0x17cd   :  { %6701 = vmatmul.mubr.msk.f32.vlgmr.msra.gmra.mrb[36].mxu1 %vm664_vm1, %v3295_v58 }
0x17ce   :  { %7140 = vmatpush3.bf16.msra.mxu1 %v8962_v41 }
0x17cf   :  { %7142 = vmatprep.subr.bf16.mxu1 %v8974_v39 }
0x17d2   :  { %7144 = vmatpush3.bf16.msra.mxu1 %v8974_v39 }
0x17d3   :  { %7147 = vmatprep.subr.msk.bf16.mxu1 %vm8548_vm3, %v8960_v24 }
0x1890   :  { %v6691_v1 = vpop.f32.mrb[34].mxu1 }
0x1891   :  { %v3281_v4 = vpop.f32.mrb[35].mxu1  ;;  %v3291_v49 = vmul.f32 %v6691_v1, %v8542_v34 }
0x1892   :  { %v3290_v22 = vmul.f32 %v8542_v34, %v3281_v4 }
0x18a0   :  { %v6702_v7 = vpop.f32.mrb[36].mxu1 }
0x18a1   :  { %v3378_v15 = vmul.f32 0.17677669, %v6702_v7  ;;  %v3368_v8 = vpop.f32.mrb[37].mxu1 }
0x18a2   :  { %v3377_v27 = vmul.f32 0.17677669, %v3368_v8 }
0x18a3   :  { %v3380_v0 = vadd.f32 %v3378_v15, %v9012_v45 }
0x18a4   :  { %v3379_v62 = vadd.f32 %v3377_v27, %v9015_v53 }
0x18a5   :  { %v3384_v11 = vsel %vm664_vm1, %v3380_v0, -inf }
0x18a6   :  { %3385 = vmax.xlane.f32.xlu1 %v3384_v11  ;;  %v3381_v23 = vsel %vm664_vm1, %v3379_v62, -inf }
0x18a7   :  { %3382 = vmax.xlane.f32.xlu0 %v3381_v23 }
0x1933   :  { %v3386_v14 = vpop.xlane.xlu1 %3385 }
0x1934   :  { %v3388_v17 = vsub.f32 %v3380_v0, %v3386_v14  ;;  %v3383_v18 = vpop.xlane.xlu0 %3382 }
0x1935   :  { %v3387_v19 = vsub.f32 %v3379_v62, %v3383_v18  ;;  %v3683_v18 = vmul.f32 %v8786_v13, %v8952_v42 }
0x1936   :  { %v3391_v25 = vmul.f32 1.442695, %v3388_v17  ;;  %v3682_v17 = vmul.f32 %v8786_v13, %v8954_v2 }
0x1937   :  { %v3389_v26 = vmul.f32 1.442695, %v3387_v19 }
0x1938   :  { %7446 = vpow2.f32 %v3391_v25 }
0x1939   :  { %7448 = vpow2.f32 %v3389_v26 }
0x1942   :  { %v7447_v29 = vpop.eup %7446 }
0x1943   :  { %v7449_v50 = vpop.eup %7448  ;;  %v3396_v32 = vsel %vm664_vm1, %v7447_v29, 0.0 }
0x1944   :  { %3397 = vadd.xlane.f32.xlu1 %v3396_v32  ;;  %v3393_v35 = vsel %vm664_vm1, %v7449_v50, 0.0 }
0x1945   :  { %3394 = vadd.xlane.f32.xlu0 %v3393_v35 }
0x19d1   :  { %v3398_v44 = vpop.xlane.xlu1 %3397 }
0x19d2   :  { %7450 = vrcp.f32 %v3398_v44  ;;  %v3395_v20 = vpop.xlane.xlu0 %3394 }
0x19d3   :  { %7452 = vrcp.f32 %v3395_v20 }
0x19dc   :  { %v7451_v16 = vpop.eup %7450 }
0x19dd   :  { %v7453_v46 = vpop.eup %7452  ;;  %v3402_v47 = vmul.f32 %v7451_v16, %v7447_v29 }
0x19de   :  { %v3400_v12 = vmul.f32 %v7453_v46, %v7449_v50 }
0x19e0   :  { %6711 = vmatprep.mubr.msk.f32.mxu0 %vm664_vm1, %v3400_v12 }
0x19e1   :  { %6712 = vmatmul.mubr.msk.f32.vlgmr.msra.gmra.mrb[36].mxu0 %vm664_vm1, %v3402_v47 }
0x19e2   :  { %7130 = vmatpush3.bf16.xpose.msk.msra.mxu0 %vm8548_vm3, %v8960_v24  ;;  %6722 = vmatprep.mubr.msk.f32.mxu0 %vm664_vm1, %v3488_v54 }
0x19e3   :  { %7133 = vmatprep.subr.msk.bf16.mxu0 %vm8548_vm3, %v8972_v36 }
0x19ea   :  { %7136 = vmatpush3.bf16.xpose.msk.msra.mxu0 %vm8548_vm3, %v8972_v36 }
0x19eb   :  { %7158 = vmatprep.subr.bf16.mxu0 %v8962_v41 }
0x19f1   :  { %6723 = vmatmul.mubr.msk.f32.vlgmr.msra.gmra.mrb[38].mxu0 %vm664_vm1, %v3489_v48 }
0x19f2   :  { %7160 = vmatpush3.bf16.msra.mxu0 %v8962_v41 }
0x19f3   :  { %7162 = vmatprep.subr.bf16.mxu0 %v8974_v39 }
0x19f6   :  { %7164 = vmatpush3.bf16.msra.mxu0 %v8974_v39 }
0x1ab4   :  { %v6713_v3 = vpop.f32.mrb[36].mxu0 }
0x1ab5   :  { %v3485_v55 = vmul.f32 %v6713_v3, %v8663_v10  ;;  %v3475_v63 = vpop.f32.mrb[37].mxu0 }
0x1ab6   :  { %v3484_v56 = vmul.f32 %v8663_v10, %v3475_v63 }
0x1ab7   :  { %v3487_v61 = vadd.f32 %v3485_v55, %v3291_v49 }
0x1ab8   :  { %v3486_v6 = vadd.f32 %v3484_v56, %v3290_v22 }
0x1ac4   :  { %v6724_v57 = vpop.f32.mrb[38].mxu0 }
0x1ac5   :  { %v3572_v30 = vmul.f32 0.17677669, %v6724_v57  ;;  %v3562_v31 = vpop.f32.mrb[39].mxu0 }
0x1ac6   :  { %v3571_v41 = vmul.f32 0.17677669, %v3562_v31 }
0x1ac7   :  { %v3574_v21 = vadd.f32 %v3572_v30, %v9012_v45 }
0x1ac8   :  { %v3573_v39 = vadd.f32 %v3571_v41, %v9015_v53 }
0x1ac9   :  { %v3578_v60 = vsel %vm664_vm1, %v3574_v21, -inf }
0x1aca   :  { %3579 = vmax.xlane.f32.xlu1 %v3578_v60  ;;  %v3575_v59 = vsel %vm664_vm1, %v3573_v39, -inf }
0x1acb   :  { %3576 = vmax.xlane.f32.xlu0 %v3575_v59 }
0x1b57   :  { %v3580_v51 = vpop.xlane.xlu1 %3579 }
0x1b58   :  { %v3582_v52 = vsub.f32 %v3574_v21, %v3580_v51  ;;  %v3577_v38 = vpop.xlane.xlu0 %3576 }
0x1b59   :  { %v3581_v9 = vsub.f32 %v3573_v39, %v3577_v38 }
0x1b5a   :  { %v3585_v58 = vmul.f32 1.442695, %v3582_v52 }
0x1b5b   :  { %v3583_v1 = vmul.f32 1.442695, %v3581_v9 }
0x1b5c   :  { %7454 = vpow2.f32 %v3585_v58 }
0x1b5d   :  { %7456 = vpow2.f32 %v3583_v1 }
0x1b66   :  { %v7455_v4 = vpop.eup %7454 }
0x1b67   :  { %v7457_v7 = vpop.eup %7456  ;;  %v3590_v15 = vsel %vm664_vm1, %v7455_v4, 0.0 }
0x1b68   :  { %3591 = vadd.xlane.f32.xlu1 %v3590_v15  ;;  %v3587_v8 = vsel %vm664_vm1, %v7457_v7, 0.0 }
0x1b69   :  { %3588 = vadd.xlane.f32.xlu0 %v3587_v8 }
0x1bf5   :  { %v3592_v27 = vpop.xlane.xlu1 %3591 }
0x1bf6   :  { %7458 = vrcp.f32 %v3592_v27  ;;  %v3589_v0 = vpop.xlane.xlu0 %3588 }
0x1bf7   :  { %7460 = vrcp.f32 %v3589_v0 }
0x1c00   :  { %v7459_v62 = vpop.eup %7458 }
0x1c01   :  { %v7461_v11 = vpop.eup %7460  ;;  %v3596_v14 = vmul.f32 %v7459_v62, %v7455_v4  ;;  %v2766_v62 = vld [vmem:[%s9492_s5] sm:$0xff] }
0x1c02   :  { %v3594_v23 = vmul.f32 %v7461_v11, %v7457_v7  ;;  %v2767_v11 = vld [vmem:[%s9492_s5 + $0x8] sm:$0xff] }
0x1c04   :  { %6733 = vmatprep.mubr.msk.f32.mxu1 %vm664_vm1, %v3594_v23  ;;  %v7165_v23 = vpack.c.bf16 %v2767_v11, %v2766_v62 }
0x1c05   :  { %6734 = vmatmul.mubr.msk.f32.vlgmr.msra.gmra.mrb[38].mxu1 %vm664_vm1, %v3596_v14  ;;  %v2768_v14 = vld [vmem:[%s9492_s5 + $0x10] sm:$0xff] }
0x1c06   :  { %7150 = vmatpush3.bf16.xpose.msk.msra.mxu1 %vm8548_vm3, %v8960_v24  ;;  %6744 = vmatprep.mubr.msk.f32.mxu1 %vm664_vm1, %v3682_v17  ;;  %v2769_v17 = vld [vmem:[%s9492_s5 + $0x18] sm:$0xff] }
0x1c07   :  { %7153 = vmatprep.subr.msk.bf16.mxu1 %vm8548_vm3, %v8972_v36  ;;  %7166 = vmatprep.subr.bf16.mxu0 %v7165_v23 }
0x1c0e   :  { %7156 = vmatpush3.bf16.xpose.msk.msra.mxu1 %vm8548_vm3, %v8972_v36  ;;  %vm8018_vm3 = vmmov 0  }
0x1c15   :  { %6745 = vmatmul.mubr.msk.f32.vlgmr.msra.gmra.mrb[40].mxu1 %vm664_vm1, %v3683_v18  ;;  %v7169_v18 = vpack.c.bf16 %v2769_v17, %v2768_v14 }
0x1c16   :  { %6773 = vmatprep.mubr.msk.f32.mxu1 %vm8018_vm3, %v8015_v33 }
0x1cd8   :  { %v6735_v19 = vpop.f32.mrb[38].mxu1 }
0x1cd9   :  { %v3679_v25 = vmul.f32 %v6735_v19, %v8720_v37  ;;  %v3669_v26 = vpop.f32.mrb[39].mxu1 }
0x1cda   :  { %v3678_v24 = vmul.f32 %v8720_v37, %v3669_v26 }
0x1cdb   :  { %v3681_v29 = vadd.f32 %v3679_v25, %v3487_v61 }
0x1cdc   :  { %v3680_v50 = vadd.f32 %v3678_v24, %v3486_v6 }
0x1ce8   :  { %v6746_v32 = vpop.f32.mrb[40].mxu1 }
0x1ce9   :  { %v3766_v35 = vmul.f32 0.17677669, %v6746_v32  ;;  %v3756_v44 = vpop.f32.mrb[41].mxu1 }
0x1cea   :  { %v3765_v20 = vmul.f32 0.17677669, %v3756_v44 }
0x1ceb   :  { %v3768_v40 = vadd.f32 %v3766_v35, %v9012_v45  ;;  %v6117_v35 = vld [vmem:[#allocation7] ss:$0 sm:$0xff] }
0x1cec   :  { %v3767_v36 = vadd.f32 %v3765_v20, %v9015_v53 }
0x1ced   :  { %v3772_v16 = vsel %vm664_vm1, %v3768_v40, -inf }
0x1cee   :  { %3773 = vmax.xlane.f32.xlu1 %v3772_v16  ;;  %v3769_v46 = vsel %vm664_vm1, %v3767_v36, -inf }
0x1cef   :  { %3770 = vmax.xlane.f32.xlu0 %v3769_v46 }
0x1d7b   :  { %v3774_v12 = vpop.xlane.xlu1 %3773 }
0x1d7c   :  { %v3776_v47 = vsub.f32 %v3768_v40, %v3774_v12  ;;  %v3771_v54 = vpop.xlane.xlu0 %3770 }
0x1d7d   :  { %v3775_v48 = vsub.f32 %v3767_v36, %v3771_v54  ;;  %v6118_v36 = vld [vmem:[#allocation8] ss:$0 sm:$0xff]  ;;  %v6119_v54 = vld [vmem:[#allocation5] ss:$0 sm:$0xff] }
0x1d7e   :  { %v3779_v3 = vmul.f32 1.442695, %v3776_v47 }
0x1d7f   :  { %v3777_v49 = vmul.f32 1.442695, %v3775_v48 }
0x1d80   :  { %7462 = vpow2.f32 %v3779_v3 }
0x1d81   :  { %7464 = vpow2.f32 %v3777_v49 }
0x1d8a   :  { %v7463_v55 = vpop.eup %7462 }
0x1d8b   :  { %v7465_v63 = vpop.eup %7464  ;;  %v3784_v45 = vsel %vm664_vm1, %v7463_v55, 0.0 }
0x1d8c   :  { %3785 = vadd.xlane.f32.xlu1 %v3784_v45  ;;  %v3781_v53 = vsel %vm664_vm1, %v7465_v63, 0.0 }
0x1d8d   :  { %3782 = vadd.xlane.f32.xlu0 %v3781_v53 }
0x1e19   :  { %v3786_v22 = vpop.xlane.xlu1 %3785 }
0x1e1a   :  { %7466 = vrcp.f32 %v3786_v22  ;;  %v3783_v56 = vpop.xlane.xlu0 %3782 }
0x1e1b   :  { %7468 = vrcp.f32 %v3783_v56 }
0x1e24   :  { %v7467_v61 = vpop.eup %7466 }
0x1e25   :  { %v7469_v6 = vpop.eup %7468  ;;  %v3790_v30 = vmul.f32 %v7467_v61, %v7463_v55 }
0x1e26   :  { %v3788_v57 = vmul.f32 %v7469_v6, %v7465_v63 }
0x1e28   :  { %6755 = vmatprep.mubr.msk.f32.mxu0 %vm664_vm1, %v3788_v57 }
0x1e29   :  { %6756 = vmatmul.mubr.msk.f32.vlgmr.msra.gmra.mrb[40].mxu0 %vm664_vm1, %v3790_v30 }
0x1e2a   :  { %7168 = vmatpush3.bf16.msra.mxu0 %v7165_v23  ;;  %v6125_v23 = vld [vmem:[%s9509_s16] ss:$0 sm:$0xff] }
0x1e2b   :  { %7170 = vmatprep.subr.bf16.mxu0 %v7169_v18 }
0x1e2e   :  { %7172 = vmatpush3.bf16.msra.mxu0 %v7169_v18  ;;  %v6122_v18 = vld [vmem:[#allocation10] ss:$0 sm:$0xff] }
0x1efc   :  { %v6757_v31 = vpop.f32.mrb[40].mxu0 }
0x1efd   :  { %v3873_v41 = vmul.f32 %v6757_v31, %v8786_v13  ;;  %v3863_v21 = vpop.f32.mrb[41].mxu0 }
0x1efe   :  { %v3872_v39 = vmul.f32 %v8786_v13, %v3863_v21 }
0x1eff   :  { %v3875_v60 = vadd.f32 %v3873_v41, %v3681_v29 }
0x1f00   :  { %v3874_v59 = vadd.f32 %v3872_v39, %v3680_v50 }
0x1f01   :  { %v3877_v51 = vadd.f32 %v3875_v60, %v8952_v42 }
0x1f02   :  { %v3876_v52 = vadd.f32 %v3874_v59, %v8954_v2 }
0x1f03   :  { %v3881_v38 = vsel %vm664_vm1, %v3877_v51, 0.0 }
0x1f04   :  { %3882 = vadd.xlane.f32.xlu1 %v3881_v38  ;;  %v3878_v9 = vsel %vm664_vm1, %v3876_v52, 0.0  ;;  %v4147_v38 = vld [vmem:[%s9493_s12] sm:$0xf] }
0x1f05   :  { %3879 = vadd.xlane.f32.xlu0 %v3878_v9  ;;  %v8019_v9 = vmov 0  }
0x1f06   :  { %7333 = vset.pattern.permute.xlu0 %v8019_v9 }
0x1f91   :  { %v3883_v58 = vpop.xlane.xlu1 %3882 }
0x1f92   :  { %v3885_v1 = vmul.f32 0.03125, %v3883_v58  ;;  %v3880_v4 = vpop.xlane.xlu0 %3879  ;;  %v4154_v58 = vld [vmem:[%s9494_s0] sm:$0xff] }
0x1f93   :  { %v3884_v7 = vmul.f32 0.03125, %v3880_v4 }
0x1f94   :  { %v3887_v15 = vsub.f32 %v3877_v51, %v3885_v1  ;;  %v4155_v1 = vld [vmem:[%s9494_s0 + $0x8] sm:$0xff] }
0x1f95   :  { %v3886_v8 = vsub.f32 %v3876_v52, %v3884_v7  ;;  %v8017_v52 = vmov 0.0|0.0   ;;  %v7177_v4 = vpack.c.bf16 %v4155_v1, %v4154_v58  ;;  %v4156_v7 = vld [vmem:[%s9494_s0 + $0x10] sm:$0xff]  ;;  %v4500_v58 = vld [vmem:[%s9508_s15] sm:$0xff]  ;;  %v4501_v1 = vld [vmem:[%s9508_s15 + $0x8] sm:$0xff] }
0x1f96   :  { %v3889_v27 = vmul.f32 %v3887_v15, %v3887_v15  ;;  %7173 = vmatprep.subr.bf16.mxu1 %v8017_v52  ;;  %7176 = vmatprep.subr.bf16.mxu0 %v8017_v52 }
0x1f97   :  { %v3888_v42 = vmul.f32 %v3886_v8, %v3886_v8 }
0x1f98   :  { %v3893_v2 = vsel %vm664_vm1, %v3889_v27, 0.0 }
0x1f99   :  { %3894 = vadd.xlane.f32.xlu1 %v3893_v2  ;;  %v3890_v0 = vsel %vm664_vm1, %v3888_v42, 0.0 }
0x1f9a   :  { %3891 = vadd.xlane.f32.xlu0 %v3890_v0 }
0x2026   :  { %v3895_v19 = vpop.xlane.xlu1 %3894 }
0x2027   :  { %v3897_v25 = vmul.f32 0.03125, %v3895_v19  ;;  %v3892_v26 = vpop.xlane.xlu0 %3891 }
0x2028   :  { %v3896_v24 = vmul.f32 0.03125, %v3892_v26 }
0x2029   :  { %v3899_v29 = vadd.f32 1e-05, %v3897_v25 }
0x202a   :  { %v3898_v50 = vadd.f32 1e-05, %v3896_v24  ;;  %v6123_v24 = vld [vmem:[#allocation11] ss:$0 sm:$0xff] }
0x202b   :  { %7470 = vrsqrt.f32 %v3899_v29 }
0x202c   :  { %7472 = vrsqrt.f32 %v3898_v50 }
0x2035   :  { %v7471_v32 = vpop.eup %7470 }
0x2036   :  { %v7473_v44 = vpop.eup %7472  ;;  %v3903_v20 = vmul.f32 %v7471_v32, %v3887_v15  ;;  %v4157_v15 = vld [vmem:[%s9494_s0 + $0x18] sm:$0xff] }
0x2037   :  { %v3902_v40 = vmul.f32 %v7473_v44, %v3886_v8  ;;  %v7180_v8 = vpack.c.bf16 %v4157_v15, %v4156_v7  ;;  %v4238_v44 = vld [vmem:[%s9501_s10] sm:$0xff]  ;;  %v4502_v7 = vld [vmem:[%s9508_s15 + $0x10] sm:$0xff]  ;;  %v4503_v15 = vld [vmem:[%s9508_s15 + $0x18] sm:$0xff] }
0x2038   :  { %v3911_v16 = vmul.f32 %v6117_v35, %v3903_v20  ;;  %v4239_v20 = vld [vmem:[%s9501_s10 + $0x8] sm:$0xff] }
0x2039   :  { %v3910_v46 = vmul.f32 %v6117_v35, %v3902_v40 }
0x203a   :  { %v3919_v47 = vadd.f32 %v6118_v36, %v3911_v16  ;;  %v7183_v16 = vpack.c.bf16 %v4239_v20, %v4238_v44  ;;  %v6133_v44 = vld [vmem:[%s9512_s8] ss:$0 sm:$0xff] }
0x203b   :  { %v3918_v12 = vadd.f32 %v6118_v36, %v3910_v46  ;;  %v4072_v36 = vsel %vm4071_vm14, 0.25, %v8015_v33  ;;  %v4240_v46 = vld [vmem:[%s9501_s10 + $0x10] sm:$0xff]  ;;  %vm4965_vm14 = vmor %vm4959_vm5, %vm4964_vm13 }
0x203d   :  { %6766 = vmatprep.mubr.msk.f32.mxu0 %vm664_vm1, %v3918_v12 }
0x203e   :  { %6767 = vmatmul.mubr.msk.f32.vlgmr.msra.gmra.mrb[42].mxu0 %vm664_vm1, %v3919_v47 }
0x203f   :  { %6784 = vmatprep.mubr.msk.f32.mxu0 %vm8018_vm3, %v8015_v33  ;;  %7178 = vmatpush3.bf16.msra.mxu0 %v7177_v4  ;;  %v7201_v4 = vpack.c.bf16 %v4501_v1, %v4500_v58  ;;  %v4705_v1 = vld [vmem:[%s9516_s23] sm:$0xff] }
0x2040   :  { %7179 = vmatprep.subr.bf16.mxu0 %v8017_v52 }
0x2043   :  { %7181 = vmatpush3.bf16.msra.mxu0 %v7180_v8 }
0x2044   :  { %7188 = vmatprep.subr.bf16.mxu0 %v8017_v52 }
0x2111   :  { %v6768_v48 = vpop.f32.mrb[42].mxu0 }
0x2112   :  { %v4004_v3 = vadd.f32 %v6768_v48, %v6119_v54  ;;  %v3998_v49 = vpop.f32.mrb[43].mxu0 }
0x2113   :  { %v3999_v55 = vadd.f32 %v6119_v54, %v3998_v49  ;;  %v4146_v54 = vld [vmem:[%s9503_s24] sm:$0xf]  ;;  %v4412_v49 = vld [vmem:[%s9504_s29 + $0x8] sm:$0xff] }
0x2114   :  { %v4008_v63 = vmax.f32 %v4004_v3, 0.0  ;;  %v4411_v3 = vld [vmem:[%s9504_s29] sm:$0xff] }
0x2115   :  { %v4007_v45 = vmax.f32 %v3999_v55, 0.0 }
0x2116   :  { %v4010_v53 = vadd.f32 %v4008_v63, %v3919_v47  ;;  %v7195_v63 = vpack.c.bf16 %v4412_v49, %v4411_v3  ;;  %v6135_v49 = vld [vmem:[%s9514_s19] ss:$0 sm:$0xff] }
0x2117   :  { %v4009_v22 = vadd.f32 %v4007_v45, %v3918_v12  ;;  %v4241_v12 = vld [vmem:[%s9501_s10 + $0x18] sm:$0xff]  ;;  %v4413_v45 = vld [vmem:[%s9504_s29 + $0x10] sm:$0xff] }
0x2118   :  { %v4014_v56 = vsel %vm664_vm1, %v4010_v53, 0.0  ;;  %v7186_v47 = vpack.c.bf16 %v4241_v12, %v4240_v46 }
0x2119   :  { %4015 = vadd.xlane.f32.xlu1 %v4014_v56  ;;  %v4011_v61 = vsel %vm664_vm1, %v4009_v22, 0.0  ;;  %v4581_v56 = vld [vmem:[%s9506_s11] sm:$0xff] }
0x211a   :  { %4012 = vadd.xlane.f32.xlu0 %v4011_v61  ;;  %v4582_v61 = vld [vmem:[%s9506_s11 + $0x8] sm:$0xff] }
0x21a6   :  { %v4016_v6 = vpop.xlane.xlu1 %4015 }
0x21a7   :  { %v4018_v57 = vmul.f32 0.03125, %v4016_v6  ;;  %v4013_v30 = vpop.xlane.xlu0 %4012  ;;  %v7207_v6 = vpack.c.bf16 %v4582_v61, %v4581_v56 }
0x21a8   :  { %v4017_v31 = vmul.f32 0.03125, %v4013_v30  ;;  %v4584_v30 = vld [vmem:[%s9506_s11 + $0x18] sm:$0xff] }
0x21a9   :  { %v4020_v41 = vsub.f32 %v4010_v53, %v4018_v57  ;;  %v4414_v53 = vld [vmem:[%s9504_s29 + $0x18] sm:$0xff]  ;;  %v4583_v57 = vld [vmem:[%s9506_s11 + $0x10] sm:$0xff] }
0x21aa   :  { %v4019_v21 = vsub.f32 %v4009_v22, %v4017_v31  ;;  %v7198_v22 = vpack.c.bf16 %v4414_v53, %v4413_v45  ;;  %v7210_v31 = vpack.c.bf16 %v4584_v30, %v4583_v57 }
0x21ab   :  { %v4022_v39 = vmul.f32 %v4020_v41, %v4020_v41 }
0x21ac   :  { %v4021_v60 = vmul.f32 %v4019_v21, %v4019_v21 }
0x21ad   :  { %v4026_v59 = vsel %vm664_vm1, %v4022_v39, 0.0 }
0x21ae   :  { %4027 = vadd.xlane.f32.xlu1 %v4026_v59  ;;  %v4023_v51 = vsel %vm664_vm1, %v4021_v60, 0.0  ;;  %v4332_v60 = vld [vmem:[%s9507_s20 + $0x10] sm:$0xff]  ;;  %v4333_v59 = vld [vmem:[%s9507_s20 + $0x18] sm:$0xff] }
0x21af   :  { %4024 = vadd.xlane.f32.xlu0 %v4023_v51  ;;  %v7192_v9 = vpack.c.bf16 %v4333_v59, %v4332_v60 }
0x21c5   :  { %4150 = vperm.xlu0 %7333, %v4147_v38  }
0x223b   :  { %v4028_v27 = vpop.xlane.xlu1 %4027 }
0x223c   :  { %v4030_v42 = vmul.f32 0.03125, %v4028_v27  ;;  %v4025_v2 = vpop.xlane.xlu0 %4024 }
0x223d   :  { %v4029_v0 = vmul.f32 0.03125, %v4025_v2 }
0x223e   :  { %v4032_v62 = vadd.f32 1e-05, %v4030_v42  ;;  %v7204_v42 = vpack.c.bf16 %v4503_v15, %v4502_v7  ;;  %v4702_v15 = vld [vmem:[%s9515_s27 + $0x10] sm:$0xff] }
0x223f   :  { %v4031_v11 = vadd.f32 1e-05, %v4029_v0 }
0x2240   :  { %7474 = vrsqrt.f32 %v4032_v62 }
0x2241   :  { %7476 = vrsqrt.f32 %v4031_v11 }
0x2244   :  { %v4151_v48 = vpop.permute.xlu0 %4150 }
0x2245   :  { %v9183_v55 = vmul.f32 %v4151_v48, %v4146_v54  ;;  %v6137_v48 = vld [vmem:[%s9513_s17] ss:$0 sm:$0xff] }
0x224a   :  { %v7475_v17 = vpop.eup %7474 }
0x224b   :  { %v7477_v19 = vpop.eup %7476  ;;  %v4036_v25 = vmul.f32 %v7475_v17, %v4020_v41  ;;  %v4330_v41 = vld [vmem:[%s9507_s20] sm:$0xff] }
0x224c   :  { %v4035_v26 = vmul.f32 %v7477_v19, %v4019_v21  ;;  %v4331_v21 = vld [vmem:[%s9507_s20 + $0x8] sm:$0xff]  ;;  %v6128_v19 = vld [vmem:[%s9510_s18] ss:$0 sm:$0xff] }
0x224d   :  { %v4044_v29 = vmul.f32 %v6122_v18, %v4036_v25  ;;  %v7189_v39 = vpack.c.bf16 %v4331_v21, %v4330_v41 }
0x224e   :  { %v4043_v50 = vmul.f32 %v6122_v18, %v4035_v26 }
0x224f   :  { %v4052_v32 = vadd.f32 %v6123_v24, %v4044_v29 }
0x2250   :  { %v4051_v35 = vadd.f32 %v6123_v24, %v4043_v50  ;;  %v6130_v24 = vld [vmem:[%s9511_s22] ss:$0 sm:$0xff] }
0x2252   :  { %v7174_v40 = vpack.c.bf16 %v4052_v32, %v4051_v35 }
0x2254   :  { %7175 = vmatpush3.bf16.msra.mxu1 %v7174_v40 }
0x2255   :  { %7182 = vmatprep.subr.bf16.mxu1 %v8017_v52 }
0x2257   :  { %6774 = vmatmul.mubr.msk.f32.vlgmr.msra.gmra.mrb[42].mxu1 %vm9505_vm15, %v4072_v36  ;;  %vm5046_vm15 = vcmask 27648  }
0x2258   :  { %7184 = vmatpush3.bf16.msra.mxu1 %v7183_v16  ;;  %6795 = vmatprep.mubr.msk.f32.mxu1 %vm8018_vm3, %v8015_v33 }
0x2259   :  { %7185 = vmatprep.subr.bf16.mxu1 %v8017_v52 }
0x225c   :  { %7187 = vmatpush3.bf16.msra.mxu1 %v7186_v47 }
0x225d   :  { %7194 = vmatprep.subr.bf16.mxu1 %v8017_v52 }
0x225f   :  { %6796 = vmatmul.mubr.msk.f32.vlgmr.msra.gmra.mrb[44].mxu1 %vm664_vm1, %v9183_v55 }
0x2260   :  { %7196 = vmatpush3.bf16.msra.mxu1 %v7195_v63  ;;  %6817 = vmatprep.mubr.msk.f32.mxu1 %vm8018_vm3, %v8015_v33 }
0x2261   :  { %7197 = vmatprep.subr.bf16.mxu1 %v8017_v52 }
0x2264   :  { %7199 = vmatpush3.bf16.msra.mxu1 %v7198_v22 }
0x2265   :  { %7206 = vmatprep.subr.bf16.mxu1 %v8017_v52 }
0x2267   :  { %6818 = vmatmul.mubr.msk.f32.vlgmr.msra.gmra.mrb[46].mxu1 %vm664_vm1, %v9183_v55 }
0x2268   :  { %7208 = vmatpush3.bf16.msra.mxu1 %v7207_v6  ;;  %6839 = vmatprep.mubr.msk.f32.mxu1 %vm8018_vm3, %v8015_v33 }
0x2269   :  { %7209 = vmatprep.subr.bf16.mxu1 %v8017_v52 }
0x226c   :  { %7211 = vmatpush3.bf16.msra.mxu1 %v7210_v31 }
0x226d   :  { %7218 = vmatprep.subr.bf16.mxu1 %v8017_v52 }
0x226f   :  { %6840 = vmatmul.mubr.msk.f32.vlgmr.msra.gmra.mrb[48].mxu1 %vm664_vm1, %v9183_v55 }
0x2270   :  { %6861 = vmatprep.mubr.msk.f32.mxu1 %vm8018_vm3, %v8015_v33 }
0x232a   :  { %v4142_v51 = vpop.f32.mrb[42].mxu1 }
0x232b   :  { %v6775_v38 = vpop.f32.mrb[43].mxu1  ;;  %6785 = vmatmul.mubr.msk.f32.vlgmr.msra.gmra.mrb[44].mxu0 %vm664_vm1, %v4142_v51 }
0x232c   :  { %7190 = vmatpush3.bf16.msra.mxu0 %v7189_v39  ;;  %6806 = vmatprep.mubr.msk.f32.mxu0 %vm8018_vm3, %v8015_v33 }
0x232d   :  { %7191 = vmatprep.subr.bf16.mxu0 %v8017_v52 }
0x2330   :  { %7193 = vmatpush3.bf16.msra.mxu0 %v7192_v9  ;;  %v4701_v9 = vld [vmem:[%s9515_s27 + $0x8] sm:$0xff] }
0x2331   :  { %7200 = vmatprep.subr.bf16.mxu0 %v8017_v52 }
0x2332   :  { %v4311_v8 = vpop.f32.mrb[44].mxu1 }
0x2333   :  { %6807 = vmatmul.mubr.msk.f32.vlgmr.msra.gmra.mrb[46].mxu0 %vm664_vm1, %v4142_v51  ;;  %v6797_v27 = vpop.f32.mrb[45].mxu1 }
0x2334   :  { %7202 = vmatpush3.bf16.msra.mxu0 %v7201_v4  ;;  %6828 = vmatprep.mubr.msk.f32.mxu0 %vm8018_vm3, %v8015_v33  ;;  %v4706_v4 = vld [vmem:[%s9516_s23 + $0x8] sm:$0xff]  ;;  %v4707_v27 = vld [vmem:[%s9516_s23 + $0x10] sm:$0xff] }
0x2335   :  { %7203 = vmatprep.subr.bf16.mxu0 %v8017_v52  ;;  %v7219_v7 = vpack.c.bf16 %v4706_v4, %v4705_v1 }
0x2337   :  { %7220 = vmatpush3.bf16.msra.mxu1 %v7219_v7 }
0x2338   :  { %7205 = vmatpush3.bf16.msra.mxu0 %v7204_v42  ;;  %7221 = vmatprep.subr.bf16.mxu1 %v8017_v52 }
0x2339   :  { %7212 = vmatprep.subr.bf16.mxu0 %v8017_v52 }
0x233a   :  { %v4481_v2 = vpop.f32.mrb[46].mxu1 }
0x233b   :  { %6829 = vmatmul.mubr.msk.f32.vlgmr.msra.gmra.mrb[48].mxu0 %vm664_vm1, %v4142_v51  ;;  %v6819_v0 = vpop.f32.mrb[47].mxu1 }
0x233c   :  { %6850 = vmatprep.mubr.msk.f32.mxu0 %vm8018_vm3, %v8015_v33 }
0x2342   :  { %v4658_v62 = vpop.f32.mrb[48].mxu1 }
0x2343   :  { %v6841_v11 = vpop.f32.mrb[49].mxu1  ;;  %v4659_v63 = vadd.f32 %v6137_v48, %v4658_v62 }
0x23fe   :  { %v4234_v14 = vpop.f32.mrb[44].mxu0 }
0x23ff   :  { %v4235_v17 = vadd.f32 %v6125_v23, %v4234_v14  ;;  %v6786_v18 = vpop.f32.mrb[45].mxu0 }
0x2401   :  { %v4315_v25 = vadd.f32 %v4311_v8, %v4235_v17  ;;  %v4703_v8 = vld [vmem:[%s9515_s27 + $0x18] sm:$0xff] }
0x2402   :  { %v7216_v42 = vpack.c.bf16 %v4703_v8, %v4702_v15  ;;  %v6139_v17 = vld [vmem:[#allocation25] ss:$0 sm:$0xff] }
0x2403   :  { %v4323_v26 = vadd.f32 %v6128_v19, %v4315_v25  ;;  %v4710_v19 = vld [vmem:[%s9517_s13] sm:$0xff]  ;;  %v4711_v25 = vld [vmem:[%s9517_s13 + $0x8] sm:$0xff] }
0x2405   :  { %v6129_v29 = vmul.f32 -1.442695, %v4323_v26  ;;  %v6140_v26 = vld [vmem:[#allocation26] ss:$0 sm:$0xff] }
0x2406   :  { %v4407_v50 = vpop.f32.mrb[46].mxu0 }
0x2407   :  { %7478 = vpow2.f32 %v6129_v29  ;;  %v4408_v32 = vadd.f32 %v6130_v24, %v4407_v50  ;;  %v6808_v35 = vpop.f32.mrb[47].mxu0  ;;  %v7225_v29 = vpack.c.bf16 %v4711_v25, %v4710_v19 }
0x2408   :  { %v4713_v35 = vld [vmem:[%s9517_s13 + $0x18] sm:$0xff] }
0x2409   :  { %v4485_v20 = vadd.f32 %v4481_v2, %v4408_v32  ;;  %v4708_v2 = vld [vmem:[%s9516_s23 + $0x18] sm:$0xff]  ;;  %v4712_v32 = vld [vmem:[%s9517_s13 + $0x10] sm:$0xff] }
0x240a   :  { %v7222_v0 = vpack.c.bf16 %v4708_v2, %v4707_v27 }
0x240b   :  { %v4493_v40 = vadd.f32 %v6133_v44, %v4485_v20  ;;  %v7228_v44 = vpack.c.bf16 %v4713_v35, %v4712_v32  ;;  %v6141_v20 = vld [vmem:[#allocation13] ss:$0 sm:$0xff] }
0x240c   :  { %7223 = vmatpush3.bf16.msra.mxu1 %v7222_v0 }
0x240d   :  { %v6134_v36 = vmul.f32 -1.442695, %v4493_v40  ;;  %6875 = vmatprep.subr.mxu1 %v8015_v33  ;;  %v6143_v40 = vld [vmem:[#allocation14] ss:$0 sm:$0xff] }
0x240e   :  { %v4577_v16 = vpop.f32.mrb[48].mxu0 }
0x240f   :  { %7480 = vpow2.f32 %v6134_v36  ;;  %v6830_v46 = vpop.f32.mrb[49].mxu0  ;;  %v4578_v22 = vadd.f32 %v6135_v49, %v4577_v16  ;;  %v6145_v49 = vld [vmem:[#allocation16] ss:$0 sm:$0xff] }
0x2411   :  { %v7479_v12 = vpop.eup %7478 }
0x2412   :  { %v4327_v47 = vadd.f32 1.0, %v7479_v12 }
0x2414   :  { %7482 = vrcp.f32 %v4327_v47 }
0x2419   :  { %v7481_v54 = vpop.eup %7480 }
0x241a   :  { %v4497_v3 = vadd.f32 1.0, %v7481_v54 }
0x241c   :  { %7484 = vrcp.f32 %v4497_v3 }
0x241e   :  { %v7483_v45 = vpop.eup %7482 }
0x241f   :  { %v4662_v53 = vmul.f32 %v7483_v45, %v4659_v63 }
0x2421   :  { %v4663_v56 = vadd.f32 %v4662_v53, %v4578_v22 }
0x2423   :  { %7486 = vtanh.f32 %v4663_v56 }
0x2426   :  { %v7485_v61 = vpop.eup %7484 }
0x2427   :  { %v4665_v6 = vsub.f32 1.0, %v7485_v61  ;;  %v4667_v31 = vmul.f32 %v7485_v61, %v9183_v55  ;;  %v4700_v55 = vld [vmem:[%s9515_s27] sm:$0xff]  ;;  %v4966_v61 = vsel %vm4965_vm14, 0.0, %v8016_v5 }
0x2428   :  { %v7213_v58 = vpack.c.bf16 %v4701_v9, %v4700_v55 }
0x242a   :  { %7214 = vmatpush3.bf16.msra.mxu0 %v7213_v58 }
0x242b   :  { %7215 = vmatprep.subr.bf16.mxu0 %v8017_v52 }
0x242d   :  { %v7487_v57 = vpop.eup %7486 }
0x242e   :  { %v4666_v30 = vmul.f32 %v7487_v57, %v4665_v6  ;;  %7217 = vmatpush3.bf16.msra.mxu0 %v7216_v42 }
0x242f   :  { %7224 = vmatprep.subr.bf16.mxu0 %v8017_v52 }
0x2430   :  { %v4668_v41 = vadd.f32 %v4667_v31, %v4666_v30 }
0x2432   :  { %v4673_v21 = vsel %vm4669_vm8, %v4668_v41, 0.0  ;;  %4670 = vst.msk [vmem:[#allocation29] sm:$0xf] %vm4669_vm8, %v4668_v41 }
0x2433   :  { %4674 = vadd.xlane.f32.xlu1 %v4673_v21 }
0x24c0   :  { %v4675_v39 = vpop.xlane.xlu1 %4674 }
0x24c1   :  { %v4676_v60 = vmul.f32 0.03125, %v4675_v39 }
0x24c3   :  { %v4677_v59 = vsub.f32 %v4668_v41, %v4676_v60 }
0x24c5   :  { %v4678_v51 = vmul.f32 %v4677_v59, %v4677_v59 }
0x24c7   :  { %v4679_v38 = vsel %vm4669_vm8, %v4678_v51, 0.0 }
0x24c8   :  { %4680 = vadd.xlane.f32.xlu1 %v4679_v38 }
0x2555   :  { %v4681_v62 = vpop.xlane.xlu1 %4680 }
0x2556   :  { %v4682_v11 = vmul.f32 0.03125, %v4681_v62 }
0x2558   :  { %v4683_v23 = vadd.f32 1e-05, %v4682_v11 }
0x255a   :  { %7488 = vrsqrt.f32 %v4683_v23 }
0x2564   :  { %v7489_v14 = vpop.eup %7488 }
0x2565   :  { %v4685_v18 = vmul.f32 %v7489_v14, %v4677_v59 }
0x2567   :  { %v4692_v24 = vmul.f32 %v6139_v17, %v4685_v18 }
0x2569   :  { %v4699_v50 = vadd.f32 %v6140_v26, %v4692_v24 }
0x256b   :  { %6851 = vmatmul.mubr.msk.f32.vlgmr.msra.gmra.mrb[50].mxu0 %vm664_vm1, %v4699_v50  ;;  %6862 = vmatmul.mubr.msk.f32.vlgmr.msra.gmra.mrb[50].mxu1 %vm664_vm1, %v4699_v50 }
0x256c   :  { %7226 = vmatpush3.bf16.msra.mxu0 %v7225_v29  ;;  %6872 = vmatprep.mubr.msk.f32.mxu0 %vm8018_vm3, %v8015_v33 }
0x256d   :  { %7227 = vmatprep.subr.bf16.mxu0 %v8017_v52  ;;  %6877 = vmatprep.mubr.msk.f32.mxu1 %vm8018_vm3, %v8015_v33 }
0x2570   :  { %7229 = vmatpush3.bf16.msra.mxu0 %v7228_v44 }
0x2571   :  { %6885 = vmatprep.subr.mxu0 %v8015_v33 }
0x2573   :  { %6873 = vmatmul.mubr.msk.f32.vlgmr.msra.gmra.mrb[52].mxu0 %vm664_vm1, %v4699_v50 }
0x2574   :  { %6887 = vmatprep.mubr.msk.f32.mxu0 %vm8018_vm3, %v8015_v33 }
0x263e   :  { %v4799_v36 = vpop.f32.mrb[50].mxu0  ;;  %v4875_v16 = vpop.f32.mrb[50].mxu1 }
0x263f   :  { %v9266_v46 = vadd.f32 %v6141_v20, %v4799_v36  ;;  %v4876_v12 = vadd.f32 %v6143_v40, %v4875_v16  ;;  %v6852_v47 = vpop.f32.mrb[51].mxu0  ;;  %v6863_v54 = vpop.f32.mrb[51].mxu1 }
0x2641   :  { %6876 = vmatpush3.xpose.msk.msra.mxu1 %vm664_vm1, %v4876_v12  ;;  %6886 = vmatpush3.xpose.msk.msra.mxu0 %vm664_vm1, %v4876_v12  ;;  %v4967_v48 = vmul.f32 %v8542_v34, %v9266_v46  ;;  %v5136_v3 = vmul.f32 %v8663_v10, %v9266_v46  ;;  %v5298_v45 = vmul.f32 %v8720_v37, %v9266_v46 }
0x2642   :  { %6895 = vmatprep.subr.mxu0 %v8015_v33  ;;  %6880 = vmatprep.subr.mxu1 %v8015_v33  ;;  %v5460_v56 = vmul.f32 %v8786_v13, %v9266_v46 }
0x2644   :  { %6878 = vmatmul.mubr.msk.f32.vlgmr.msra.gmra.mrb[52].mxu1 %vm664_vm1, %v4967_v48  ;;  %6888 = vmatmul.mubr.msk.f32.vlgmr.msra.gmra.mrb[54].mxu0 %vm664_vm1, %v5136_v3 }
0x2645   :  { %6896 = vmatpush3.xpose.msk.msra.mxu0 %vm664_vm1, %v4876_v12  ;;  %6897 = vmatprep.mubr.msk.f32.mxu0 %vm8018_vm3, %v8015_v33 }
0x2646   :  { %v4951_v63 = vpop.f32.mrb[52].mxu0  ;;  %6905 = vmatprep.subr.mxu0 %v8015_v33  ;;  %6882 = vmatprep.mubr.msk.f32.mxu1 %vm8018_vm3, %v8015_v33 }
0x2647   :  { %v9286_v53 = vadd.f32 %v6145_v49, %v4951_v63  ;;  %v6874_v22 = vpop.f32.mrb[53].mxu0 }
0x2648   :  { %6898 = vmatmul.mubr.msk.f32.vlgmr.msra.gmra.mrb[56].mxu0 %vm664_vm1, %v5298_v45 }
0x2649   :  { %6881 = vmatpush3.msk.msra.mxu1 %vm9518_vm9, %v9286_v53  ;;  %6906 = vmatpush3.xpose.msk.msra.mxu0 %vm664_vm1, %v4876_v12  ;;  %vm9521_vm9 = vmmov %vm9519_vm4 }
0x264a   :  { %6907 = vmatprep.mubr.msk.f32.mxu0 %vm8018_vm3, %v8015_v33  ;;  %6890 = vmatprep.subr.mxu1 %v8015_v33 }
0x264b   :  { %7230 = vmatprep.subr.bf16.mxu0 %v8017_v52 }
0x264c   :  { %6908 = vmatmul.mubr.msk.f32.vlgmr.msra.gmra.mrb[58].mxu0 %vm664_vm1, %v5460_v56 }
0x264d   :  { %6923 = vmatprep.mubr.msk.f32.mxu0 %vm8018_vm3, %v8015_v33 }
0x2717   :  { %v5040_v6 = vpop.f32.mrb[52].mxu1  ;;  %v5206_v57 = vpop.f32.mrb[54].mxu0 }
0x2718   :  { %v5044_v30 = vmul.f32 0.17677669, %v5040_v6  ;;  %v5210_v31 = vmul.f32 0.17677669, %v5206_v57  ;;  %v6879_v41 = vpop.f32.mrb[53].mxu1  ;;  %v6889_v21 = vpop.f32.mrb[55].mxu0 }
0x271a   :  { %v5045_v39 = vadd.f32 %v5044_v30, %v4966_v61  ;;  %v5211_v59 = vadd.f32 %v5210_v31, %v4966_v61 }
0x271b   :  { %v5368_v60 = vpop.f32.mrb[56].mxu0 }
0x271c   :  { %v5372_v43 = vmul.f32 0.17677669, %v5368_v60  ;;  %v6899_v51 = vpop.f32.mrb[57].mxu0  ;;  %v5047_v38 = vsel %vm5046_vm15, %v5045_v39, -inf  ;;  %v5212_v5 = vsel %vm5046_vm15, %v5211_v59, -inf }
0x271d   :  { %5048 = vmax.xlane.f32.xlu1 %v5047_v38 }
0x271e   :  { %v5373_v9 = vadd.f32 %v5372_v43, %v4966_v61 }
0x271f   :  { %v5530_v55 = vpop.f32.mrb[58].mxu0 }
0x2720   :  { %v5534_v58 = vmul.f32 0.17677669, %v5530_v55  ;;  %v6909_v1 = vpop.f32.mrb[59].mxu0  ;;  %v5374_v7 = vsel %vm5046_vm15, %v5373_v9, -inf }
0x2721   :  { %5213 = vmax.xlane.f32.xlu1 %v5212_v5  ;;  %v4716_v1 = vld [vmem:[%s9526_s4 + $0x8] sm:$0xff] }
0x2722   :  { %v5535_v4 = vadd.f32 %v5534_v58, %v4966_v61  ;;  %v4715_v58 = vld [vmem:[%s9526_s4] sm:$0xff] }
0x2723   :  { %v7231_v5 = vpack.c.bf16 %v4716_v1, %v4715_v58 }
0x2724   :  { %v5536_v15 = vsel %vm5046_vm15, %v5535_v4, -inf }
0x2725   :  { %5375 = vmax.xlane.f32.xlu1 %v5374_v7  ;;  %7232 = vmatpush3.bf16.msra.mxu0 %v7231_v5 }
0x2726   :  { %7233 = vmatprep.subr.bf16.mxu0 %v8017_v52 }
0x2729   :  { %5537 = vmax.xlane.f32.xlu1 %v5536_v15 }
0x27aa   :  { %v5049_v8 = vpop.xlane.xlu1 %5048 }
0x27ab   :  { %v5050_v27 = vsub.f32 %v5045_v39, %v5049_v8 }
0x27ad   :  { %v5051_v42 = vmul.f32 1.442695, %v5050_v27 }
0x27ae   :  { %v5214_v2 = vpop.xlane.xlu1 %5213 }
0x27af   :  { %7490 = vpow2.f32 %v5051_v42  ;;  %v5215_v0 = vsub.f32 %v5211_v59, %v5214_v2  ;;  %v6163_v42 = vld [vmem:[#allocation19] ss:$0 sm:$0xff] }
0x27b1   :  { %v5216_v62 = vmul.f32 1.442695, %v5215_v0  ;;  %v6164_v0 = vld [vmem:[#allocation20] ss:$0 sm:$0xff] }
0x27b2   :  { %v5376_v11 = vpop.xlane.xlu1 %5375 }
0x27b3   :  { %7492 = vpow2.f32 %v5216_v62  ;;  %v5377_v23 = vsub.f32 %v5373_v9, %v5376_v11 }
0x27b5   :  { %v5378_v14 = vmul.f32 1.442695, %v5377_v23  ;;  %v6165_v23 = vld [vmem:[#allocation17] ss:$0 sm:$0xff] }
0x27b6   :  { %v5538_v17 = vpop.xlane.xlu1 %5537 }
0x27b7   :  { %7494 = vpow2.f32 %v5378_v14  ;;  %v5539_v18 = vsub.f32 %v5535_v4, %v5538_v17  ;;  %v4718_v4 = vld [vmem:[%s9526_s4 + $0x18] sm:$0xff] }
0x27b9   :  { %v7491_v19 = vpop.eup %7490  ;;  %v5540_v25 = vmul.f32 1.442695, %v5539_v18 }
0x27ba   :  { %v5053_v26 = vsel %vm5046_vm15, %v7491_v19, 0.0 }
0x27bb   :  { %7496 = vpow2.f32 %v5540_v25  ;;  %5054 = vadd.xlane.f32.xlu1 %v5053_v26 }
0x27bd   :  { %v7493_v24 = vpop.eup %7492 }
0x27be   :  { %v5218_v29 = vsel %vm5046_vm15, %v7493_v24, 0.0 }
0x27bf   :  { %5219 = vadd.xlane.f32.xlu1 %v5218_v29 }
0x27c1   :  { %v7495_v50 = vpop.eup %7494 }
0x27c2   :  { %v5380_v32 = vsel %vm5046_vm15, %v7495_v50, 0.0 }
0x27c3   :  { %5381 = vadd.xlane.f32.xlu1 %v5380_v32 }
0x27c5   :  { %v7497_v35 = vpop.eup %7496 }
0x27c6   :  { %v5542_v44 = vsel %vm5046_vm15, %v7497_v35, 0.0 }
0x27c7   :  { %5543 = vadd.xlane.f32.xlu1 %v5542_v44  ;;  %v5758_v44 = vld [vmem:[%s9527_s26] sm:$0xff] }
0x2848   :  { %v5055_v20 = vpop.xlane.xlu1 %5054 }
0x2849   :  { %7498 = vrcp.f32 %v5055_v20  ;;  %v5759_v20 = vld [vmem:[%s9527_s26 + $0x8] sm:$0xff] }
0x284c   :  { %v5220_v40 = vpop.xlane.xlu1 %5219 }
0x284d   :  { %7500 = vrcp.f32 %v5220_v40  ;;  %v7237_v40 = vpack.c.bf16 %v5759_v20, %v5758_v44 }
0x2850   :  { %v5382_v36 = vpop.xlane.xlu1 %5381 }
0x2851   :  { %7502 = vrcp.f32 %v5382_v36  ;;  %v5760_v36 = vld [vmem:[%s9527_s26 + $0x10] sm:$0xff] }
0x2853   :  { %v7499_v16 = vpop.eup %7498 }
0x2854   :  { %v5057_v12 = vmul.f32 %v7499_v16, %v7491_v19  ;;  %v5544_v47 = vpop.xlane.xlu1 %5543  ;;  %v5761_v16 = vld [vmem:[%s9527_s26 + $0x18] sm:$0xff] }
0x2855   :  { %7504 = vrcp.f32 %v5544_v47 }
0x2856   :  { %6883 = vmatmul.mubr.msk.f32.vlgmr.msra.gmra.mrb[54].mxu1 %vm9519_vm4, %v5057_v12  ;;  %v7240_v12 = vpack.c.bf16 %v5761_v16, %v5760_v36 }
0x2857   :  { %v7501_v54 = vpop.eup %7500  ;;  %6891 = vmatpush3.msk.msra.mxu1 %vm9520_vm12, %v9286_v53  ;;  %6892 = vmatprep.mubr.msk.f32.mxu1 %vm8018_vm3, %v8015_v33 }
0x2858   :  { %v5222_v48 = vmul.f32 %v7501_v54, %v7493_v24  ;;  %6900 = vmatprep.subr.mxu1 %v8015_v33 }
0x285a   :  { %6893 = vmatmul.mubr.msk.f32.vlgmr.msra.gmra.mrb[56].mxu1 %vm9521_vm9, %v5222_v48 }
0x285b   :  { %v7503_v3 = vpop.eup %7502  ;;  %6901 = vmatpush3.msk.msra.mxu1 %vm9522_vm10, %v9286_v53  ;;  %6902 = vmatprep.mubr.msk.f32.mxu1 %vm8018_vm3, %v8015_v33 }
0x285c   :  { %v5384_v49 = vmul.f32 %v7503_v3, %v7495_v50  ;;  %6910 = vmatprep.subr.mxu1 %v8015_v33 }
0x285e   :  { %6903 = vmatmul.mubr.msk.f32.vlgmr.msra.gmra.mrb[58].mxu1 %vm9523_vm6, %v5384_v49  ;;  %v6167_v49 = vld [vmem:[#allocation22] ss:$0 sm:$0xff] }
0x285f   :  { %v7505_v63 = vpop.eup %7504  ;;  %6911 = vmatpush3.msk.msra.mxu1 %vm9524_vm11, %v9286_v53  ;;  %6912 = vmatprep.mubr.msk.f32.mxu1 %vm8018_vm3, %v8015_v33 }
0x2860   :  { %v5546_v45 = vmul.f32 %v7505_v63, %v7497_v35  ;;  %7236 = vmatprep.subr.bf16.mxu1 %v8017_v52 }
0x2862   :  { %6913 = vmatmul.mubr.msk.f32.vlgmr.msra.gmra.mrb[60].mxu1 %vm9525_vm7, %v5546_v45  ;;  %v6168_v45 = vld [vmem:[#allocation23] ss:$0 sm:$0xff] }
0x2863   :  { %6934 = vmatprep.mubr.msk.f32.mxu1 %vm8018_vm3, %v8015_v33  ;;  %7238 = vmatpush3.bf16.msra.mxu1 %v7237_v40  ;;  %vm5842_vm3 = vcmask 35840  }
0x2864   :  { %7239 = vmatprep.subr.bf16.mxu1 %v8017_v52 }
0x2867   :  { %7241 = vmatpush3.bf16.msra.mxu1 %v7240_v12 }
0x2929   :  { %v5130_v22 = vpop.f32.mrb[54].mxu1 }
0x292a   :  { %v6884_v56 = vpop.f32.mrb[55].mxu1  ;;  %v5134_v6 = vmul.f32 %v8542_v34, %v5130_v22 }
0x292d   :  { %v5292_v61 = vpop.f32.mrb[56].mxu1 }
0x292e   :  { %v5296_v57 = vmul.f32 %v8663_v10, %v5292_v61  ;;  %v6894_v30 = vpop.f32.mrb[57].mxu1  ;;  %v6169_v61 = vld [vmem:[#allocation28] ss:$0 sm:$0xff] }
0x2930   :  { %v5297_v53 = vadd.f32 %v5296_v57, %v5134_v6 }
0x2931   :  { %v5454_v31 = vpop.f32.mrb[58].mxu1 }
0x2932   :  { %v5458_v41 = vmul.f32 %v8720_v37, %v5454_v31  ;;  %v6904_v21 = vpop.f32.mrb[59].mxu1 }
0x2934   :  { %v5459_v39 = vadd.f32 %v5458_v41, %v5297_v53 }
0x2935   :  { %v5616_v60 = vpop.f32.mrb[60].mxu1 }
0x2936   :  { %v5620_v59 = vmul.f32 %v8786_v13, %v5616_v60  ;;  %v6914_v33 = vpop.f32.mrb[61].mxu1  ;;  %v4717_v13 = vld [vmem:[%s9526_s4 + $0x10] sm:$0xff] }
0x2937   :  { %v7234_v7 = vpack.c.bf16 %v4718_v4, %v4717_v13 }
0x2938   :  { %v5621_v43 = vadd.f32 %v5620_v59, %v5459_v39 }
0x2939   :  { %7235 = vmatpush3.bf16.msra.mxu0 %v7234_v7 }
0x293a   :  { %v5622_v34 = vadd.f32 %v5621_v43, %v9266_v46 }
0x293c   :  { %v5623_v10 = vsel %vm4669_vm8, %v5622_v34, 0.0 }
0x293d   :  { %5624 = vadd.xlane.f32.xlu1 %v5623_v10 }
0x29ca   :  { %v5625_v51 = vpop.xlane.xlu1 %5624 }
0x29cb   :  { %v5626_v38 = vmul.f32 0.03125, %v5625_v51 }
0x29cd   :  { %v5627_v55 = vsub.f32 %v5622_v34, %v5626_v38 }
0x29cf   :  { %v5628_v37 = vmul.f32 %v5627_v55, %v5627_v55 }
0x29d1   :  { %v5629_v9 = vsel %vm4669_vm8, %v5628_v37, 0.0 }
0x29d2   :  { %5630 = vadd.xlane.f32.xlu0 %v5629_v9 }
0x2a5f   :  { %v5631_v46 = vpop.xlane.xlu0 %5630 }
0x2a60   :  { %v5632_v15 = vmul.f32 0.03125, %v5631_v46 }
0x2a62   :  { %v5633_v8 = vadd.f32 1e-05, %v5632_v15 }
0x2a64   :  { %7506 = vrsqrt.f32 %v5633_v8 }
0x2a6e   :  { %v7507_v27 = vpop.eup %7506 }
0x2a6f   :  { %v5635_v2 = vmul.f32 %v7507_v27, %v5627_v55 }
0x2a71   :  { %v5642_v62 = vmul.f32 %v6163_v42, %v5635_v2 }
0x2a73   :  { %v5649_v11 = vadd.f32 %v6164_v0, %v5642_v62 }
0x2a75   :  { %6924 = vmatmul.mubr.msk.f32.vlgmr.msra.gmra.mrb[60].mxu0 %vm664_vm1, %v5649_v11 }
0x2b48   :  { %v5725_v14 = vpop.f32.mrb[60].mxu0 }
0x2b49   :  { %v5726_v17 = vadd.f32 %v6165_v23, %v5725_v14  ;;  %v6925_v18 = vpop.f32.mrb[61].mxu0 }
0x2b4b   :  { %v5729_v19 = vmax.f32 %v5726_v17, 0.0 }
0x2b4d   :  { %v5730_v25 = vadd.f32 %v5729_v19, %v5649_v11 }
0x2b4f   :  { %v5731_v26 = vsel %vm4669_vm8, %v5730_v25, 0.0 }
0x2b50   :  { %5732 = vadd.xlane.f32.xlu1 %v5731_v26 }
0x2bdd   :  { %v5733_v24 = vpop.xlane.xlu1 %5732 }
0x2bde   :  { %v5734_v29 = vmul.f32 0.03125, %v5733_v24 }
0x2be0   :  { %v5735_v50 = vsub.f32 %v5730_v25, %v5734_v29 }
0x2be2   :  { %v5736_v32 = vmul.f32 %v5735_v50, %v5735_v50 }
0x2be4   :  { %v5737_v35 = vsel %vm4669_vm8, %v5736_v32, 0.0 }
0x2be5   :  { %5738 = vadd.xlane.f32.xlu1 %v5737_v35 }
0x2c72   :  { %v5739_v47 = vpop.xlane.xlu1 %5738 }
0x2c73   :  { %v5740_v54 = vmul.f32 0.03125, %v5739_v47 }
0x2c75   :  { %v5741_v48 = vadd.f32 1e-05, %v5740_v54 }
0x2c77   :  { %7508 = vrsqrt.f32 %v5741_v48 }
0x2c81   :  { %v7509_v3 = vpop.eup %7508 }
0x2c82   :  { %v5743_v63 = vmul.f32 %v7509_v3, %v5735_v50 }
0x2c84   :  { %v5750_v22 = vmul.f32 %v6167_v49, %v5743_v63 }
0x2c86   :  { %v5757_v56 = vadd.f32 %v6168_v45, %v5750_v22 }
0x2c88   :  { %6935 = vmatmul.mubr.msk.f32.vlgmr.msra.gmra.mrb[62].mxu1 %vm664_vm1, %v5757_v56 }
0x2d5b   :  { %v5838_v6 = vpop.f32.mrb[62].mxu1 }
0x2d5c   :  { %v5839_v57 = vadd.f32 %v6169_v61, %v5838_v6  ;;  %v6936_v30 = vpop.f32.mrb[63].mxu1 }
0x2d5e   :  { %v5843_v52 = vsel %vm5842_vm3, %v5839_v57, -inf }
0x2d5f   :  { %5844 = vmax.xlane.f32.xlu1 %v5843_v52 }
0x2dec   :  { %v5845_v53 = vpop.xlane.xlu1 %5844 }
0x2ded   :  { %v5846_v31 = vsub.f32 %v5839_v57, %v5845_v53  ;;  %vm5855_vm8 = vcmp.eq.f32.partialorder %v5839_v57, %v5845_v53 }
0x2dee   :  { %v5856_v41 = vsel %vm5855_vm8, %v8534_v28, 5 }
0x2def   :  { %v5847_v21 = vmul.f32 1.442695, %v5846_v31  ;;  %v5857_v39 = vsel %vm5842_vm3, %v5856_v41, 2147483647 }
0x2df0   :  { %v5859_v60 = vshra.s32 %v5857_v39, 16  ;;  %v5858_v34 = vand.u32 65535, %v5857_v39 }
0x2df1   :  { %7510 = vpow2.f32 %v5847_v21 }
0x2df2   :  { %v5861_v59 = vcvt.s32.f32 %v5859_v60  ;;  %v5860_v51 = vcvt.s32.f32 %v5858_v34 }
0x2df4   :  { %5862 = vmin.xlane.f32.xlu1 %v5861_v59 }
0x2dfb   :  { %v7511_v33 = vpop.eup %7510 }
0x2dfc   :  { %v5849_v43 = vsel %vm5842_vm3, %v7511_v33, 0.0 }
0x2dfd   :  { %5850 = vadd.xlane.f32.xlu1 %v5849_v43 }
0x2e81   :  { %v5863_v10 = vpop.xlane.xlu1 %5862 }
0x2e82   :  { %vm5864_vm1 = vcmp.eq.f32.partialorder %v5861_v59, %v5863_v10 }
0x2e83   :  { %v5865_v38 = vsel %vm5864_vm1, %v5860_v51, inf }
0x2e84   :  { %5866 = vmin.xlane.f32.xlu1 %v5865_v38 }
0x2e8a   :  { %v5851_v55 = vpop.xlane.xlu1 %5850 }
0x2e8b   :  { %7512 = vlog2.f32 %v5851_v55 }
0x2e95   :  { %v7513_v28 = vpop.eup %7512 }
0x2e96   :  { %v5853_v37 = vmul.f32 0.6931472, %v7513_v28 }
0x2e97   :  { %7899 = shalt.err (!%p7896_p0)
}
0x2e98   :  { %s7900_s2 = scalar_lea.hbm %s8369_s25, 64 }
0x2e99   :  { %p7901_p1 = scmp.ne.s32.totalorder %s8369_s25, %s7900_s2  ;;  %p7904_p2 = scmp.lt.u32.totalorder %s7900_s2, %s8369_s25 }
0x2e9b   :  { %p7906_p3 = pnand %p7904_p2, %p7901_p1 }
0x2e9d   :  { %7909 = shalt.err (!%p7906_p3)
}
0x2e9e   :  { %5889 = dma.vmem_to_hbm [thread:$0]  %s5887_s28, 64, %s8369_s25, [#allocation4]   ;;  %v5854_v9 = vadd.f32 %v5853_v37, %v5845_v53  ;;  %vm5872_vm0 = vcmask 3072   ;;  %v5869_v1 = vcvt.f32.s32 %v5863_v10 }
0x2ea0   :  { %v5874_v58 = vsub.f32 %v5845_v53, %v5854_v9  ;;  %v5870_v13 = vshll.u32 %v5869_v1, 16 }
0x2ea2   :  { %5875 = vst.msk [vmem:[%s8364_s6] sm:$0xf] %vm5872_vm0, %v5874_v58 }
0x2f11   :  { %v5867_v5 = vpop.xlane.xlu1 %5866 }
0x2f12   :  { %v5868_v4 = vcvt.f32.s32 %v5867_v5 }
0x2f14   :  { %v5871_v7 = vadd.s32 %v5870_v13, %v5868_v4 }
0x2f16   :  { %5873 = vst.msk [vmem:[%s8359_s21] sm:$0xf] %vm5872_vm0, %v5871_v7 }
0x2f17   :  { %7928 = dma.done.wait [#allocation4], 64  }
0x2f18   :  { %7929 = vsyncadd [#allocation4], 4294967232 }
0x2f19   :  { %5897 = vsyncpa [#allocation3], 1 }
0x2f1a   :  { %5898 = vsyncpa [#allocation6], 1 }
0x2f1b   :  { %5899 = vsyncpa [#allocation9], 1 }
0x2f1c   :  { %5900 = vsyncpa [#allocation12], 1 }
0x2f1d   :  { %5901 = vsyncpa [#allocation15], 1 }
0x2f1e   :  { %5902 = vsyncpa [#allocation18], 1 }
0x2f1f   :  { %5903 = vsyncpa [#allocation21], 1 }
0x2f20   :  { %5904 = vsyncpa [#allocation24], 1 }
0x2f21   :  { %5905 = vsyncpa [#allocation27], 1 }
0x2f22   :  { %5906 = vsyncpa [#allocation4], 1 }

</bundles_post_ra>
